<compile_context>
chip_gen: v6e
topology: v6e:2x2x1
jax: 0.10.0
libtpu: 0.0.40
codegen_flags: <defaults>
</compile_context>

<pallas_src>
import functools

import jax
import jax.numpy as jnp
from jax import lax
from jax.experimental import pallas as pl
from jax.experimental.pallas import tpu as pltpu


_UNROLL_MAX_STEPS = 16   # single fully-unrolled chunk up to this many steps
_STEP_CHUNK = 8          # chunk size of the fori_loop path for longer chains


def _mcmc_kernel(s_ref, w_ref, b_ref, logu_ref, o_ref, *, n_sub):
    """Runs the whole MCMC chain for one block of `tb` chains, fully in VMEM."""
    tb, _ = s_ref.shape
    half = tb // n_sub
    n_chunks, _, chunk_len = logu_ref.shape

    w_bf = w_ref[...]        # (D, D) bf16, shared by all sub-blocks / steps
    b_row = b_ref[...]       # (1, D) f32; broadcast happens inside the add only

    # Per-sub-block carried state (s, E(s)); E(s) is carried so the energy of
    # the (possibly rejected) current state is never recomputed.
    def init(i):
        s_i = s_ref[i * half:(i + 1) * half, :]
        return s_i, jnp.sum(s_i * s_i, axis=-1, keepdims=True)

    subs0 = tuple(init(i) for i in range(n_sub))

    def one_step(subs, logu_chunk, k):
        """One Metropolis step for every (data-independent) chain sub-block."""
        new_subs = []
        for i, (s, e_s) in enumerate(subs):
            # proposer: tanh(s @ W + b)  (bf16 MXU operands, f32 accumulate).
            x_hat = jnp.tanh(
                jnp.dot(s.astype(jnp.bfloat16), w_bf,
                        preferred_element_type=jnp.float32) + b_row)
            # acceptance rule: Metropolis under E(x) = ||x||^2.
            e_hat = jnp.sum(x_hat * x_hat, axis=-1, keepdims=True)
            log_u = logu_chunk[i * half:(i + 1) * half, k:k + 1]   # static slice
            accept = log_u < (e_s - e_hat)                          # (half, 1)
            new_subs.append((jnp.where(accept, x_hat, s),
                             jnp.where(accept, e_hat, e_s)))
        return tuple(new_subs)

    def chunk_body(c, subs):
        logu_chunk = logu_ref[c]              # (tb, chunk_len); leading-axis index
        for k in range(chunk_len):            # static unroll within the chunk
            subs = one_step(subs, logu_chunk, k)
        return subs

    if n_chunks == 1:
        subs = chunk_body(0, subs0)           # fully static / fully unrolled
    else:
        # TODO(synk): for chains of thousands of steps, stream log(u) in
        # step-chunk tiles via a second grid axis instead of holding the whole
        # table resident (matters on v7x's 64 MiB VMEM once tb is also large).
        subs = lax.fori_loop(0, n_chunks, chunk_body, subs0)

    for i in range(n_sub):
        o_ref[i * half:(i + 1) * half, :] = subs[i][0].astype(o_ref.dtype)


def mcmc_layer(s, w, b, key, *, steps):
    """Runs the MCMC chain kernel.

    Args:
      s:     (B, D) float32 initial chain state (B independent chains).
      w:     (D, D) float32 proposer weight.
      b:     (1, D) float32 proposer bias.
      key:   jax PRNG key for the per-step acceptance uniforms.
      steps: static number of MCMC steps (>= 1).
    Returns:
      (B, D) float32 final chain state.
    """
    if steps < 1:
        raise ValueError("Number of steps must be positive.")
    B, D = s.shape
    if B % 8 != 0:
        raise ValueError(f"Number of chains ({B}) must be a multiple of 8.")

    # Chain-block tiling: 256-row blocks when that still leaves >= 2 grid blocks
    # (keeps both v7x TensorCores busy, amortizes per-grid-step overhead on
    # v6e); otherwise 128-row blocks (one v5e MXU M-pass) or the whole batch.
    if B % 256 == 0 and B // 256 >= 2:
        tb = 256
    elif B % 128 == 0:
        tb = 128
    else:
        tb = B
    grid = (B // tb,)

    # Interleave two independent sub-blocks of chains inside the step loop so
    # their (strictly serial per chain) MXU/EUP/XLU/VPU stages overlap.
    n_sub = 2 if tb % 16 == 0 else 1

    # Precompute log(u) for every (chain, step) once, off the serial chain.
    if steps <= _UNROLL_MAX_STEPS:
        chunk_len, n_chunks = steps, 1
    else:
        chunk_len = _STEP_CHUNK
        n_chunks = (steps + _STEP_CHUNK - 1) // _STEP_CHUNK
    steps_pad = n_chunks * chunk_len

    u = jax.random.uniform(key, (B, steps), dtype=jnp.float32,
                           minval=1e-12, maxval=1.0)
    log_u = jnp.log(u)
    if steps_pad != steps:
        # Padded steps always reject (log_u = +inf); the proposer is a pure
        # function of s, so the extra steps are exact no-ops.
        log_u = jnp.concatenate(
            [log_u, jnp.full((B, steps_pad - steps), jnp.inf, jnp.float32)],
            axis=1)
    # (n_chunks, B, chunk_len): chunk on a leading (cheaply indexable) axis,
    # within-chunk step index is a small static lane slice.
    log_u = log_u.reshape(B, n_chunks, chunk_len).transpose(1, 0, 2)

    # bf16 weights: higher MXU throughput on v6e/v7x and half the DMA traffic.
    w_bf16 = w.astype(jnp.bfloat16)

    kernel = functools.partial(_mcmc_kernel, n_sub=n_sub)
    return pl.pallas_call(
        kernel,
        out_shape=jax.ShapeDtypeStruct((B, D), jnp.float32),
        grid=grid,
        in_specs=[
            pl.BlockSpec((tb, D), lambda i: (i, 0)),                       # s block
            pl.BlockSpec((D, D), lambda i: (0, 0)),                        # W (shared)
            pl.BlockSpec((1, D), lambda i: (0, 0)),                        # b (shared)
            pl.BlockSpec((n_chunks, tb, chunk_len), lambda i: (0, i, 0)),  # log(u)
        ],
        out_specs=pl.BlockSpec((tb, D), lambda i: (i, 0)),
        compiler_params=pltpu.CompilerParams(
            dimension_semantics=("parallel",),
        ),
    )(s, w_bf16, b, log_u)


if __name__ == "__main__":
    # 512 chains -> grid=(2,) blocks of 256 rows (both v7x TensorCores get a
    # block), each block interleaving two 128-row sub-blocks (one v5e MXU
    # M-pass each).  D=128 = one lane tile.
    # TODO(synk): MCMCLayer is generic over (proposer, acceptanceRule)
    # callables; a concrete tanh-linear proposer + Metropolis rule under
    # E(x)=||x||^2 is instantiated in-kernel above.
    B, D = 512, 128
    STEPS = 4

    key = jax.random.PRNGKey(0)
    k_s, k_w, k_b, k_u = jax.random.split(key, 4)

    s0 = jax.random.normal(k_s, (B, D), dtype=jnp.float32)
    # Deterministic proposer parameters (synthetic; no checkpoint load).
    w = 0.1 * jax.random.normal(k_w, (D, D), dtype=jnp.float32)
    b = 0.01 * jax.random.normal(k_b, (1, D), dtype=jnp.float32)

    out = mcmc_layer(s0, w, b, k_u, steps=STEPS)
    jax.block_until_ready(out)
    assert out.shape == (B, D) and out.dtype == jnp.float32
    assert bool(jnp.all(jnp.isfinite(out)))
    print("KERNEL_OK")
</pallas_src>

<mosaic_0001>
module attributes {stable_mosaic.version = 11 : i64} {
  func.func @_mcmc_kernel(%arg0: i32, %arg1: memref<256x128xf32, #tpu.memory_space<vmem>>, %arg2: memref<128x128xbf16, #tpu.memory_space<vmem>>, %arg3: memref<1x128xf32, #tpu.memory_space<vmem>>, %arg4: memref<1x256x4xf32, #tpu.memory_space<vmem>>, %arg5: memref<256x128xf32, #tpu.memory_space<vmem>>) attributes {dimension_semantics = [#tpu.dimension_semantics<parallel>], iteration_bounds = array<i64: 2>, scalar_prefetch = 0 : i64, scratch_operands = 0 : i64, tpu.core_type = #tpu.core_type<tc>, window_params = [{transform_indices = @transform_0, window_bounds = array<i64: 256, 128>}, {pipeline_mode = #tpu.pipeline_mode<synchronous>, transform_indices = @transform_1, window_bounds = array<i64: 128, 128>}, {pipeline_mode = #tpu.pipeline_mode<synchronous>, transform_indices = @transform_2, window_bounds = array<i64: 1, 128>}, {transform_indices = @transform_3, window_bounds = array<i64: 1, 256, 4>}, {transform_indices = @transform_4, window_bounds = array<i64: 256, 128>}]} {
    %c0 = arith.constant 0 : index
    %c0_0 = arith.constant 0 : index
    %0 = vector.load %arg2[%c0, %c0_0] : memref<128x128xbf16, #tpu.memory_space<vmem>>, vector<128x128xbf16>
    %c0_1 = arith.constant 0 : index
    %c0_2 = arith.constant 0 : index
    %1 = vector.load %arg3[%c0_1, %c0_2] : memref<1x128xf32, #tpu.memory_space<vmem>>, vector<1x128xf32>
    %c0_3 = arith.constant 0 : index
    %c0_4 = arith.constant 0 : index
    %2 = vector.load %arg1[%c0_3, %c0_4] : memref<256x128xf32, #tpu.memory_space<vmem>>, vector<128x128xf32>
    %3 = arith.mulf %2, %2 : vector<128x128xf32>
    %cst = arith.constant dense<0.000000e+00> : vector<128xf32>
    %4 = vector.multi_reduction <add>, %3, %cst [1] : vector<128x128xf32> to vector<128xf32>
    %5 = vector.shape_cast %4 : vector<128xf32> to vector<128x1xf32>
    %c128 = arith.constant 128 : index
    %c0_5 = arith.constant 0 : index
    %6 = vector.load %arg1[%c128, %c0_5] : memref<256x128xf32, #tpu.memory_space<vmem>>, vector<128x128xf32>
    %7 = arith.mulf %6, %6 : vector<128x128xf32>
    %cst_6 = arith.constant dense<0.000000e+00> : vector<128xf32>
    %8 = vector.multi_reduction <add>, %7, %cst_6 [1] : vector<128x128xf32> to vector<128xf32>
    %9 = vector.shape_cast %8 : vector<128xf32> to vector<128x1xf32>
    %c0_7 = arith.constant 0 : index
    %c0_8 = arith.constant 0 : index
    %c0_9 = arith.constant 0 : index
    %10 = vector.load %arg4[%c0_7, %c0_8, %c0_9] : memref<1x256x4xf32, #tpu.memory_space<vmem>>, vector<1x256x4xf32>
    %11 = vector.shape_cast %10 : vector<1x256x4xf32> to vector<256x4xf32>
    %12 = arith.truncf %2 : vector<128x128xf32> to vector<128x128xbf16>
    %cst_10 = arith.constant dense<0.000000e+00> : vector<128x128xf32>
    %13 = tpu.matmul %12, %0, %cst_10 {dimension_numbers = #tpu.dot_dimension_numbers<[1], [0], [0], [1], [0, 0, 1, 1], [], []>} : vector<128x128xbf16>, vector<128x128xbf16>, vector<128x128xf32> -> vector<128x128xf32>
    %14 = vector.broadcast %1 : vector<1x128xf32> to vector<128x128xf32>
    %15 = arith.addf %13, %14 : vector<128x128xf32>
    %16 = math.tanh %15 : vector<128x128xf32>
    %17 = arith.mulf %16, %16 : vector<128x128xf32>
    %cst_11 = arith.constant dense<0.000000e+00> : vector<128xf32>
    %18 = vector.multi_reduction <add>, %17, %cst_11 [1] : vector<128x128xf32> to vector<128xf32>
    %19 = vector.shape_cast %18 : vector<128xf32> to vector<128x1xf32>
    %20 = vector.extract_strided_slice %11 {offsets = [0, 0], sizes = [128, 1], strides = [1, 1]} : vector<256x4xf32> to vector<128x1xf32>
    %21 = arith.subf %5, %19 : vector<128x1xf32>
    %22 = arith.cmpf olt, %20, %21 : vector<128x1xf32>
    %23 = vector.shape_cast %22 : vector<128x1xi1> to vector<128x1xi1>
    %24 = vector.broadcast %23 : vector<128x1xi1> to vector<128x128xi1>
    %25 = arith.select %24, %16, %2 : vector<128x128xi1>, vector<128x128xf32>
    %26 = arith.select %22, %19, %5 : vector<128x1xi1>, vector<128x1xf32>
    %27 = arith.truncf %6 : vector<128x128xf32> to vector<128x128xbf16>
    %cst_12 = arith.constant dense<0.000000e+00> : vector<128x128xf32>
    %28 = tpu.matmul %27, %0, %cst_12 {dimension_numbers = #tpu.dot_dimension_numbers<[1], [0], [0], [1], [0, 0, 1, 1], [], []>} : vector<128x128xbf16>, vector<128x128xbf16>, vector<128x128xf32> -> vector<128x128xf32>
    %29 = vector.broadcast %1 : vector<1x128xf32> to vector<128x128xf32>
    %30 = arith.addf %28, %29 : vector<128x128xf32>
    %31 = math.tanh %30 : vector<128x128xf32>
    %32 = arith.mulf %31, %31 : vector<128x128xf32>
    %cst_13 = arith.constant dense<0.000000e+00> : vector<128xf32>
    %33 = vector.multi_reduction <add>, %32, %cst_13 [1] : vector<128x128xf32> to vector<128xf32>
    %34 = vector.shape_cast %33 : vector<128xf32> to vector<128x1xf32>
    %35 = vector.extract_strided_slice %11 {offsets = [128, 0], sizes = [128, 1], strides = [1, 1]} : vector<256x4xf32> to vector<128x1xf32>
    %36 = arith.subf %9, %34 : vector<128x1xf32>
    %37 = arith.cmpf olt, %35, %36 : vector<128x1xf32>
    %38 = vector.shape_cast %37 : vector<128x1xi1> to vector<128x1xi1>
    %39 = vector.broadcast %38 : vector<128x1xi1> to vector<128x128xi1>
    %40 = arith.select %39, %31, %6 : vector<128x128xi1>, vector<128x128xf32>
    %41 = arith.select %37, %34, %9 : vector<128x1xi1>, vector<128x1xf32>
    %42 = arith.truncf %25 : vector<128x128xf32> to vector<128x128xbf16>
    %cst_14 = arith.constant dense<0.000000e+00> : vector<128x128xf32>
    %43 = tpu.matmul %42, %0, %cst_14 {dimension_numbers = #tpu.dot_dimension_numbers<[1], [0], [0], [1], [0, 0, 1, 1], [], []>} : vector<128x128xbf16>, vector<128x128xbf16>, vector<128x128xf32> -> vector<128x128xf32>
    %44 = vector.broadcast %1 : vector<1x128xf32> to vector<128x128xf32>
    %45 = arith.addf %43, %44 : vector<128x128xf32>
    %46 = math.tanh %45 : vector<128x128xf32>
    %47 = arith.mulf %46, %46 : vector<128x128xf32>
    %cst_15 = arith.constant dense<0.000000e+00> : vector<128xf32>
    %48 = vector.multi_reduction <add>, %47, %cst_15 [1] : vector<128x128xf32> to vector<128xf32>
    %49 = vector.shape_cast %48 : vector<128xf32> to vector<128x1xf32>
    %50 = vector.extract_strided_slice %11 {offsets = [0, 1], sizes = [128, 1], strides = [1, 1]} : vector<256x4xf32> to vector<128x1xf32>
    %51 = arith.subf %26, %49 : vector<128x1xf32>
    %52 = arith.cmpf olt, %50, %51 : vector<128x1xf32>
    %53 = vector.shape_cast %52 : vector<128x1xi1> to vector<128x1xi1>
    %54 = vector.broadcast %53 : vector<128x1xi1> to vector<128x128xi1>
    %55 = arith.select %54, %46, %25 : vector<128x128xi1>, vector<128x128xf32>
    %56 = arith.select %52, %49, %26 : vector<128x1xi1>, vector<128x1xf32>
    %57 = arith.truncf %40 : vector<128x128xf32> to vector<128x128xbf16>
    %cst_16 = arith.constant dense<0.000000e+00> : vector<128x128xf32>
    %58 = tpu.matmul %57, %0, %cst_16 {dimension_numbers = #tpu.dot_dimension_numbers<[1], [0], [0], [1], [0, 0, 1, 1], [], []>} : vector<128x128xbf16>, vector<128x128xbf16>, vector<128x128xf32> -> vector<128x128xf32>
    %59 = vector.broadcast %1 : vector<1x128xf32> to vector<128x128xf32>
    %60 = arith.addf %58, %59 : vector<128x128xf32>
    %61 = math.tanh %60 : vector<128x128xf32>
    %62 = arith.mulf %61, %61 : vector<128x128xf32>
    %cst_17 = arith.constant dense<0.000000e+00> : vector<128xf32>
    %63 = vector.multi_reduction <add>, %62, %cst_17 [1] : vector<128x128xf32> to vector<128xf32>
    %64 = vector.shape_cast %63 : vector<128xf32> to vector<128x1xf32>
    %65 = vector.extract_strided_slice %11 {offsets = [128, 1], sizes = [128, 1], strides = [1, 1]} : vector<256x4xf32> to vector<128x1xf32>
    %66 = arith.subf %41, %64 : vector<128x1xf32>
    %67 = arith.cmpf olt, %65, %66 : vector<128x1xf32>
    %68 = vector.shape_cast %67 : vector<128x1xi1> to vector<128x1xi1>
    %69 = vector.broadcast %68 : vector<128x1xi1> to vector<128x128xi1>
    %70 = arith.select %69, %61, %40 : vector<128x128xi1>, vector<128x128xf32>
    %71 = arith.select %67, %64, %41 : vector<128x1xi1>, vector<128x1xf32>
    %72 = arith.truncf %55 : vector<128x128xf32> to vector<128x128xbf16>
    %cst_18 = arith.constant dense<0.000000e+00> : vector<128x128xf32>
    %73 = tpu.matmul %72, %0, %cst_18 {dimension_numbers = #tpu.dot_dimension_numbers<[1], [0], [0], [1], [0, 0, 1, 1], [], []>} : vector<128x128xbf16>, vector<128x128xbf16>, vector<128x128xf32> -> vector<128x128xf32>
    %74 = vector.broadcast %1 : vector<1x128xf32> to vector<128x128xf32>
    %75 = arith.addf %73, %74 : vector<128x128xf32>
    %76 = math.tanh %75 : vector<128x128xf32>
    %77 = arith.mulf %76, %76 : vector<128x128xf32>
    %cst_19 = arith.constant dense<0.000000e+00> : vector<128xf32>
    %78 = vector.multi_reduction <add>, %77, %cst_19 [1] : vector<128x128xf32> to vector<128xf32>
    %79 = vector.shape_cast %78 : vector<128xf32> to vector<128x1xf32>
    %80 = vector.extract_strided_slice %11 {offsets = [0, 2], sizes = [128, 1], strides = [1, 1]} : vector<256x4xf32> to vector<128x1xf32>
    %81 = arith.subf %56, %79 : vector<128x1xf32>
    %82 = arith.cmpf olt, %80, %81 : vector<128x1xf32>
    %83 = vector.shape_cast %82 : vector<128x1xi1> to vector<128x1xi1>
    %84 = vector.broadcast %83 : vector<128x1xi1> to vector<128x128xi1>
    %85 = arith.select %84, %76, %55 : vector<128x128xi1>, vector<128x128xf32>
    %86 = arith.select %82, %79, %56 : vector<128x1xi1>, vector<128x1xf32>
    %87 = arith.truncf %70 : vector<128x128xf32> to vector<128x128xbf16>
    %cst_20 = arith.constant dense<0.000000e+00> : vector<128x128xf32>
    %88 = tpu.matmul %87, %0, %cst_20 {dimension_numbers = #tpu.dot_dimension_numbers<[1], [0], [0], [1], [0, 0, 1, 1], [], []>} : vector<128x128xbf16>, vector<128x128xbf16>, vector<128x128xf32> -> vector<128x128xf32>
    %89 = vector.broadcast %1 : vector<1x128xf32> to vector<128x128xf32>
    %90 = arith.addf %88, %89 : vector<128x128xf32>
    %91 = math.tanh %90 : vector<128x128xf32>
    %92 = arith.mulf %91, %91 : vector<128x128xf32>
    %cst_21 = arith.constant dense<0.000000e+00> : vector<128xf32>
    %93 = vector.multi_reduction <add>, %92, %cst_21 [1] : vector<128x128xf32> to vector<128xf32>
    %94 = vector.shape_cast %93 : vector<128xf32> to vector<128x1xf32>
    %95 = vector.extract_strided_slice %11 {offsets = [128, 2], sizes = [128, 1], strides = [1, 1]} : vector<256x4xf32> to vector<128x1xf32>
    %96 = arith.subf %71, %94 : vector<128x1xf32>
    %97 = arith.cmpf olt, %95, %96 : vector<128x1xf32>
    %98 = vector.shape_cast %97 : vector<128x1xi1> to vector<128x1xi1>
    %99 = vector.broadcast %98 : vector<128x1xi1> to vector<128x128xi1>
    %100 = arith.select %99, %91, %70 : vector<128x128xi1>, vector<128x128xf32>
    %101 = arith.select %97, %94, %71 : vector<128x1xi1>, vector<128x1xf32>
    %102 = arith.truncf %85 : vector<128x128xf32> to vector<128x128xbf16>
    %cst_22 = arith.constant dense<0.000000e+00> : vector<128x128xf32>
    %103 = tpu.matmul %102, %0, %cst_22 {dimension_numbers = #tpu.dot_dimension_numbers<[1], [0], [0], [1], [0, 0, 1, 1], [], []>} : vector<128x128xbf16>, vector<128x128xbf16>, vector<128x128xf32> -> vector<128x128xf32>
    %104 = vector.broadcast %1 : vector<1x128xf32> to vector<128x128xf32>
    %105 = arith.addf %103, %104 : vector<128x128xf32>
    %106 = math.tanh %105 : vector<128x128xf32>
    %107 = arith.mulf %106, %106 : vector<128x128xf32>
    %cst_23 = arith.constant dense<0.000000e+00> : vector<128xf32>
    %108 = vector.multi_reduction <add>, %107, %cst_23 [1] : vector<128x128xf32> to vector<128xf32>
    %109 = vector.shape_cast %108 : vector<128xf32> to vector<128x1xf32>
    %110 = vector.extract_strided_slice %11 {offsets = [0, 3], sizes = [128, 1], strides = [1, 1]} : vector<256x4xf32> to vector<128x1xf32>
    %111 = arith.subf %86, %109 : vector<128x1xf32>
    %112 = arith.cmpf olt, %110, %111 : vector<128x1xf32>
    %113 = vector.shape_cast %112 : vector<128x1xi1> to vector<128x1xi1>
    %114 = vector.broadcast %113 : vector<128x1xi1> to vector<128x128xi1>
    %115 = arith.select %114, %106, %85 : vector<128x128xi1>, vector<128x128xf32>
    %116 = arith.truncf %100 : vector<128x128xf32> to vector<128x128xbf16>
    %cst_24 = arith.constant dense<0.000000e+00> : vector<128x128xf32>
    %117 = tpu.matmul %116, %0, %cst_24 {dimension_numbers = #tpu.dot_dimension_numbers<[1], [0], [0], [1], [0, 0, 1, 1], [], []>} : vector<128x128xbf16>, vector<128x128xbf16>, vector<128x128xf32> -> vector<128x128xf32>
    %118 = vector.broadcast %1 : vector<1x128xf32> to vector<128x128xf32>
    %119 = arith.addf %117, %118 : vector<128x128xf32>
    %120 = math.tanh %119 : vector<128x128xf32>
    %121 = arith.mulf %120, %120 : vector<128x128xf32>
    %cst_25 = arith.constant dense<0.000000e+00> : vector<128xf32>
    %122 = vector.multi_reduction <add>, %121, %cst_25 [1] : vector<128x128xf32> to vector<128xf32>
    %123 = vector.shape_cast %122 : vector<128xf32> to vector<128x1xf32>
    %124 = vector.extract_strided_slice %11 {offsets = [128, 3], sizes = [128, 1], strides = [1, 1]} : vector<256x4xf32> to vector<128x1xf32>
    %125 = arith.subf %101, %123 : vector<128x1xf32>
    %126 = arith.cmpf olt, %124, %125 : vector<128x1xf32>
    %127 = vector.shape_cast %126 : vector<128x1xi1> to vector<128x1xi1>
    %128 = vector.broadcast %127 : vector<128x1xi1> to vector<128x128xi1>
    %129 = arith.select %128, %120, %100 : vector<128x128xi1>, vector<128x128xf32>
    %c0_26 = arith.constant 0 : index
    %c0_27 = arith.constant 0 : index
    %130 = vector.load %arg5[%c0_26, %c0_27] : memref<256x128xf32, #tpu.memory_space<vmem>>, vector<128x128xf32>
    tpu.vector_store %arg5[%c0_26, %c0_27], %115 {strides = array<i32>} : memref<256x128xf32, #tpu.memory_space<vmem>>, vector<128x128xf32>,
    %c128_28 = arith.constant 128 : index
    %c0_29 = arith.constant 0 : index
    %131 = vector.load %arg5[%c128_28, %c0_29] : memref<256x128xf32, #tpu.memory_space<vmem>>, vector<128x128xf32>
    tpu.vector_store %arg5[%c128_28, %c0_29], %129 {strides = array<i32>} : memref<256x128xf32, #tpu.memory_space<vmem>>, vector<128x128xf32>,
    return
  }
  func.func @transform_0(%arg0: i32) -> (i32, i32) {
    %c0_i32 = arith.constant 0 : i32
    %c0_i32_0 = arith.constant 0 : i32
    return %arg0, %c0_i32 : i32, i32
  }
  func.func @transform_1(%arg0: i32) -> (i32, i32) {
    %c0_i32 = arith.constant 0 : i32
    %c0_i32_0 = arith.constant 0 : i32
    %c0_i32_1 = arith.constant 0 : i32
    return %c0_i32, %c0_i32_0 : i32, i32
  }
  func.func @transform_2(%arg0: i32) -> (i32, i32) {
    %c0_i32 = arith.constant 0 : i32
    %c0_i32_0 = arith.constant 0 : i32
    %c0_i32_1 = arith.constant 0 : i32
    return %c0_i32, %c0_i32_0 : i32, i32
  }
  func.func @transform_3(%arg0: i32) -> (i32, i32, i32) {
    %c0_i32 = arith.constant 0 : i32
    %c0_i32_0 = arith.constant 0 : i32
    %c0_i32_1 = arith.constant 0 : i32
    return %c0_i32, %arg0, %c0_i32_0 : i32, i32, i32
  }
  func.func @transform_4(%arg0: i32) -> (i32, i32) {
    %c0_i32 = arith.constant 0 : i32
    %c0_i32_0 = arith.constant 0 : i32
    return %arg0, %c0_i32 : i32, i32
  }
}

</mosaic_0001>

<bundles_post_ra>
// kernel: tpu_custom_call.1
= control target key start
LH: loop header
LB: loop body
LE: loop exit
PB: predicated region body
PF: predicated region fallthrough
CT: control target
= control target key end

     0   :  { %9 = vsyncpa [#allocation3], 0  ;;  %s8618_s0 = inlined_call_operand.vmem [shape: f32[512,128], index: 0, kind: input, shape index: {}]   ;;  %s8619_s1 = inlined_call_operand.hbm [shape: bf16[128,128], index: 1, kind: input, shape index: {}]   ;;  %s8620_s2 = inlined_call_operand.vmem [shape: f32[1,128], index: 2, kind: input, shape index: {}]   ;;  %s8621_s3 = inlined_call_operand.vmem [shape: f32[1,512,4], index: 3, kind: input, shape index: {}]   ;;  %s8622_s4 = inlined_call_operand.hbm [shape: f32[512,128], index: 4, kind: output, shape index: {}]  }
   0x1   :  { %10 = vsyncpa [#allocation4], 0 }
   0x2   :  { %12 = vsyncpa [#allocation4 + $0x1], 0  ;;  %s4728_s15 = smov 0   ;;  %s4730_s16 = smov 0  }
   0x3   :  { %s4732_s17 = smov 0   ;;  %s4734_s18 = smov 0  }
   0x4 LB: > { %s4749_s19 = sadd.s32 4294967295, %s4690_s18   ;;  %s3712_s20 = sadd.s32 4294967294, %s4690_s18   ;;  %s4690_s18 = sphi %s4734_s18, %s10046_s18   ;;  %s4686_s17 = sphi %s4732_s17, %s10045_s17   ;;  %s4682_s16 = sphi %s4730_s16, %s10044_s16   ;;  %s4678_s15 = sphi %s4728_s15, %s10043_s15  }
   0x5   : > { %s4753_s21 = sadd.s32 1, %s4690_s18   ;;  %s119_s22 = sadd.s32 1, %s4686_s17 }
   0x6   : > { %s116_s23 = ssub.s32 %s4690_s18, %s4753_s21  ;;  %p129_p0 = scmp.ne.s32.totalorder %s4686_s17, %s4682_s16 }
   0x7   : > { %p117_p1 = scmp.eq.s32.totalorder %s116_s23, 0  ;;  %p130_p2 = scmp.eq.s32.totalorder %s4749_s19, 1 }
   0x8   : > { %p135_p3 = scmp.ne.s32.totalorder %s4682_s16, %s4678_s15  ;;  %p136_p4 = scmp.eq.s32.totalorder %s3712_s20, 1 }
   0x9   : > { %s4764_s24 = scalar_select %p117_p1, %s4686_s17, %s119_s22  }
   0xa   : > { %p4766_p5 = por %p130_p2, %p129_p0  ;;  %p4770_p6 = por %p136_p4, %p135_p3 }
   0xb   : > { %p3713_p7 = scmp.ge.s32.totalorder %s4690_s18, 1  ;;  %p143_p8 = scmp.lt.s32.totalorder %s4690_s18, 3 }
   0xc   : > { %s9098_s26 = scalar_select %p4770_p6, 1, 0 }
   0xd   : > { %p4136_p9 = scmp.eq.s32.totalorder %s4749_s19, 0  ;;  %p4777_p10 = pnand %p3713_p7, %p143_p8 }
   0xe   : > { %s4692_s28 = smov [#allocation2]  }
   0xf   : > { %s155_s29 = sshll.u32 %s4692_s28, 4  ;;  %p4128_p11 = pneg %p4777_p10  ;;  %s156_s29 = int_to_ptr.vmem [resolvable:$true] %s155_s29 }
  0x10   : > { %s4611_s30 = scalar_lea.vmem %s156_s29, 1024  ;;  %p4619_p3 = scmp.lt.s32.totalorder %s156_s29, %s156_s29 }
  0x11   : > { %p4129_p12 = pnand %p4136_p9, %p4128_p11  ;;  %p4612_p0 = scmp.ne.s32.totalorder %s156_s29, %s4611_s30 }
  0x12   : > { %p4620_p4 = scmp.lt.s32.totalorder %s4611_s30, %s4611_s30 }
  0x13   : > { %p4602_p13 = pneg %p4129_p12 }
  0x14   : > { %p4621_p6 = por %p4620_p4, %p4619_p3 }
  0x15   : > { %p4614_p1 = pnand %p4612_p0, %p4602_p13 }
  0x17   : > { %p4615_p2 = pneg %p4614_p1 }
  0x19   : > { %p4622_p7 = pnand %p4621_p6, %p4615_p2 }
  0x1b   : > { %4625 = shalt.err (!%p4622_p7)
}
  0x1c   : > { %s4693_s5 = smov 64   ;;  %s4694_s6 = smov 4  }
  0x1d   : > { %4131 = dma.hbm_to_vmem [thread:$0]  (!%p4129_p12), %s8619_s1, 1024, %s156_s29, [#allocation3], %s4693_s5, %s4693_s5, %s4694_s6  }
  0x1e   : > { %192 = sbr.rel (%p4777_p10) target bundleno = 2490 (0x9ba), region = 36 }
  0x23   : > { %4669 = dma.done.wait (%p4136_p9), [#allocation3], 1024  }
  0x24   : > { %4671 = vsyncadd (%p4136_p9), [#allocation3], 4294966272  ;;  %s3719_s9 = sshll.u32 %s4749_s19, 5  ;;  %v4797_v0 = vld [vmem:[#allocation2 + $0x38] sm:$0xff]   ;;  %v4799_v1 = vld [vmem:[#allocation2 + $0x30] sm:$0xff]   ;;  %s4697_s30 = smov 1  }
  0x25   : > { %p224_p8 = scmp.lt.s32.totalorder %s3719_s9, 63  ;;  %3866 = vmatprep.subr.bf16.mxu0 %v4797_v0  ;;  %3898 = vmatprep.subr.bf16.mxu1 %v4797_v0  ;;  %v4808_v2 = vld [vmem:[#allocation2 + $0x28] sm:$0xff]   ;;  %v4819_v3 = vld [vmem:[#allocation2 + $0x20] sm:$0xff]   ;;  %v4831_v12 = vld [vmem:[#allocation2 + $0x18] sm:$0xff]   ;;  %s3737_s12 = sshll.u32 %s4749_s19, 12 }
  0x26   : > { %3867 = vmatpush3.bf16.msra.mxu0 %v4797_v0  ;;  %3899 = vmatpush3.bf16.msra.mxu1 %v4797_v0  ;;  %v4837_v15 = vld [vmem:[#allocation2 + $0x10] sm:$0xff]   ;;  %v4845_v20 = vld [vmem:[#allocation2 + $0x8] sm:$0xff]   ;;  %v4853_v25 = vld [vmem:[#allocation2] sm:$0xff]   ;;  %s8569_s22 = scalar_lea.hbm %s8622_s4, %s3737_s12 }
  0x27   : > { %s10048_s9 = smov (!%p224_p8, %s3719_s9), 63  ;;  %3868 = vmatprep.subr.bf16.mxu0 %v4799_v1  ;;  %3900 = vmatprep.subr.bf16.mxu1 %v4799_v1 }
  0x28   : > { %s3720_s10 = sshll.u32 %s10048_s9, 3  ;;  %s220_s9 = sand.u32 1, %s4682_s16  }
  0x29   : > { %s4815_s13 = scalar_lea.vmem %s8618_s0, %s3720_s10  ;;  %s5168_s27 = scalar_lea.vmem %s8621_s3, %s3720_s10 }
  0x2a   : > { %3869 = vmatpush3.bf16.msra.mxu0 %v4799_v1  ;;  %3901 = vmatpush3.bf16.msra.mxu1 %v4799_v1  ;;  %v254_v4 = vld [vmem:[%s4815_s13] sm:$0xff]  ;;  %v255_v5 = vld [vmem:[%s4815_s13 + $0x8] sm:$0xff]  ;;  %v256_v16 = vld [vmem:[%s4815_s13 + $0x10] sm:$0xff]  ;;  %s3718_s10 = sshll.u32 %s220_s9, 8  ;;  %s8578_s19 = scalar_lea.sflag [#allocation4], %s220_s9 }
  0x2b   : > { %3870 = vmatprep.subr.bf16.mxu0 %v4808_v2  ;;  %3902 = vmatprep.subr.bf16.mxu1 %v4808_v2  ;;  %v318_v6 = vld [vmem:[%s4815_s13 + $0x80] sm:$0xff]  ;;  %v414_v7 = vpack.c.bf16 %v255_v5, %v254_v4  ;;  %v319_v8 = vld [vmem:[%s4815_s13 + $0x88] sm:$0xff]  ;;  %v270_v10 = vmul.f32 %v254_v4, %v254_v4  ;;  %v271_v13 = vmul.f32 %v255_v5, %v255_v5  ;;  %v257_v17 = vld [vmem:[%s4815_s13 + $0x18] sm:$0xff]  ;;  %s8471_s11 = scalar_lea.vmem [#allocation5], %s3718_s10 }
  0x2c   : > { %v781_v9 = vpack.c.bf16 %v319_v8, %v318_v6  ;;  %v334_v11 = vmul.f32 %v318_v6, %v318_v6  ;;  %v335_v14 = vmul.f32 %v319_v8, %v319_v8  ;;  %v272_v18 = vmul.f32 %v256_v16, %v256_v16  ;;  %v320_v21 = vld [vmem:[%s4815_s13 + $0x90] sm:$0xff]  ;;  %v321_v22 = vld [vmem:[%s4815_s13 + $0x98] sm:$0xff]  ;;  %v258_v26 = vld [vmem:[%s4815_s13 + $0x20] sm:$0xff] }
  0x2d   : > { %3882 = vmatprep.mubr.bf16.mxu0 %v414_v7  ;;  %286 = vadd.xlane.f32.xlu0 %v270_v10  ;;  %v273_v19 = vmul.f32 %v257_v17, %v257_v17  ;;  %v336_v23 = vmul.f32 %v320_v21, %v320_v21  ;;  %v337_v24 = vmul.f32 %v321_v22, %v321_v22  ;;  %v259_v27 = vld [vmem:[%s4815_s13 + $0x28] sm:$0xff]  ;;  %v322_v30 = vld [vmem:[%s4815_s13 + $0xa0] sm:$0xff]  ;;  %v260_v38 = vld [vmem:[%s4815_s13 + $0x30] sm:$0xff] }
  0x2e   : > { %3871 = vmatpush3.bf16.msra.mxu0 %v4808_v2  ;;  %3903 = vmatpush3.bf16.msra.mxu1 %v4808_v2  ;;  %v274_v28 = vmul.f32 %v258_v26, %v258_v26  ;;  %v275_v29 = vmul.f32 %v259_v27, %v259_v27  ;;  %v323_v31 = vld [vmem:[%s4815_s13 + $0xa8] sm:$0xff]  ;;  %v415_v32 = vpack.c.bf16 %v257_v17, %v256_v16  ;;  %v261_v39 = vld [vmem:[%s4815_s13 + $0x38] sm:$0xff]  ;;  %v324_v40 = vld [vmem:[%s4815_s13 + $0xb0] sm:$0xff] }
  0x2f   : > { %3872 = vmatprep.subr.bf16.mxu0 %v4819_v3  ;;  %3904 = vmatprep.subr.bf16.mxu1 %v4819_v3  ;;  %v782_v33 = vpack.c.bf16 %v321_v22, %v320_v21  ;;  %v416_v34 = vpack.c.bf16 %v259_v27, %v258_v26  ;;  %v783_v35 = vpack.c.bf16 %v323_v31, %v322_v30  ;;  %v325_v41 = vld [vmem:[%s4815_s13 + $0xb8] sm:$0xff]  ;;  %v262_v42 = vld [vmem:[%s4815_s13 + $0x40] sm:$0xff]  ;;  %v263_v43 = vld [vmem:[%s4815_s13 + $0x48] sm:$0xff] }
  0x30   : > { %3914 = vmatprep.mubr.bf16.mxu1 %v781_v9  ;;  %350 = vadd.xlane.f32.xlu1 %v334_v11  ;;  %v338_v36 = vmul.f32 %v322_v30, %v322_v30  ;;  %v339_v37 = vmul.f32 %v323_v31, %v323_v31  ;;  %v326_v44 = vld [vmem:[%s4815_s13 + $0xc0] sm:$0xff]  ;;  %v327_v45 = vld [vmem:[%s4815_s13 + $0xc8] sm:$0xff]  ;;  %v276_v46 = vmul.f32 %v260_v38, %v260_v38  ;;  %v264_v54 = vld [vmem:[%s4815_s13 + $0x50] sm:$0xff] }
  0x31   : > { %288 = vadd.xlane.f32.xlu0 %v271_v13  ;;  %v277_v47 = vmul.f32 %v261_v39, %v261_v39  ;;  %v417_v48 = vpack.c.bf16 %v261_v39, %v260_v38  ;;  %v784_v49 = vpack.c.bf16 %v325_v41, %v324_v40  ;;  %v418_v50 = vpack.c.bf16 %v263_v43, %v262_v42  ;;  %v265_v55 = vld [vmem:[%s4815_s13 + $0x58] sm:$0xff]  ;;  %v328_v56 = vld [vmem:[%s4815_s13 + $0xd0] sm:$0xff]  ;;  %v266_v58 = vld [vmem:[%s4815_s13 + $0x60] sm:$0xff] }
  0x32   : > { %3873 = vmatpush3.bf16.msra.mxu0 %v4819_v3  ;;  %3905 = vmatpush3.bf16.msra.mxu1 %v4819_v3  ;;  %v785_v51 = vpack.c.bf16 %v327_v45, %v326_v44  ;;  %v340_v52 = vmul.f32 %v324_v40, %v324_v40  ;;  %v341_v53 = vmul.f32 %v325_v41, %v325_v41  ;;  %v329_v57 = vld [vmem:[%s4815_s13 + $0xd8] sm:$0xff]  ;;  %v4887_v59 = vld [vmem:[%s4815_s13 + $0x68] sm:$0xff]  ;;  %v4890_v60 = vld [vmem:[%s4815_s13 + $0xe0] sm:$0xff] }
  0x33   : > { %3874 = vmatprep.subr.bf16.mxu0 %v4831_v12  ;;  %3906 = vmatprep.subr.bf16.mxu1 %v4831_v12  ;;  %v4893_v61 = vld [vmem:[%s4815_s13 + $0xe8] sm:$0xff]  ;;  %v278_v62 = vmul.f32 %v262_v42, %v262_v42  ;;  %v279_v63 = vmul.f32 %v263_v43, %v263_v43  ;;  %v786_v4 = vpack.c.bf16 %v329_v57, %v328_v56  ;;  %v268_v9 = vld [vmem:[%s4815_s13 + $0x70] sm:$0xff]  ;;  %v269_v10 = vld [vmem:[%s4815_s13 + $0x78] sm:$0xff] }
  0x34   : > { %352 = vadd.xlane.f32.xlu1 %v335_v14  ;;  %v420_v5 = vpack.c.bf16 %v4887_v59, %v266_v58  ;;  %v787_v6 = vpack.c.bf16 %v4893_v61, %v4890_v60  ;;  %v342_v7 = vmul.f32 %v326_v44, %v326_v44  ;;  %v343_v8 = vmul.f32 %v327_v45, %v327_v45  ;;  %v333_v11 = vld [vmem:[%s4815_s13 + $0xf8] sm:$0xff] }
  0x35   : > { %290 = vadd.xlane.f32.xlu0 %v272_v18  ;;  %v280_v13 = vmul.f32 %v264_v54, %v264_v54  ;;  %v281_v14 = vmul.f32 %v265_v55, %v265_v55  ;;  %v421_v16 = vpack.c.bf16 %v269_v10, %v268_v9  ;;  %v344_v18 = vmul.f32 %v328_v56, %v328_v56 }
  0x36   : > { %3875 = vmatpush3.bf16.msra.mxu0 %v4831_v12  ;;  %3907 = vmatpush3.bf16.msra.mxu1 %v4831_v12  ;;  %v284_v21 = vmul.f32 %v268_v9, %v268_v9  ;;  %v285_v22 = vmul.f32 %v269_v10, %v269_v10 }
  0x37   : > { %3876 = vmatprep.subr.bf16.mxu0 %v4837_v15  ;;  %3908 = vmatprep.subr.bf16.mxu1 %v4837_v15 }
  0x38   : > { %292 = vadd.xlane.f32.xlu1 %v273_v19  ;;  %v346_v19 = vmul.f32 %v4890_v60, %v4890_v60 }
  0x39   : > { %354 = vadd.xlane.f32.xlu0 %v336_v23  ;;  %v349_v23 = vmul.f32 %v333_v11, %v333_v11 }
  0x3a   : > { %3877 = vmatpush3.bf16.msra.mxu0 %v4837_v15  ;;  %3909 = vmatpush3.bf16.msra.mxu1 %v4837_v15 }
  0x3b   : > { %3878 = vmatprep.subr.bf16.mxu0 %v4845_v20  ;;  %3910 = vmatprep.subr.bf16.mxu1 %v4845_v20 }
  0x3c   : > { %356 = vadd.xlane.f32.xlu1 %v337_v24  ;;  %v4937_v24 = vld [vmem:[%s8620_s2] ss:$0 sm:$0xff] }
  0x3d   : > { %294 = vadd.xlane.f32.xlu0 %v274_v28 }
  0x3e   : > { %3879 = vmatpush3.bf16.msra.mxu0 %v4845_v20  ;;  %3911 = vmatpush3.bf16.msra.mxu1 %v4845_v20 }
  0x3f   : > { %3880 = vmatprep.subr.bf16.mxu0 %v4853_v25  ;;  %3912 = vmatprep.subr.bf16.mxu1 %v4853_v25 }
  0x40   : > { %296 = vadd.xlane.f32.xlu1 %v275_v29 }
  0x41   : > { %358 = vadd.xlane.f32.xlu0 %v338_v36 }
  0x42   : > { %3881 = vmatpush3.bf16.msra.mxu0 %v4853_v25  ;;  %3913 = vmatpush3.bf16.msra.mxu1 %v4853_v25 }
  0x43   : > { %3930 = vmatprep.subr.bf16.mxu0 %v4797_v0  ;;  %3962 = vmatprep.subr.bf16.mxu1 %v4797_v0 }
  0x44   : > { %360 = vadd.xlane.f32.xlu1 %v339_v37 }
  0x45   : > { %3883 = vmatmul.mubr.bf16.vlgmr.msra.gmra.mxu0 %v415_v32  ;;  %3915 = vmatmul.mubr.bf16.vlgmr.msra.gmra.mxu1 %v782_v33 }
  0x46   : > { %3886 = vmatprep.mubr.bf16.mxu0 %v416_v34  ;;  %3918 = vmatprep.mubr.bf16.mxu1 %v783_v35 }
  0x47   : > { %3931 = vmatpush3.bf16.msra.mxu0 %v4797_v0  ;;  %3963 = vmatpush3.bf16.msra.mxu1 %v4797_v0 }
  0x48   : > { %3932 = vmatprep.subr.bf16.mxu0 %v4799_v1  ;;  %3964 = vmatprep.subr.bf16.mxu1 %v4799_v1 }
  0x49   : > { %298 = vadd.xlane.f32.xlu0 %v276_v46  ;;  %300 = vadd.xlane.f32.xlu1 %v277_v47 }
  0x4b   : > { %3933 = vmatpush3.bf16.msra.mxu0 %v4799_v1  ;;  %3965 = vmatpush3.bf16.msra.mxu1 %v4799_v1  ;;  %v419_v1 = vpack.c.bf16 %v265_v55, %v264_v54 }
  0x4c   : > { %3934 = vmatprep.subr.bf16.mxu0 %v4808_v2  ;;  %3966 = vmatprep.subr.bf16.mxu1 %v4808_v2 }
  0x4d   : > { %3887 = vmatmul.mubr.bf16.gmra.mxu0 %v417_v48  ;;  %3919 = vmatmul.mubr.bf16.gmra.mxu1 %v784_v49 }
  0x4e   : > { %3890 = vmatprep.mubr.bf16.mxu0 %v418_v50  ;;  %3922 = vmatprep.mubr.bf16.mxu1 %v785_v51 }
  0x4f   : > { %362 = vadd.xlane.f32.xlu0 %v340_v52  ;;  %364 = vadd.xlane.f32.xlu1 %v341_v53 }
  0x50   : > { %3935 = vmatpush3.bf16.msra.mxu0 %v4808_v2  ;;  %3967 = vmatpush3.bf16.msra.mxu1 %v4808_v2  ;;  %v332_v2 = vld [vmem:[%s4815_s13 + $0xf0] sm:$0xff] }
  0x51   : > { %3936 = vmatprep.subr.bf16.mxu0 %v4819_v3  ;;  %3968 = vmatprep.subr.bf16.mxu1 %v4819_v3  ;;  %v788_v17 = vpack.c.bf16 %v333_v11, %v332_v2 }
  0x53   : > { %302 = vadd.xlane.f32.xlu0 %v278_v62  ;;  %304 = vadd.xlane.f32.xlu1 %v279_v63 }
  0x54   : > { %3937 = vmatpush3.bf16.msra.mxu0 %v4819_v3  ;;  %3969 = vmatpush3.bf16.msra.mxu1 %v4819_v3  ;;  %v345_v3 = vmul.f32 %v329_v57, %v329_v57 }
  0x55   : > { %3891 = vmatmul.mubr.bf16.gmra.mxu0 %v419_v1  ;;  %3923 = vmatmul.mubr.bf16.gmra.mxu1 %v786_v4 }
  0x56   : > { %3894 = vmatprep.mubr.bf16.mxu0 %v420_v5  ;;  %3926 = vmatprep.mubr.bf16.mxu1 %v787_v6 }
  0x57   : > { %366 = vadd.xlane.f32.xlu0 %v342_v7  ;;  %368 = vadd.xlane.f32.xlu1 %v343_v8 }
  0x58   : > { %3938 = vmatprep.subr.bf16.mxu0 %v4831_v12  ;;  %3970 = vmatprep.subr.bf16.mxu1 %v4831_v12 }
  0x59   : > { %3939 = vmatpush3.bf16.msra.mxu0 %v4831_v12  ;;  %3971 = vmatpush3.bf16.msra.mxu1 %v4831_v12  ;;  %v282_v12 = vmul.f32 %v266_v58, %v266_v58 }
  0x5a   : > { %3940 = vmatprep.subr.bf16.mxu0 %v4837_v15  ;;  %3972 = vmatprep.subr.bf16.mxu1 %v4837_v15 }
  0x5b   : > { %306 = vadd.xlane.f32.xlu0 %v280_v13  ;;  %308 = vadd.xlane.f32.xlu1 %v281_v14 }
  0x5d   : > { %3895 = vmatmul.mubr.bf16.gmra.mxu0 %v421_v16  ;;  %3927 = vmatmul.mubr.bf16.gmra.mxu1 %v788_v17 }
  0x5e   : > { %3941 = vmatpush3.bf16.msra.mxu0 %v4837_v15  ;;  %3973 = vmatpush3.bf16.msra.mxu1 %v4837_v15  ;;  %v283_v15 = vmul.f32 %v4887_v59, %v4887_v59 }
  0x5f   : > { %370 = vadd.xlane.f32.xlu0 %v344_v18  ;;  %3942 = vmatprep.subr.bf16.mxu0 %v4845_v20 }
  0x60   : > { %3974 = vmatprep.subr.bf16.mxu1 %v4845_v20  ;;  %372 = vadd.xlane.f32.xlu1 %v345_v3 }
  0x62   : > { %3943 = vmatpush3.bf16.msra.mxu0 %v4845_v20  ;;  %3975 = vmatpush3.bf16.msra.mxu1 %v4845_v20  ;;  %v347_v20 = vmul.f32 %v4893_v61, %v4893_v61 }
  0x63   : > { %3944 = vmatprep.subr.bf16.mxu0 %v4853_v25  ;;  %3976 = vmatprep.subr.bf16.mxu1 %v4853_v25 }
  0x64   : > { %310 = vadd.xlane.f32.xlu0 %v282_v12  ;;  %312 = vadd.xlane.f32.xlu1 %v283_v15 }
  0x66   : > { %3945 = vmatpush3.bf16.msra.mxu0 %v4853_v25  ;;  %3977 = vmatpush3.bf16.msra.mxu1 %v4853_v25 }
  0x67   : > { %3994 = vmatprep.subr.bf16.mxu0 %v4797_v0  ;;  %4026 = vmatprep.subr.bf16.mxu1 %v4797_v0  ;;  %v348_v0 = vmul.f32 %v332_v2, %v332_v2 }
  0x68   : > { %374 = vadd.xlane.f32.xlu0 %v346_v19  ;;  %376 = vadd.xlane.f32.xlu1 %v347_v20 }
  0x6c   : > { %314 = vadd.xlane.f32.xlu0 %v284_v21  ;;  %316 = vadd.xlane.f32.xlu1 %v285_v22  ;;  %v8623_v22 = vmov 0  }
  0x6d   : > { %4181 = vset.pattern.permute.xlu1 %v8623_v22  ;;  %4182 = vset.pattern.permute.xlu0 %v8623_v22 }
  0x70   : > { %378 = vadd.xlane.f32.xlu0 %v348_v0  ;;  %380 = vadd.xlane.f32.xlu1 %v349_v23 }
 0x105   : > { %v3884_v25 = vpop.f32.mrf.mxu0  ;;  %v3916_v26 = vpop.f32.mrf.mxu1 }
 0x106   : > { %v519_v27 = vadd.f32 %v3884_v25, %v4937_v24  ;;  %v832_v28 = vadd.f32 %v3916_v26, %v4937_v24 }
 0x107   : > { %v510_v29 = vpop.f32.mrf.mxu0  ;;  %v823_v30 = vpop.f32.mrf.mxu1 }
 0x108   : > { %4197 = vtanh.f32 %v519_v27  ;;  %v511_v31 = vadd.f32 %v4937_v24, %v510_v29  ;;  %v824_v38 = vadd.f32 %v4937_v24, %v823_v30 }
 0x109   : > { %4199 = vtanh.f32 %v832_v28  ;;  %v3885_v32 = vpop.f32.mrf.mxu0  ;;  %v3917_v33 = vpop.f32.mrf.mxu1 }
 0x10a   : > { %v522_v34 = vadd.f32 %v3885_v32, %v4937_v24  ;;  %v835_v35 = vadd.f32 %v3917_v33, %v4937_v24 }
 0x10b   : > { %v513_v36 = vpop.f32.mrf.mxu0  ;;  %v826_v37 = vpop.f32.mrf.mxu1 }
 0x10c   : > { %4201 = vtanh.f32 %v522_v34  ;;  %v514_v41 = vadd.f32 %v4937_v24, %v513_v36  ;;  %v827_v46 = vadd.f32 %v4937_v24, %v826_v37 }
 0x10d   : > { %4203 = vtanh.f32 %v511_v31  ;;  %v3888_v39 = vpop.f32.mrf.mxu0  ;;  %v3920_v40 = vpop.f32.mrf.mxu1 }
 0x10e   : > { %4205 = vtanh.f32 %v835_v35  ;;  %v535_v43 = vadd.f32 %v3888_v39, %v4937_v24  ;;  %v848_v47 = vadd.f32 %v3920_v40, %v4937_v24 }
 0x10f   : > { %v526_v42 = vpop.f32.mrf.mxu0  ;;  %4207 = vtanh.f32 %v824_v38  ;;  %v839_v45 = vpop.f32.mrf.mxu1 }
 0x110   : > { %4209 = vtanh.f32 %v514_v41  ;;  %v527_v53 = vadd.f32 %v4937_v24, %v526_v42  ;;  %v840_v62 = vadd.f32 %v4937_v24, %v839_v45 }
 0x111   : > { %v3889_v44 = vpop.f32.mrf.mxu0  ;;  %4211 = vtanh.f32 %v535_v43  ;;  %v3921_v50 = vpop.f32.mrf.mxu1 }
 0x112   : > { %v538_v48 = vadd.f32 %v3889_v44, %v4937_v24  ;;  %4213 = vtanh.f32 %v827_v46  ;;  %v851_v56 = vadd.f32 %v3921_v50, %v4937_v24 }
 0x113   : > { %4215 = vtanh.f32 %v848_v47  ;;  %v529_v54 = vpop.f32.mrf.mxu0  ;;  %v842_v63 = vpop.f32.mrf.mxu1 }
 0x114   : > { %4217 = vtanh.f32 %v538_v48  ;;  %v530_v1 = vadd.f32 %v4937_v24, %v529_v54  ;;  %v843_v10 = vadd.f32 %v4937_v24, %v842_v63 }
 0x115   : > { %v4950_v49 = vpop.eup %4197  ;;  %v3892_v58 = vpop.f32.mrf.mxu0  ;;  %4219 = vtanh.f32 %v527_v53 }
 0x116   : > { %v4952_v51 = vpop.eup %4199  ;;  %v591_v52 = vmul.f32 %v4950_v49, %v4950_v49  ;;  %4221 = vtanh.f32 %v851_v56  ;;  %v3924_v5 = vpop.f32.mrf.mxu1  ;;  %v551_v2 = vadd.f32 %v3892_v58, %v4937_v24 }
 0x117   : > { %v904_v55 = vmul.f32 %v4952_v51, %v4952_v51  ;;  %v542_v4 = vpop.f32.mrf.mxu0  ;;  %4223 = vtanh.f32 %v840_v62  ;;  %v864_v3 = vadd.f32 %v3924_v5, %v4937_v24 }
 0x118   : > { %609 = vadd.xlane.f32.xlu0 %v591_v52  ;;  %4225 = vtanh.f32 %v530_v1  ;;  %v855_v14 = vpop.f32.mrf.mxu1  ;;  %v543_v23 = vadd.f32 %v4937_v24, %v542_v4 }
 0x119   : > { %v4960_v57 = vpop.eup %4201  ;;  %v3893_v13 = vpop.f32.mrf.mxu0  ;;  %4227 = vtanh.f32 %v843_v10  ;;  %v856_v32 = vadd.f32 %v4937_v24, %v855_v14 }
 0x11a   : > { %v4962_v59 = vpop.eup %4203  ;;  %v592_v60 = vmul.f32 %v4960_v57, %v4960_v57  ;;  %4229 = vtanh.f32 %v551_v2  ;;  %v554_v19 = vadd.f32 %v3893_v13, %v4937_v24  ;;  %v3925_v21 = vpop.f32.mrf.mxu1 }
 0x11b   : > { %v4966_v61 = vpop.eup %4205  ;;  %v589_v8 = vmul.f32 %v4962_v59, %v4962_v59  ;;  %4231 = vtanh.f32 %v864_v3  ;;  %v545_v25 = vpop.f32.mrf.mxu0  ;;  %v867_v29 = vadd.f32 %v3925_v21, %v4937_v24 }
 0x11c   : > { %922 = vadd.xlane.f32.xlu0 %v904_v55  ;;  %611 = vadd.xlane.f32.xlu1 %v592_v60  ;;  %v4970_v6 = vpop.eup %4207  ;;  %v905_v7 = vmul.f32 %v4966_v61, %v4966_v61  ;;  %4233 = vtanh.f32 %v554_v19  ;;  %v858_v33 = vpop.f32.mrf.mxu1  ;;  %v546_v37 = vadd.f32 %v4937_v24, %v545_v25 }
 0x11d   : > { %v4976_v9 = vpop.eup %4209  ;;  %v902_v17 = vmul.f32 %v4970_v6, %v4970_v6  ;;  %v3896_v31 = vpop.f32.mrf.mxu0  ;;  %4235 = vtanh.f32 %v543_v23  ;;  %v859_v41 = vadd.f32 %v4937_v24, %v858_v33 }
 0x11e   : > { %v4980_v11 = vpop.eup %4211  ;;  %v590_v16 = vmul.f32 %v4976_v9, %v4976_v9  ;;  %4237 = vtanh.f32 %v867_v29  ;;  %v3928_v40 = vpop.f32.mrf.mxu1  ;;  %v567_v45 = vadd.f32 %v3896_v31, %v4937_v24 }
 0x11f   : > { %v4986_v18 = vpop.eup %4213  ;;  %v595_v15 = vmul.f32 %v4980_v11, %v4980_v11  ;;  %v558_v39 = vpop.f32.mrf.mxu0  ;;  %4239 = vtanh.f32 %v856_v32  ;;  %v880_v50 = vadd.f32 %v3928_v40, %v4937_v24 }
 0x120   : > { %924 = vadd.xlane.f32.xlu1 %v905_v7  ;;  %605 = vadd.xlane.f32.xlu0 %v589_v8  ;;  %v4989_v12 = vpop.eup %4215  ;;  %v903_v0 = vmul.f32 %v4986_v18, %v4986_v18  ;;  %4241 = vtanh.f32 %v546_v37  ;;  %v871_v48 = vpop.f32.mrf.mxu1  ;;  %v559_v60 = vadd.f32 %v4937_v24, %v558_v39 }
 0x121   : > { %v4994_v20 = vpop.eup %4217  ;;  %v908_v28 = vmul.f32 %v4989_v12, %v4989_v12  ;;  %v3897_v47 = vpop.f32.mrf.mxu0  ;;  %4243 = vtanh.f32 %v859_v41  ;;  %v872_v8 = vadd.f32 %v4937_v24, %v871_v48 }
 0x122   : > { %v5001_v26 = vpop.eup %4219  ;;  %v596_v27 = vmul.f32 %v4994_v20, %v4994_v20  ;;  %4245 = vtanh.f32 %v567_v45  ;;  %v570_v55 = vadd.f32 %v3897_v47, %v4937_v24  ;;  %v3929_v58 = vpop.f32.mrf.mxu1 }
 0x123   : > { %v5008_v30 = vpop.eup %4221  ;;  %v593_v36 = vmul.f32 %v5001_v26, %v5001_v26  ;;  %4247 = vtanh.f32 %v880_v50  ;;  %v883_v4 = vadd.f32 %v3929_v58, %v4937_v24  ;;  %v561_v7 = vpop.f32.mrf.mxu0 }
 0x124   : > { %607 = vadd.xlane.f32.xlu1 %v590_v16  ;;  %918 = vadd.xlane.f32.xlu0 %v902_v17  ;;  %v5011_v34 = vpop.eup %4223  ;;  %v909_v35 = vmul.f32 %v5008_v30, %v5008_v30  ;;  %4249 = vtanh.f32 %v570_v55  ;;  %v562_v14 = vadd.f32 %v4937_v24, %v561_v7  ;;  %v874_v17 = vpop.f32.mrf.mxu1 }
 0x125   : > { %v5018_v38 = vpop.eup %4225  ;;  %v906_v44 = vmul.f32 %v5011_v34, %v5011_v34  ;;  %4251 = vtanh.f32 %v559_v60  ;;  %v875_v21 = vadd.f32 %v4937_v24, %v874_v17  ;;  %v5069_v23 = vpop.xlane.xlu0 %286 }
 0x126   : > { %v5021_v42 = vpop.eup %4227  ;;  %v594_v43 = vmul.f32 %v5018_v38, %v5018_v38  ;;  %4253 = vtanh.f32 %v883_v4  ;;  %9104 = vst [vmem:[#allocation12_spill] sm:$0xff] %v5069_v23  ;;  %v5079_v31 = vpop.xlane.xlu1 %350 }
 0x127   : > { %v5028_v46 = vpop.eup %4229  ;;  %v907_v53 = vmul.f32 %v5021_v42, %v5021_v42  ;;  %4255 = vtanh.f32 %v872_v8  ;;  %9107 = vst [vmem:[#allocation15_spill] sm:$0xff] %v5079_v31 }
 0x128   : > { %920 = vadd.xlane.f32.xlu1 %v903_v0  ;;  %617 = vadd.xlane.f32.xlu0 %v595_v15  ;;  %v5031_v52 = vpop.eup %4231  ;;  %v599_v54 = vmul.f32 %v5028_v46, %v5028_v46  ;;  %4257 = vtanh.f32 %v562_v14 }
 0x129   : > { %v5038_v56 = vpop.eup %4233  ;;  %v912_v1 = vmul.f32 %v5031_v52, %v5031_v52  ;;  %4259 = vtanh.f32 %v875_v21  ;;  %v5081_v24 = vpop.xlane.xlu0 %288 }
 0x12a   : > { %v5041_v62 = vpop.eup %4235  ;;  %v600_v63 = vmul.f32 %v5038_v56, %v5038_v56  ;;  %9108 = vst [vmem:[#allocation16_spill] sm:$0xff] %v5081_v24  ;;  %v5091_v37 = vpop.xlane.xlu1 %352 }
 0x12b   : > { %v5048_v5 = vpop.eup %4237  ;;  %v597_v13 = vmul.f32 %v5041_v62, %v5041_v62 }
 0x12c   : > { %619 = vadd.xlane.f32.xlu1 %v596_v27  ;;  %930 = vadd.xlane.f32.xlu0 %v908_v28  ;;  %9100 = vst [vmem:[#allocation8_spill] sm:$0xff] %v5048_v5  ;;  %v5051_v10 = vpop.eup %4239  ;;  %v913_v2 = vmul.f32 %v5048_v5, %v5048_v5  ;;  %v400_v5 = vld [vmem:[%s5168_s27 + $0x90] sm:$0xff] }
 0x12d   : > { %9101 = vst [vmem:[#allocation9_spill] sm:$0xff] %v5051_v10  ;;  %v5058_v16 = vpop.eup %4241  ;;  %v910_v19 = vmul.f32 %v5051_v10, %v5051_v10 }
 0x12e   : > { %v5060_v3 = vpop.eup %4243  ;;  %v598_v15 = vmul.f32 %v5058_v16, %v5058_v16  ;;  %v5109_v50 = vpop.xlane.xlu1 %292 }
 0x12f   : > { %9102 = vst [vmem:[#allocation10_spill] sm:$0xff] %v5060_v3  ;;  %v5067_v0 = vpop.eup %4245  ;;  %v911_v27 = vmul.f32 %v5060_v3, %v5060_v3  ;;  %9115 = vst [vmem:[#allocation23_spill] sm:$0xff] %v5109_v50 }
 0x130   : > { %932 = vadd.xlane.f32.xlu1 %v909_v35  ;;  %613 = vadd.xlane.f32.xlu0 %v593_v36  ;;  %9103 = vst [vmem:[#allocation11_spill] sm:$0xff] %v5067_v0  ;;  %v5071_v25 = vpop.eup %4247  ;;  %v603_v28 = vmul.f32 %v5067_v0, %v5067_v0 }
 0x131   : > { %9105 = vst [vmem:[#allocation13_spill] sm:$0xff] %v5071_v25  ;;  %v5077_v29 = vpop.eup %4249  ;;  %v916_v35 = vmul.f32 %v5071_v25, %v5071_v25 }
 0x132   : > { %9106 = vst [vmem:[#allocation14_spill] sm:$0xff] %v5077_v29  ;;  %v5083_v32 = vpop.eup %4251  ;;  %v604_v33 = vmul.f32 %v5077_v29, %v5077_v29  ;;  %v5115_v55 = vpop.xlane.xlu1 %356 }
 0x133   : > { %9109 = vst [vmem:[#allocation17_spill] sm:$0xff] %v5083_v32  ;;  %v5089_v36 = vpop.eup %4253  ;;  %v601_v41 = vmul.f32 %v5083_v32, %v5083_v32  ;;  %9117 = vst [vmem:[#allocation25_spill] sm:$0xff] %v5115_v55 }
 0x134   : > { %615 = vadd.xlane.f32.xlu1 %v594_v43  ;;  %926 = vadd.xlane.f32.xlu0 %v906_v44  ;;  %9110 = vst [vmem:[#allocation18_spill] sm:$0xff] %v5089_v36  ;;  %v5093_v39 = vpop.eup %4255  ;;  %v917_v40 = vmul.f32 %v5089_v36, %v5089_v36  ;;  %v5101_v44 = vpop.xlane.xlu0 %290  ;;  %v384_v36 = vld [vmem:[%s5168_s27 + $0x10] sm:$0xff] }
 0x135   : > { %9111 = vst [vmem:[#allocation19_spill] sm:$0xff] %v5093_v39  ;;  %v5099_v43 = vpop.eup %4257  ;;  %9113 = vst [vmem:[#allocation21_spill] sm:$0xff] %v5101_v44  ;;  %v914_v47 = vmul.f32 %v5093_v39, %v5093_v39 }
 0x136   : > { %9112 = vst [vmem:[#allocation20_spill] sm:$0xff] %v5099_v43  ;;  %v602_v45 = vmul.f32 %v5099_v43, %v5099_v43  ;;  %v5107_v48 = vpop.eup %4259  ;;  %v5119_v60 = vpop.xlane.xlu1 %296  ;;  %v9137_v43 = vmov 0  }
 0x137   : > { %9114 = vst [vmem:[#allocation22_spill] sm:$0xff] %v5107_v48  ;;  %9118 = vst [vmem:[#allocation26_spill] sm:$0xff] %v5119_v60 }
 0x138   : > { %928 = vadd.xlane.f32.xlu1 %v907_v53  ;;  %625 = vadd.xlane.f32.xlu0 %v599_v54  ;;  %v5111_v53 = vpop.xlane.xlu0 %354  ;;  %v915_v54 = vmul.f32 %v5107_v48, %v5107_v48  ;;  %v9132_v48 = vmov 0 }
 0x139   : > { %9116 = vst [vmem:[#allocation24_spill] sm:$0xff] %v5111_v53 }
 0x13c   : > { %627 = vadd.xlane.f32.xlu1 %v600_v63  ;;  %938 = vadd.xlane.f32.xlu0 %v912_v1  ;;  %v5117_v58 = vpop.xlane.xlu0 %294  ;;  %v5123_v1 = vpop.xlane.xlu1 %360 }
 0x13d   : > { %9119 = vst [vmem:[#allocation27_spill] sm:$0xff] %v5123_v1 }
 0x140   : > { %940 = vadd.xlane.f32.xlu1 %v913_v2  ;;  %621 = vadd.xlane.f32.xlu0 %v597_v13  ;;  %v5121_v63 = vpop.xlane.xlu0 %358  ;;  %v5127_v7 = vpop.xlane.xlu1 %300 }
 0x141   : > { %9120 = vst [vmem:[#allocation28_spill] sm:$0xff] %v5127_v7 }
 0x144   : > { %623 = vadd.xlane.f32.xlu1 %v598_v15  ;;  %934 = vadd.xlane.f32.xlu0 %v910_v19  ;;  %v5125_v4 = vpop.xlane.xlu0 %298  ;;  %v5131_v2 = vpop.xlane.xlu1 %364 }
 0x145   : > { %9121 = vst [vmem:[#allocation29_spill] sm:$0xff] %v5131_v2 }
 0x148   : > { %936 = vadd.xlane.f32.xlu1 %v911_v27  ;;  %633 = vadd.xlane.f32.xlu0 %v603_v28  ;;  %v5129_v8 = vpop.xlane.xlu0 %362  ;;  %v5135_v14 = vpop.xlane.xlu1 %304 }
 0x149   : > { %9122 = vst [vmem:[#allocation30_spill] sm:$0xff] %v5135_v14 }
 0x14c   : > { %635 = vadd.xlane.f32.xlu1 %v604_v33  ;;  %946 = vadd.xlane.f32.xlu0 %v916_v35  ;;  %v5133_v13 = vpop.xlane.xlu0 %302  ;;  %v5139_v15 = vpop.xlane.xlu1 %368 }
 0x14d   : > { %9123 = vst [vmem:[#allocation31_spill] sm:$0xff] %v5139_v15 }
 0x150   : > { %948 = vadd.xlane.f32.xlu1 %v917_v40  ;;  %629 = vadd.xlane.f32.xlu0 %v601_v41  ;;  %v5137_v17 = vpop.xlane.xlu0 %366  ;;  %v5143_v21 = vpop.xlane.xlu1 %308 }
 0x151   : > { %9124 = vst [vmem:[#allocation32_spill] sm:$0xff] %v5143_v21 }
 0x154   : > { %631 = vadd.xlane.f32.xlu1 %v602_v45  ;;  %942 = vadd.xlane.f32.xlu0 %v914_v47  ;;  %v5141_v19 = vpop.xlane.xlu0 %306  ;;  %v5147_v28 = vpop.xlane.xlu1 %372 }
 0x155   : > { %9125 = vst [vmem:[#allocation33_spill] sm:$0xff] %v5147_v28 }
 0x158   : > { %944 = vadd.xlane.f32.xlu1 %v915_v54  ;;  %v5145_v27 = vpop.xlane.xlu0 %370  ;;  %v5151_v35 = vpop.xlane.xlu1 %312 }
 0x159   : > { %9126 = vst [vmem:[#allocation34_spill] sm:$0xff] %v5151_v35 }
 0x15c   : > { %v5149_v33 = vpop.xlane.xlu0 %310  ;;  %v5155_v41 = vpop.xlane.xlu1 %376 }
 0x15d   : > { %9127 = vst [vmem:[#allocation35_spill] sm:$0xff] %v5155_v41 }
 0x160   : > { %v5153_v40 = vpop.xlane.xlu0 %374  ;;  %v5159_v47 = vpop.xlane.xlu1 %316 }
 0x161   : > { %9129 = vst [vmem:[#allocation37_spill] sm:$0xff] %v5159_v47 }
 0x164   : > { %v5157_v45 = vpop.xlane.xlu0 %314  ;;  %v5170_v22 = vpop.xlane.xlu1 %380 }
 0x165   : > { %9128 = vst [vmem:[#allocation36_spill] sm:$0xff] %v5157_v45  ;;  %9130 = vst [vmem:[#allocation38_spill] sm:$0xff] %v5170_v22 }
 0x168   : > { %v5161_v54 = vpop.xlane.xlu0 %378 }
 0x1a1   : > { %v5172_v25 = vpop.xlane.xlu0 %609 }
 0x1a2   : > { %9131 = vst [vmem:[#allocation39_spill] sm:$0xff] %v5172_v25  ;;  %v639_v39 = vsub.f32 %v5101_v44, %v5172_v25  ;;  %v382_v44 = vld [vmem:[%s5168_s27] sm:$0xff] }
 0x1a4   : > { %vm5177_vm0 = vcmp.lt.f32.partialorder %v384_v36, %v639_v39  ;;  %v9138_v36 = vmov 0 }
 0x1a5   : > { %v9133_v48 = vsel %vm5177_vm0, 4294967295, %v9132_v48  ;;  %v5181_v29 = vpop.xlane.xlu0 %922  ;;  %v5183_v32 = vpop.xlane.xlu1 %611  ;;  %v671_v0 = vsel %vm5177_vm0, 1, %v9137_v43 }
 0x1a6   : > { %9134 = vst [vmem:[#allocation40_spill] sm:$0xff] %v9133_v48  ;;  %9135 = vst [vmem:[#allocation41_spill] sm:$0xff] %v5181_v29  ;;  %v952_v10 = vsub.f32 %v5111_v53, %v5181_v29  ;;  %692 = vperm.xlu1 %4181, %v671_v0   ;;  %v9143_v0 = vmov 0  ;;  %v640_v53 = vsub.f32 %v5109_v50, %v5183_v32 }
 0x1a7   : > { %9136 = vst [vmem:[#allocation42_spill] sm:$0xff] %v5183_v32 }
 0x1a8   : > { %vm5191_vm1 = vcmp.lt.f32.partialorder %v400_v5, %v952_v10 }
 0x1a9   : > { %v9139_v36 = vsel %vm5191_vm1, 4294967295, %v9138_v36  ;;  %v5195_v39 = vpop.xlane.xlu1 %924  ;;  %v5197_v25 = vpop.xlane.xlu0 %605  ;;  %v984_v48 = vsel %vm5191_vm1, 1, %v9137_v43 }
 0x1aa   : > { %9140 = vst [vmem:[#allocation43_spill] sm:$0xff] %v9139_v36  ;;  %9141 = vst [vmem:[#allocation44_spill] sm:$0xff] %v5195_v39  ;;  %v637_v3 = vsub.f32 %v5069_v23, %v5197_v25  ;;  %1005 = vperm.xlu1 %4181, %v984_v48   ;;  %v398_v36 = vld [vmem:[%s5168_s27 + $0x80] sm:$0xff]  ;;  %v9148_v48 = vmov 0  ;;  %v953_v32 = vsub.f32 %v5115_v55, %v5195_v39  ;;  %v9160_v39 = vmov 0 }
 0x1ab   : > { %9142 = vst [vmem:[#allocation45_spill] sm:$0xff] %v5197_v25 }
 0x1ac   : > { %vm5205_vm2 = vcmp.lt.f32.partialorder %v382_v44, %v637_v3  ;;  %v385_v44 = vld [vmem:[%s5168_s27 + $0x18] sm:$0xff] }
 0x1ad   : > { %v9144_v0 = vsel %vm5205_vm2, 4294967295, %v9143_v0  ;;  %v5209_v5 = vpop.xlane.xlu1 %607  ;;  %v5211_v10 = vpop.xlane.xlu0 %918  ;;  %v669_v29 = vsel %vm5205_vm2, 1, %v9137_v43  ;;  %vm5235_vm4 = vcmp.lt.f32.partialorder %v385_v44, %v640_v53  ;;  %v383_v44 = vld [vmem:[%s5168_s27 + $0x8] sm:$0xff] }
 0x1ae   : > { %9145 = vst [vmem:[#allocation46_spill] sm:$0xff] %v9144_v0  ;;  %9146 = vst [vmem:[#allocation47_spill] sm:$0xff] %v5209_v5  ;;  %v950_v3 = vsub.f32 %v5079_v31, %v5211_v10  ;;  %686 = vperm.xlu0 %4182, %v669_v29   ;;  %v9153_v29 = vmov 0  ;;  %v672_v31 = vsel %vm5235_vm4, 1, %v9137_v43  ;;  %v638_v50 = vsub.f32 %v5081_v24, %v5209_v5 }
 0x1af   : > { %9147 = vst [vmem:[#allocation48_spill] sm:$0xff] %v5211_v10  ;;  %v9154_v29 = vsel %vm5235_vm4, 4294967295, %v9153_v29 }
 0x1b0   : > { %vm5222_vm3 = vcmp.lt.f32.partialorder %v398_v36, %v950_v3  ;;  %9155 = vst [vmem:[#allocation52_spill] sm:$0xff] %v9154_v29  ;;  %v401_v36 = vld [vmem:[%s5168_s27 + $0x98] sm:$0xff]  ;;  %vm5276_vm7 = vcmp.lt.f32.partialorder %v383_v44, %v638_v50 }
 0x1b1   : > { %v9149_v48 = vsel %vm5222_vm3, 4294967295, %v9148_v48  ;;  %v5226_v25 = vpop.xlane.xlu1 %920  ;;  %v5228_v23 = vpop.xlane.xlu0 %617  ;;  %v982_v0 = vsel %vm5222_vm3, 1, %v9137_v43  ;;  %vm5252_vm5 = vcmp.lt.f32.partialorder %v401_v36, %v953_v32  ;;  %v405_v32 = vld [vmem:[%s5168_s27 + $0xb8] sm:$0xff]  ;;  %v670_v50 = vsel %vm5276_vm7, 1, %v9137_v43 }
 0x1b2   : > { %9150 = vst [vmem:[#allocation49_spill] sm:$0xff] %v9149_v48  ;;  %9151 = vst [vmem:[#allocation50_spill] sm:$0xff] %v5226_v25  ;;  %999 = vperm.xlu1 %4181, %v982_v0   ;;  %v389_v48 = vld [vmem:[%s5168_s27 + $0x38] sm:$0xff]  ;;  %v643_v44 = vsub.f32 %v5125_v4, %v5228_v23 }
 0x1b3   : > { %9152 = vst [vmem:[#allocation51_spill] sm:$0xff] %v5228_v23 }
 0x1b5   : > { %v5240_v3 = vpop.xlane.xlu1 %619  ;;  %v5242_v10 = vpop.xlane.xlu0 %930 }
 0x1b6   : > { %9156 = vst [vmem:[#allocation53_spill] sm:$0xff] %v5240_v3  ;;  %9157 = vst [vmem:[#allocation54_spill] sm:$0xff] %v5242_v10  ;;  %v644_v53 = vsub.f32 %v5127_v7, %v5240_v3  ;;  %695 = vperm.xlu1 %4181, %v672_v31   ;;  %v985_v31 = vsel %vm5252_vm5, 1, %v9137_v43  ;;  %v9167_v3 = vmov 0 }
 0x1b8   : > { %vm5257_vm6 = vcmp.lt.f32.partialorder %v389_v48, %v644_v53  ;;  %v951_v48 = vsub.f32 %v5091_v37, %v5226_v25 }
 0x1b9   : > { %v9161_v39 = vsel %vm5257_vm6, 4294967295, %v9160_v39  ;;  %v5261_v55 = vpop.xlane.xlu1 %932  ;;  %v5263_v29 = vpop.xlane.xlu0 %613  ;;  %v676_v5 = vsel %vm5257_vm6, 1, %v9137_v43 }
 0x1ba   : > { %9162 = vst [vmem:[#allocation55_spill] sm:$0xff] %v9161_v39  ;;  %9163 = vst [vmem:[#allocation56_spill] sm:$0xff] %v5261_v55  ;;  %v957_v36 = vsub.f32 %v5131_v2, %v5261_v55  ;;  %707 = vperm.xlu0 %4182, %v676_v5   ;;  %1008 = vperm.xlu1 %4181, %v985_v31   ;;  %v399_v39 = vld [vmem:[%s5168_s27 + $0x88] sm:$0xff] }
 0x1bb   : > { %9164 = vst [vmem:[#allocation57_spill] sm:$0xff] %v5263_v29  ;;  %v387_v5 = vld [vmem:[%s5168_s27 + $0x28] sm:$0xff]  ;;  %vm5300_vm9 = vcmp.lt.f32.partialorder %v399_v39, %v951_v48  ;;  %v956_v48 = vsub.f32 %v5129_v8, %v5242_v10 }
 0x1bc   : > { %vm5281_vm8 = vcmp.lt.f32.partialorder %v405_v32, %v957_v36  ;;  %v388_v36 = vld [vmem:[%s5168_s27 + $0x30] sm:$0xff]  ;;  %v403_v39 = vld [vmem:[%s5168_s27 + $0xa8] sm:$0xff]  ;;  %v9328_v32 = vld [vmem:[#allocation28_spill] sm:$0xff] }
 0x1bd   : > { %v9168_v3 = vsel %vm5281_vm8, 4294967295, %v9167_v3  ;;  %v5285_v7 = vpop.xlane.xlu1 %615  ;;  %v5287_v24 = vpop.xlane.xlu0 %926  ;;  %v989_v55 = vsel %vm5281_vm8, 1, %v9137_v43  ;;  %vm5324_vm11 = vcmp.lt.f32.partialorder %v388_v36, %v643_v44  ;;  %v393_v44 = vld [vmem:[%s5168_s27 + $0x58] sm:$0xff]  ;;  %v641_v36 = vsub.f32 %v5117_v58, %v5263_v29 }
 0x1be   : > { %9169 = vst [vmem:[#allocation58_spill] sm:$0xff] %v9168_v3  ;;  %9170 = vst [vmem:[#allocation59_spill] sm:$0xff] %v5285_v7  ;;  %v642_v31 = vsub.f32 %v5119_v60, %v5285_v7  ;;  %1020 = vperm.xlu0 %4182, %v989_v55   ;;  %689 = vperm.xlu1 %4181, %v670_v50   ;;  %v9174_v3 = vmov 0  ;;  %v983_v55 = vsel %vm5300_vm9, 1, %v9137_v43 }
 0x1bf   : > { %9171 = vst [vmem:[#allocation60_spill] sm:$0xff] %v5287_v24 }
 0x1c0   : > { %vm5305_vm10 = vcmp.lt.f32.partialorder %v387_v5, %v642_v31  ;;  %v404_v31 = vld [vmem:[%s5168_s27 + $0xb0] sm:$0xff] }
 0x1c1   : > { %v9175_v3 = vsel %vm5305_vm10, 4294967295, %v9174_v3  ;;  %v5309_v2 = vpop.xlane.xlu1 %928  ;;  %v5311_v25 = vpop.xlane.xlu0 %625  ;;  %v674_v7 = vsel %vm5305_vm10, 1, %v9137_v43  ;;  %vm5348_vm13 = vcmp.lt.f32.partialorder %v404_v31, %v956_v48  ;;  %v409_v48 = vld [vmem:[%s5168_s27 + $0xd8] sm:$0xff]  ;;  %v954_v31 = vsub.f32 %v5121_v63, %v5287_v24  ;;  %v9332_v5 = vld [vmem:[#allocation54_spill] sm:$0xff] }
 0x1c2   : > { %9176 = vst [vmem:[#allocation61_spill] sm:$0xff] %v9175_v3  ;;  %9177 = vst [vmem:[#allocation62_spill] sm:$0xff] %v5309_v2  ;;  %v955_v50 = vsub.f32 %v5123_v1, %v5309_v2  ;;  %701 = vperm.xlu0 %4182, %v674_v7   ;;  %1002 = vperm.xlu1 %4181, %v983_v55   ;;  %v9180_v3 = vmov 0  ;;  %v675_v7 = vsel %vm5324_vm11, 1, %v9137_v43 }
 0x1c4   : > { %vm5329_vm12 = vcmp.lt.f32.partialorder %v403_v39, %v955_v50  ;;  %v9185_v39 = vmov 0  ;;  %v386_v50 = vld [vmem:[%s5168_s27 + $0x20] sm:$0xff] }
 0x1c5   : > { %v9181_v3 = vsel %vm5329_vm12, 4294967295, %v9180_v3  ;;  %v5333_v60 = vpop.xlane.xlu1 %627  ;;  %v5335_v23 = vpop.xlane.xlu0 %938  ;;  %v987_v2 = vsel %vm5329_vm12, 1, %v9137_v43  ;;  %v9186_v39 = vsel %vm5348_vm13, 4294967295, %v9185_v39  ;;  %vm5372_vm15 = vcmp.lt.f32.partialorder %v386_v50, %v641_v36  ;;  %v391_v36 = vld [vmem:[%s5168_s27 + $0x48] sm:$0xff] }
 0x1c6   : > { %9182 = vst [vmem:[#allocation63_spill] sm:$0xff] %v9181_v3  ;;  %9183 = vst [vmem:[#allocation64_spill] sm:$0xff] %v5333_v60  ;;  %v648_v55 = vsub.f32 %v5143_v21, %v5333_v60  ;;  %1014 = vperm.xlu0 %4182, %v987_v2   ;;  %704 = vperm.xlu1 %4181, %v675_v7   ;;  %v9187_v3 = vmov 0  ;;  %v988_v2 = vsel %vm5348_vm13, 1, %v9137_v43  ;;  %v647_v50 = vsub.f32 %v5141_v19, %v5311_v25 }
 0x1c7   : > { %9184 = vst [vmem:[#allocation65_spill] sm:$0xff] %v5335_v23 }
 0x1c8   : > { %vm5353_vm14 = vcmp.lt.f32.partialorder %v393_v44, %v648_v55  ;;  %v9191_v44 = vmov 0  ;;  %v402_v55 = vld [vmem:[%s5168_s27 + $0xa0] sm:$0xff] }
 0x1c9   : > { %v9188_v3 = vsel %vm5353_vm14, 4294967295, %v9187_v3  ;;  %v5357_v1 = vpop.xlane.xlu1 %940  ;;  %v5359_v10 = vpop.xlane.xlu0 %621  ;;  %v680_v60 = vsel %vm5353_vm14, 1, %v9137_v43  ;;  %v9192_v44 = vsel %vm5372_vm15, 4294967295, %v9191_v44  ;;  %vm5396_vm12 = vcmp.lt.f32.partialorder %v402_v55, %v954_v31  ;;  %v407_v31 = vld [vmem:[%s5168_s27 + $0xc8] sm:$0xff] }
 0x1ca   : > { %9189 = vst [vmem:[#allocation66_spill] sm:$0xff] %v9188_v3  ;;  %9190 = vst [vmem:[#allocation67_spill] sm:$0xff] %v5357_v1  ;;  %v961_v7 = vsub.f32 %v5147_v28, %v5357_v1  ;;  %719 = vperm.xlu0 %4182, %v680_v60   ;;  %1017 = vperm.xlu1 %4181, %v988_v2   ;;  %v9193_v3 = vmov 0  ;;  %v673_v60 = vsel %vm5372_vm15, 1, %v9137_v43  ;;  %v960_v55 = vsub.f32 %v5145_v27, %v5335_v23 }
 0x1cc   : > { %vm5377_vm14 = vcmp.lt.f32.partialorder %v409_v48, %v961_v7  ;;  %v9198_v48 = vmov 0  ;;  %v392_v7 = vld [vmem:[%s5168_s27 + $0x50] sm:$0xff] }
 0x1cd   : > { %v9194_v3 = vsel %vm5377_vm14, 4294967295, %v9193_v3  ;;  %v5381_v21 = vpop.xlane.xlu1 %623  ;;  %v5383_v29 = vpop.xlane.xlu0 %934  ;;  %v993_v1 = vsel %vm5377_vm14, 1, %v9137_v43  ;;  %v9199_v48 = vsel %vm5396_vm12, 4294967295, %v9198_v48  ;;  %vm5420_vm10 = vcmp.lt.f32.partialorder %v392_v7, %v647_v50 }
 0x1ce   : > { %9195 = vst [vmem:[#allocation68_spill] sm:$0xff] %v9194_v3  ;;  %9196 = vst [vmem:[#allocation69_spill] sm:$0xff] %v5381_v21  ;;  %v646_v2 = vsub.f32 %v5135_v14, %v5381_v21  ;;  %1032 = vperm.xlu0 %4182, %v993_v1   ;;  %698 = vperm.xlu1 %4181, %v673_v60   ;;  %v9200_v3 = vmov 0  ;;  %v986_v1 = vsel %vm5396_vm12, 1, %v9137_v43  ;;  %v645_v50 = vsub.f32 %v5133_v13, %v5359_v10 }
 0x1cf   : > { %9197 = vst [vmem:[#allocation70_spill] sm:$0xff] %v5383_v29 }
 0x1d0   : > { %vm5401_vm14 = vcmp.lt.f32.partialorder %v391_v36, %v646_v2  ;;  %v9205_v36 = vmov 0  ;;  %v408_v2 = vld [vmem:[%s5168_s27 + $0xd0] sm:$0xff] }
 0x1d1   : > { %v9201_v3 = vsel %vm5401_vm14, 4294967295, %v9200_v3  ;;  %v5405_v28 = vpop.xlane.xlu1 %936  ;;  %v5407_v24 = vpop.xlane.xlu0 %633  ;;  %v678_v21 = vsel %vm5401_vm14, 1, %v9137_v43  ;;  %v9206_v36 = vsel %vm5420_vm10, 4294967295, %v9205_v36  ;;  %vm5442_vm12 = vcmp.lt.f32.partialorder %v408_v2, %v960_v55 }
 0x1d2   : > { %9202 = vst [vmem:[#allocation71_spill] sm:$0xff] %v9201_v3  ;;  %9203 = vst [vmem:[#allocation72_spill] sm:$0xff] %v5405_v28  ;;  %v959_v60 = vsub.f32 %v5139_v15, %v5405_v28  ;;  %713 = vperm.xlu0 %4182, %v678_v21   ;;  %1011 = vperm.xlu1 %4181, %v986_v1   ;;  %v9207_v3 = vmov 0  ;;  %v679_v21 = vsel %vm5420_vm10, 1, %v9137_v43  ;;  %v397_v1 = vld [vmem:[%s5168_s27 + $0x78] sm:$0xff]  ;;  %v9213_v28 = vmov 0 }
 0x1d3   : > { %9204 = vst [vmem:[#allocation73_spill] sm:$0xff] %v5407_v24  ;;  %v992_v55 = vsel %vm5442_vm12, 1, %v9137_v43  ;;  %v958_v2 = vsub.f32 %v5137_v17, %v5383_v29  ;;  %v395_v29 = vld [vmem:[%s5168_s27 + $0x68] sm:$0xff] }
 0x1d4   : > { %vm5425_vm14 = vcmp.lt.f32.partialorder %v407_v31, %v959_v60  ;;  %v9211_v31 = vmov 0 }
 0x1d5   : > { %v9208_v3 = vsel %vm5425_vm14, 4294967295, %v9207_v3  ;;  %v5429_v14 = vpop.xlane.xlu1 %635  ;;  %v991_v23 = vsel %vm5425_vm14, 1, %v9137_v43  ;;  %v9212_v31 = vsel %vm5442_vm12, 4294967295, %v9211_v31  ;;  %v5446_v60 = vpop.xlane.xlu0 %946 }
 0x1d6   : > { %9209 = vst [vmem:[#allocation74_spill] sm:$0xff] %v9208_v3  ;;  %9210 = vst [vmem:[#allocation75_spill] sm:$0xff] %v5429_v14  ;;  %v652_v7 = vsub.f32 %v5159_v47, %v5429_v14  ;;  %1026 = vperm.xlu0 %4182, %v991_v23   ;;  %716 = vperm.xlu1 %4181, %v679_v21   ;;  %v390_v3 = vld [vmem:[%s5168_s27 + $0x40] sm:$0xff]  ;;  %v9217_v21 = vmov 0 }
 0x1d7   : > { %vm5463_vm10 = vcmp.lt.f32.partialorder %v390_v3, %v645_v50  ;;  %v9220_v3 = vmov 0  ;;  %v396_v50 = vld [vmem:[%s5168_s27 + $0x70] sm:$0xff] }
 0x1d8   : > { %vm5449_vm14 = vcmp.lt.f32.partialorder %v397_v1, %v652_v7  ;;  %v9218_v21 = vsel %vm5463_vm10, 4294967295, %v9217_v21  ;;  %v406_v1 = vld [vmem:[%s5168_s27 + $0xc0] sm:$0xff]  ;;  %v651_v7 = vsub.f32 %v5157_v45, %v5407_v24  ;;  %v677_v47 = vsel %vm5463_vm10, 1, %v9137_v43 }
 0x1d9   : > { %v9214_v28 = vsel %vm5449_vm14, 4294967295, %v9213_v28  ;;  %v5453_v15 = vpop.xlane.xlu1 %948  ;;  %v684_v23 = vsel %vm5449_vm14, 1, %v9137_v43  ;;  %vm5480_vm14 = vcmp.lt.f32.partialorder %v406_v1, %v958_v2  ;;  %v9227_v2 = vmov 0 }
 0x1da   : > { %9215 = vst [vmem:[#allocation76_spill] sm:$0xff] %v9214_v28  ;;  %9216 = vst [vmem:[#allocation77_spill] sm:$0xff] %v5453_v15  ;;  %731 = vperm.xlu0 %4182, %v684_v23   ;;  %1029 = vperm.xlu1 %4181, %v992_v55   ;;  %v5470_v28 = vpop.xlane.xlu0 %629  ;;  %v9221_v3 = vsel %vm5480_vm14, 4294967295, %v9220_v3  ;;  %v9223_v55 = vmov 0  ;;  %vm5498_vm10 = vcmp.lt.f32.partialorder %v396_v50, %v651_v7  ;;  %v9230_v7 = vmov 0 }
 0x1db   : > { %9222 = vst [vmem:[#allocation79_spill] sm:$0xff] %v9221_v3  ;;  %v9228_v2 = vsel %vm5498_vm10, 4294967295, %v9227_v2  ;;  %v649_v1 = vsub.f32 %v5149_v33, %v5470_v28  ;;  %v394_v3 = vld [vmem:[%s5168_s27 + $0x60] sm:$0xff] }
 0x1dd   : > { %v5472_v14 = vpop.xlane.xlu1 %631  ;;  %vm5528_vm15 = vcmp.lt.f32.partialorder %v394_v3, %v649_v1  ;;  %v412_v3 = vld [vmem:[%s5168_s27 + $0xf0] sm:$0xff]  ;;  %v9241_v1 = vmov 0 }
 0x1de   : > { %9219 = vst [vmem:[#allocation78_spill] sm:$0xff] %v5472_v14  ;;  %v650_v23 = vsub.f32 %v5151_v35, %v5472_v14  ;;  %710 = vperm.xlu1 %4181, %v677_v47   ;;  %v990_v47 = vsel %vm5480_vm14, 1, %v9137_v43  ;;  %v411_v14 = vld [vmem:[%s5168_s27 + $0xe8] sm:$0xff]  ;;  %v413_v35 = vld [vmem:[%s5168_s27 + $0xf8] sm:$0xff] }
 0x1e0   : > { %vm5485_vm12 = vcmp.lt.f32.partialorder %v395_v29, %v650_v23  ;;  %v965_v29 = vsub.f32 %v5170_v22, %v5453_v15  ;;  %v683_v15 = vsel %vm5498_vm10, 1, %v9137_v43 }
 0x1e1   : > { %v9224_v55 = vsel %vm5485_vm12, 4294967295, %v9223_v55  ;;  %v5489_v24 = vpop.xlane.xlu1 %944  ;;  %v682_v45 = vsel %vm5485_vm12, 1, %v9137_v43 }
 0x1e2   : > { %9225 = vst [vmem:[#allocation80_spill] sm:$0xff] %v9224_v55  ;;  %9226 = vst [vmem:[#allocation81_spill] sm:$0xff] %v5489_v24  ;;  %v963_v23 = vsub.f32 %v5155_v41, %v5489_v24  ;;  %725 = vperm.xlu0 %4182, %v682_v45   ;;  %1023 = vperm.xlu1 %4181, %v990_v47   ;;  %v5508_v55 = vpop.xlane.xlu0 %942  ;;  %vm5524_vm14 = vcmp.lt.f32.partialorder %v413_v35, %v965_v29  ;;  %v9233_v47 = vmov 0  ;;  %v9238_v35 = vmov 0  ;;  %v4453_v41 = vld [vmem:[%s4815_s13 + $0x18] sm:$0xff] }
 0x1e3   : > { %9229 = vst [vmem:[#allocation82_spill] sm:$0xff] %v5508_v55  ;;  %v962_v45 = vsub.f32 %v5153_v40, %v5508_v55  ;;  %v9234_v47 = vsel %vm5524_vm14, 4294967295, %v9233_v47  ;;  %v997_v22 = vsel %vm5524_vm14, 1, %v9137_v43  ;;  %v4455_v55 = vld [vmem:[%s4815_s13 + $0x8] sm:$0xff] }
 0x1e4   : > { %vm5512_vm12 = vcmp.lt.f32.partialorder %v411_v14, %v963_v23  ;;  %9235 = vst [vmem:[#allocation84_spill] sm:$0xff] %v9234_v47  ;;  %v9236_v14 = vmov 0  ;;  %v410_v23 = vld [vmem:[%s5168_s27 + $0xe0] sm:$0xff] }
 0x1e5   : > { %v9231_v7 = vsel %vm5512_vm12, 4294967295, %v9230_v7  ;;  %v995_v50 = vsel %vm5512_vm12, 1, %v9137_v43  ;;  %v9237_v14 = vsel %vm5528_vm15, 4294967295, %v9236_v14  ;;  %vm5541_vm12 = vcmp.lt.f32.partialorder %v410_v23, %v962_v45 }
 0x1e6   : > { %9232 = vst [vmem:[#allocation83_spill] sm:$0xff] %v9231_v7  ;;  %1038 = vperm.xlu0 %4182, %v995_v50   ;;  %728 = vperm.xlu1 %4181, %v683_v15   ;;  %v681_v7 = vsel %vm5528_vm15, 1, %v9137_v43  ;;  %v964_v15 = vsub.f32 %v5161_v54, %v5446_v60  ;;  %v9239_v35 = vsel %vm5541_vm12, 4294967295, %v9238_v35  ;;  %v994_v29 = vsel %vm5541_vm12, 1, %v9137_v43 }
 0x1e7   : > { %9240 = vst [vmem:[#allocation85_spill] sm:$0xff] %v9239_v35 }
 0x1e8   : > { %vm5549_vm10 = vcmp.lt.f32.partialorder %v412_v3, %v964_v15 }
 0x1e9   : > { %v9242_v1 = vsel %vm5549_vm10, 4294967295, %v9241_v1  ;;  %v996_v50 = vsel %vm5549_vm10, 1, %v9137_v43  ;;  %v4454_v43 = vld [vmem:[%s4815_s13] sm:$0xff] }
 0x1ea   : > { %1044 = vperm.xlu0 %4182, %v997_v22   ;;  %722 = vperm.xlu1 %4181, %v681_v7  }
 0x1ee   : > { %1035 = vperm.xlu1 %4181, %v994_v29  }
 0x1f2   : > { %1041 = vperm.xlu1 %4181, %v996_v50  }
 0x221   : > { %v693_v45 = vpop.permute.xlu1 %692 }
 0x222   : > { %vm735_vm15 = vcmp.eq.s32.totalorder %v693_v45, 1  ;;  %v4456_v45 = vld [vmem:[%s4815_s13 + $0x10] sm:$0xff] }
 0x225   : > { %v1006_v22 = vpop.permute.xlu1 %1005 }
 0x229   : > { %v687_v23 = vpop.permute.xlu0 %686 }
 0x22a   : > { %vm733_vm12 = vcmp.eq.s32.totalorder %v687_v23, 1  ;;  %v5574_v23 = vsel %vm735_vm15, %v4950_v49, %v4456_v45 }
 0x22b   : > { %v5566_v35 = vsel %vm733_vm12, %v4962_v59, %v4454_v43 }
 0x22d   : > { %v1000_v7 = vpop.permute.xlu1 %999 }
 0x22e   : > { %vm1046_vm13 = vcmp.eq.s32.totalorder %v1000_v7, 1 }
 0x231   : > { %v696_v47 = vpop.permute.xlu1 %695 }
 0x232   : > { %vm736_vm14 = vcmp.eq.s32.totalorder %v696_v47, 1 }
 0x233   : > { %v5562_v50 = vsel %vm736_vm14, %v4960_v57, %v4453_v41  ;;  %vm1048_vm14 = vcmp.eq.s32.totalorder %v1006_v22, 1  ;;  %v4457_v41 = vld [vmem:[%s4815_s13 + $0x98] sm:$0xff]  ;;  %v4460_v22 = vld [vmem:[%s4815_s13 + $0x90] sm:$0xff] }
 0x234   : > { %v1095_v59 = vpack.c.bf16 %v5562_v50, %v5574_v23  ;;  %v5594_v45 = vsel %vm1048_vm14, %v4952_v51, %v4460_v22  ;;  %v4465_v22 = vld [vmem:[%s4815_s13 + $0x30] sm:$0xff] }
 0x235   : > { %v1009_v24 = vpop.permute.xlu1 %1008  ;;  %v5556_v15 = vpop.permute.xlu0 %707  ;;  %9245 = vst [vmem:[#allocation88_spill] sm:$0xff] %v5594_v45 }
 0x236   : > { %vm1049_vm8 = vcmp.eq.s32.totalorder %v1009_v24, 1 }
 0x239   : > { %v690_v3 = vpop.permute.xlu1 %689  ;;  %v5558_v29 = vpop.permute.xlu0 %1020 }
 0x23a   : > { %vm734_vm10 = vcmp.eq.s32.totalorder %v690_v3, 1  ;;  %v5582_v3 = vsel %vm1049_vm8, %v4966_v61, %v4457_v41  ;;  %v5598_v61 = vld [vmem:[#allocation2 + $0x38] sm:$0xff]   ;;  %v4462_v41 = vld [vmem:[#allocation2 + $0x30] sm:$0xff]  }
 0x23b   : > { %v5570_v47 = vsel %vm734_vm10, %v4976_v9, %v4455_v55  ;;  %v4458_v9 = vld [vmem:[%s4815_s13 + $0x80] sm:$0xff]  ;;  %v4459_v55 = vld [vmem:[%s4815_s13 + $0x88] sm:$0xff] }
 0x23c   : > { %9243 = vst [vmem:[#allocation86_spill] sm:$0xff] %v5570_v47  ;;  %v1094_v57 = vpack.c.bf16 %v5570_v47, %v5566_v35  ;;  %v5586_v49 = vsel %vm1046_vm13, %v4970_v6, %v4458_v9  ;;  %v1536_v6 = vpack.c.bf16 %v5582_v3, %v5594_v45  ;;  %vm740_vm13 = vcmp.eq.s32.totalorder %v5556_v15, 1  ;;  %v4466_v45 = vld [vmem:[%s4815_s13 + $0x28] sm:$0xff] }
 0x23d   : > { %v1003_v43 = vpop.permute.xlu1 %1002  ;;  %v702_v24 = vpop.permute.xlu0 %701 }
 0x23e   : > { %vm1047_vm10 = vcmp.eq.s32.totalorder %v1003_v43, 1  ;;  %3946 = vmatprep.mubr.bf16.mxu0 %v1094_v57  ;;  %vm738_vm12 = vcmp.eq.s32.totalorder %v702_v24, 1  ;;  %v4467_v24 = vld [vmem:[%s4815_s13 + $0x20] sm:$0xff] }
 0x23f   : > { %v5590_v7 = vsel %vm1047_vm10, %v4986_v18, %v4459_v55  ;;  %3947 = vmatmul.mubr.bf16.vlgmr.msra.gmra.mxu0 %v1095_v59  ;;  %v4463_v59 = vld [vmem:[#allocation2 + $0x28] sm:$0xff]   ;;  %v4464_v55 = vld [vmem:[#allocation2 + $0x20] sm:$0xff]  }
 0x240   : > { %9244 = vst [vmem:[#allocation87_spill] sm:$0xff] %v5590_v7  ;;  %v1535_v47 = vpack.c.bf16 %v5590_v7, %v5586_v49  ;;  %3995 = vmatpush3.bf16.msra.mxu0 %v5598_v61 }
 0x241   : > { %v705_v57 = vpop.permute.xlu1 %704  ;;  %v1015_v43 = vpop.permute.xlu0 %1014  ;;  %3996 = vmatprep.subr.bf16.mxu0 %v4462_v41 }
 0x242   : > { %3978 = vmatprep.mubr.bf16.mxu1 %v1535_v47  ;;  %vm739_vm8 = vcmp.eq.s32.totalorder %v705_v57, 1  ;;  %v5615_v57 = vsel %vm738_vm12, %v5018_v38, %v4466_v45  ;;  %vm1051_vm10 = vcmp.eq.s32.totalorder %v1015_v43, 1  ;;  %v4474_v43 = vld [vmem:[#allocation2 + $0x10] sm:$0xff]  }
 0x243   : > { %3979 = vmatmul.mubr.bf16.vlgmr.msra.gmra.mxu1 %v1536_v6  ;;  %v5611_v6 = vsel %vm739_vm8, %v4980_v11, %v4465_v22  ;;  %9247 = vst [vmem:[#allocation90_spill] sm:$0xff] %v5615_v57  ;;  %vm1053_vm8 = vcmp.eq.s32.totalorder %v5558_v29, 1  ;;  %v4475_v29 = vld [vmem:[#allocation2 + $0x8] sm:$0xff]  }
 0x244   : > { %3997 = vmatpush3.bf16.msra.mxu0 %v4462_v41  ;;  %4027 = vmatpush3.bf16.msra.mxu1 %v5598_v61  ;;  %9246 = vst [vmem:[#allocation89_spill] sm:$0xff] %v5611_v6 }
 0x245   : > { %v1018_v51 = vpop.permute.xlu1 %1017  ;;  %v5604_v18 = vpop.permute.xlu0 %719  ;;  %3998 = vmatprep.subr.bf16.mxu0 %v4463_v59  ;;  %4028 = vmatprep.subr.bf16.mxu1 %v4462_v41 }
 0x246   : > { %vm1052_vm14 = vcmp.eq.s32.totalorder %v1018_v51, 1 }
 0x248   : > { %3999 = vmatpush3.bf16.msra.mxu0 %v4463_v59  ;;  %4029 = vmatpush3.bf16.msra.mxu1 %v4462_v41  ;;  %v4468_v41 = vld [vmem:[%s4815_s13 + $0x38] sm:$0xff] }
 0x249   : > { %v699_v47 = vpop.permute.xlu1 %698  ;;  %v5607_v9 = vpop.permute.xlu0 %1032  ;;  %4000 = vmatprep.subr.bf16.mxu0 %v4464_v55  ;;  %4030 = vmatprep.subr.bf16.mxu1 %v4463_v59  ;;  %v5623_v7 = vsel %vm740_vm13, %v4994_v20, %v4468_v41  ;;  %v4470_v20 = vld [vmem:[%s4815_s13 + $0xb0] sm:$0xff]  ;;  %v4472_v41 = vld [vmem:[%s4815_s13 + $0xa0] sm:$0xff] }
 0x24a   : > { %vm737_vm15 = vcmp.eq.s32.totalorder %v699_v47, 1  ;;  %v4469_v47 = vld [vmem:[#allocation2 + $0x18] sm:$0xff]   ;;  %v5633_v22 = vsel %vm1052_vm14, %v4989_v12, %v4470_v20  ;;  %vm744_vm14 = vcmp.eq.s32.totalorder %v5604_v18, 1 }
 0x24b   : > { %v5619_v15 = vsel %vm737_vm15, %v5001_v26, %v4467_v24  ;;  %v1097_v26 = vpack.c.bf16 %v5623_v7, %v5611_v6  ;;  %9249 = vst [vmem:[#allocation92_spill] sm:$0xff] %v5633_v22  ;;  %v4471_v24 = vld [vmem:[%s4815_s13 + $0xa8] sm:$0xff]  ;;  %v4473_v6 = vld [vmem:[%s4815_s13 + $0xb8] sm:$0xff] }
 0x24c   : > { %9248 = vst [vmem:[#allocation91_spill] sm:$0xff] %v5619_v15  ;;  %v1096_v11 = vpack.c.bf16 %v5615_v57, %v5619_v15  ;;  %4001 = vmatpush3.bf16.msra.mxu0 %v4464_v55  ;;  %4031 = vmatpush3.bf16.msra.mxu1 %v4463_v59  ;;  %v5638_v59 = vsel %vm1051_vm10, %v5021_v42, %v4471_v24  ;;  %v4480_v18 = vld [vmem:[%s4815_s13 + $0x58] sm:$0xff] }
 0x24d   : > { %v1012_v38 = vpop.permute.xlu1 %1011  ;;  %v714_v45 = vpop.permute.xlu0 %713  ;;  %4002 = vmatprep.subr.bf16.mxu0 %v4469_v47  ;;  %4032 = vmatprep.subr.bf16.mxu1 %v4464_v55  ;;  %9250 = vst [vmem:[#allocation93_spill] sm:$0xff] %v5638_v59  ;;  %v5648_v15 = vsel %vm1053_vm8, %v5008_v30, %v4473_v6 }
 0x24e   : > { %vm1050_vm12 = vcmp.eq.s32.totalorder %v1012_v38, 1  ;;  %3950 = vmatprep.mubr.bf16.mxu0 %v1096_v11  ;;  %v1538_v42 = vpack.c.bf16 %v5648_v15, %v5633_v22  ;;  %vm742_vm15 = vcmp.eq.s32.totalorder %v714_v45, 1  ;;  %v4476_v11 = vld [vmem:[#allocation2] sm:$0xff]   ;;  %v4477_v38 = vld [vmem:[%s4815_s13 + $0x50] sm:$0xff] }
 0x24f   : > { %v5642_v57 = vsel %vm1050_vm12, %v5011_v34, %v4472_v41  ;;  %3951 = vmatmul.mubr.bf16.gmra.mxu0 %v1097_v26  ;;  %v4479_v45 = vld [vmem:[%s4815_s13 + $0x40] sm:$0xff]  ;;  %v5669_v41 = vsel %vm744_vm14, %v5038_v56, %v4480_v18  ;;  %v4481_v56 = vld [vmem:[%s4815_s13 + $0xd0] sm:$0xff] }
 0x250   : > { %9251 = vst [vmem:[#allocation94_spill] sm:$0xff] %v5642_v57  ;;  %v1537_v12 = vpack.c.bf16 %v5638_v59, %v5642_v57  ;;  %4003 = vmatpush3.bf16.msra.mxu0 %v4469_v47  ;;  %4033 = vmatpush3.bf16.msra.mxu1 %v4464_v55  ;;  %9255 = vst [vmem:[#allocation98_spill] sm:$0xff] %v5669_v41 }
 0x251   : > { %v717_v51 = vpop.permute.xlu1 %716  ;;  %4004 = vmatprep.subr.bf16.mxu0 %v4474_v43  ;;  %4034 = vmatprep.subr.bf16.mxu1 %v4469_v47  ;;  %v1027_v34 = vpop.permute.xlu0 %1026 }
 0x252   : > { %3982 = vmatprep.mubr.bf16.mxu1 %v1537_v12  ;;  %vm743_vm13 = vcmp.eq.s32.totalorder %v717_v51, 1  ;;  %vm1055_vm12 = vcmp.eq.s32.totalorder %v1027_v34, 1 }
 0x253   : > { %3983 = vmatmul.mubr.bf16.gmra.mxu1 %v1538_v42  ;;  %v5657_v26 = vsel %vm743_vm13, %v5028_v46, %v4477_v38  ;;  %vm1057_vm13 = vcmp.eq.s32.totalorder %v5607_v9, 1  ;;  %v4482_v42 = vld [vmem:[%s4815_s13 + $0xc8] sm:$0xff] }
 0x254   : > { %4005 = vmatpush3.bf16.msra.mxu0 %v4474_v43  ;;  %4035 = vmatpush3.bf16.msra.mxu1 %v4469_v47  ;;  %9252 = vst [vmem:[#allocation95_spill] sm:$0xff] %v5657_v26  ;;  %v4478_v47 = vld [vmem:[%s4815_s13 + $0x48] sm:$0xff] }
 0x255   : > { %v1030_v30 = vpop.permute.xlu1 %1029  ;;  %4006 = vmatprep.subr.bf16.mxu0 %v4475_v29  ;;  %4036 = vmatprep.subr.bf16.mxu1 %v4474_v43  ;;  %v732_v55 = vpop.permute.xlu0 %731  ;;  %v5661_v20 = vsel %vm742_vm15, %v5058_v16, %v4478_v47  ;;  %v4484_v47 = vld [vmem:[%s4815_s13 + $0xd8] sm:$0xff] }
 0x256   : > { %9253 = vst [vmem:[#allocation96_spill] sm:$0xff] %v5661_v20  ;;  %vm1056_vm8 = vcmp.eq.s32.totalorder %v1030_v30, 1 }
 0x257   : > { %v5680_v51 = vsel %vm1056_vm8, %v5031_v52, %v4481_v56  ;;  %vm748_vm8 = vcmp.eq.s32.totalorder %v732_v55, 1  ;;  %v9263_v56 = vld [vmem:[#allocation11_spill] sm:$0xff] }
 0x258   : > { %4007 = vmatpush3.bf16.msra.mxu0 %v4475_v29  ;;  %4037 = vmatpush3.bf16.msra.mxu1 %v4474_v43  ;;  %9256 = vst [vmem:[#allocation99_spill] sm:$0xff] %v5680_v51  ;;  %v9257_v43 = vld [vmem:[#allocation10_spill] sm:$0xff] }
 0x259   : > { %v711_v6 = vpop.permute.xlu1 %710  ;;  %4008 = vmatprep.subr.bf16.mxu0 %v4476_v11  ;;  %4038 = vmatprep.subr.bf16.mxu1 %v4475_v29  ;;  %v5684_v34 = vsel %vm1055_vm12, %v9257_v43, %v4482_v42  ;;  %v9265_v43 = vld [vmem:[#allocation20_spill] sm:$0xff] }
 0x25a   : > { %vm741_vm10 = vcmp.eq.s32.totalorder %v711_v6, 1  ;;  %9258 = vst [vmem:[#allocation10_spill] sm:$0xff] %v5684_v34  ;;  %v9259_v6 = vld [vmem:[#allocation9_spill] sm:$0xff] }
 0x25b   : > { %v5665_v24 = vsel %vm741_vm10, %v5041_v62, %v4479_v45  ;;  %v1099_v62 = vpack.c.bf16 %v5669_v41, %v5657_v26  ;;  %v9261_v45 = vld [vmem:[#allocation8_spill] sm:$0xff] }
 0x25c   : > { %9254 = vst [vmem:[#allocation97_spill] sm:$0xff] %v5665_v24  ;;  %v1098_v46 = vpack.c.bf16 %v5661_v20, %v5665_v24  ;;  %4009 = vmatpush3.bf16.msra.mxu0 %v4476_v11  ;;  %4039 = vmatpush3.bf16.msra.mxu1 %v4475_v29  ;;  %v4483_v29 = vld [vmem:[%s4815_s13 + $0xc0] sm:$0xff]  ;;  %v5694_v18 = vsel %vm1057_vm13, %v9261_v45, %v4484_v47  ;;  %v4488_v45 = vld [vmem:[%s4815_s13 + $0x78] sm:$0xff] }
 0x25d   : > { %v1024_v16 = vpop.permute.xlu1 %1023  ;;  %v726_v12 = vpop.permute.xlu0 %725  ;;  %4040 = vmatprep.subr.bf16.mxu1 %v4476_v11  ;;  %4058 = vmatprep.subr.bf16.mxu0 %v5598_v61  ;;  %9262 = vst [vmem:[#allocation8_spill] sm:$0xff] %v5694_v18 }
 0x25e   : > { %vm1054_vm15 = vcmp.eq.s32.totalorder %v1024_v16, 1  ;;  %3954 = vmatprep.mubr.bf16.mxu0 %v1098_v46  ;;  %v1540_v46 = vpack.c.bf16 %v5694_v18, %v5680_v51  ;;  %vm746_vm10 = vcmp.eq.s32.totalorder %v726_v12, 1 }
 0x25f   : > { %v5688_v38 = vsel %vm1054_vm15, %v9259_v6, %v4483_v29  ;;  %3955 = vmatmul.mubr.bf16.gmra.mxu0 %v1099_v62  ;;  %v4485_v62 = vld [vmem:[%s4815_s13 + $0x70] sm:$0xff]  ;;  %v4487_v6 = vld [vmem:[%s4815_s13 + $0x60] sm:$0xff] }
 0x260   : > { %9260 = vst [vmem:[#allocation9_spill] sm:$0xff] %v5688_v38  ;;  %v1539_v52 = vpack.c.bf16 %v5684_v34, %v5688_v38  ;;  %4041 = vmatpush3.bf16.msra.mxu1 %v4476_v11  ;;  %v4486_v11 = vld [vmem:[%s4815_s13 + $0x68] sm:$0xff] }
 0x261   : > { %v729_v30 = vpop.permute.xlu1 %728  ;;  %4090 = vmatprep.subr.bf16.mxu1 %v5598_v61  ;;  %v1039_v16 = vpop.permute.xlu0 %1038  ;;  %v5707_v29 = vsel %vm746_vm10, %v9265_v43, %v4486_v11  ;;  %v9267_v61 = vld [vmem:[#allocation17_spill] sm:$0xff]  ;;  %v4490_v43 = vld [vmem:[%s4815_s13 + $0xe0] sm:$0xff] }
 0x262   : > { %3986 = vmatprep.mubr.bf16.mxu1 %v1539_v52  ;;  %vm747_vm14 = vcmp.eq.s32.totalorder %v729_v30, 1  ;;  %9266 = vst [vmem:[#allocation20_spill] sm:$0xff] %v5707_v29  ;;  %v9269_v52 = vld [vmem:[#allocation14_spill] sm:$0xff]  ;;  %vm1059_vm13 = vcmp.eq.s32.totalorder %v1039_v16, 1 }
 0x263   : > { %3987 = vmatmul.mubr.bf16.gmra.mxu1 %v1540_v46  ;;  %v5703_v42 = vsel %vm747_vm14, %v9263_v56, %v4485_v62  ;;  %v5715_v12 = vsel %vm748_vm8, %v9269_v52, %v4488_v45  ;;  %v4489_v62 = vld [vmem:[%s4815_s13 + $0xe8] sm:$0xff]  ;;  %v9271_v56 = vld [vmem:[#allocation22_spill] sm:$0xff]  ;;  %v4491_v52 = vld [vmem:[%s4815_s13 + $0xf8] sm:$0xff]  ;;  %vm9371_vm8 = vnez %v9218_v21 }
 0x264   : > { %9264 = vst [vmem:[#allocation11_spill] sm:$0xff] %v5703_v42  ;;  %9270 = vst [vmem:[#allocation14_spill] sm:$0xff] %v5715_v12  ;;  %v5723_v11 = vsel %vm1059_vm13, %v9271_v56, %v4489_v62  ;;  %v9379_v21 = vld [vmem:[#allocation79_spill] sm:$0xff] }
 0x265   : > { %v723_v9 = vpop.permute.xlu1 %722  ;;  %v1045_v30 = vpop.permute.xlu0 %1044  ;;  %9272 = vst [vmem:[#allocation22_spill] sm:$0xff] %v5723_v11  ;;  %vm9380_vm13 = vnez %v9379_v21  ;;  %v9388_v21 = vld [vmem:[#allocation73_spill] sm:$0xff] }
 0x266   : > { %vm745_vm12 = vcmp.eq.s32.totalorder %v723_v9, 1  ;;  %v1101_v9 = vpack.c.bf16 %v5715_v12, %v5703_v42  ;;  %vm1061_vm14 = vcmp.eq.s32.totalorder %v1045_v30, 1  ;;  %v9275_v42 = vld [vmem:[#allocation18_spill] sm:$0xff]  ;;  %v5744_v30 = vld [vmem:[%s8620_s2] ss:$0 sm:$0xff] }
 0x267   : > { %v5711_v47 = vsel %vm745_vm12, %v9267_v61, %v4487_v6  ;;  %v9273_v6 = vld [vmem:[#allocation19_spill] sm:$0xff] }
 0x268   : > { %9268 = vst [vmem:[#allocation17_spill] sm:$0xff] %v5711_v47  ;;  %v1100_v55 = vpack.c.bf16 %v5707_v29, %v5711_v47  ;;  %v9277_v29 = vld [vmem:[#allocation13_spill] sm:$0xff] }
 0x269   : > { %v1036_v46 = vpop.permute.xlu1 %1035 }
 0x26a   : > { %vm1058_vm15 = vcmp.eq.s32.totalorder %v1036_v46, 1  ;;  %3958 = vmatprep.mubr.bf16.mxu0 %v1100_v55  ;;  %v5733_v46 = vsel %vm1061_vm14, %v9275_v42, %v4491_v52  ;;  %v4492_v55 = vld [vmem:[%s4815_s13 + $0xf0] sm:$0xff]  ;;  %vm9389_vm14 = vnez %v9228_v2  ;;  %s3626_s13 = sshll.u32 %s8471_s11, 4  ;;  %s8571_s13 = int_to_ptr.vmem [resolvable:$true] %s3626_s13 }
 0x26b   : > { %v5727_v61 = vsel %vm1058_vm15, %v9273_v6, %v4490_v43  ;;  %3959 = vmatmul.mubr.bf16.gmra.mxu0 %v1101_v9  ;;  %9276 = vst [vmem:[#allocation18_spill] sm:$0xff] %v5733_v46  ;;  %s4626_s23 = scalar_lea.vmem %s8571_s13, 4096 }
 0x26c   : > { %9274 = vst [vmem:[#allocation19_spill] sm:$0xff] %v5727_v61  ;;  %v1541_v16 = vpack.c.bf16 %v5723_v11, %v5727_v61  ;;  %p4627_p6 = scmp.ne.s32.totalorder %s8571_s13, %s4626_s23 }
 0x26d   : > { %v1042_v45 = vpop.permute.xlu1 %1041 }
 0x26e   : > { %vm1060_vm10 = vcmp.eq.s32.totalorder %v1042_v45, 1  ;;  %3990 = vmatprep.mubr.bf16.mxu1 %v1541_v16  ;;  %p4628_p9 = pnand %p4627_p6, %p4766_p5 }
 0x26f   : > { %v5737_v62 = vsel %vm1060_vm10, %v9277_v29, %v4492_v55 }
 0x270   : > { %9278 = vst [vmem:[#allocation13_spill] sm:$0xff] %v5737_v62  ;;  %v1542_v56 = vpack.c.bf16 %v5733_v46, %v5737_v62  ;;  %p4629_p10 = pneg %p4628_p9 }
 0x272   : > { %3991 = vmatmul.mubr.bf16.gmra.mxu1 %v1542_v56 }
 0x2ff   : > { %v3948_v9 = vpop.f32.mrf.mxu0 }
 0x300   : > { %v1145_v43 = vadd.f32 %v5744_v30, %v3948_v9 }
 0x301   : > { %v1136_v6 = vpop.f32.mrf.mxu0 }
 0x302   : > { %4261 = vtanh.f32 %v1145_v43  ;;  %v1137_v42 = vadd.f32 %v5744_v30, %v1136_v6 }
 0x303   : > { %v3949_v16 = vpop.f32.mrf.mxu0  ;;  %v3980_v45 = vpop.f32.mrf.mxu1 }
 0x304   : > { %4263 = vtanh.f32 %v1137_v42  ;;  %v1148_v29 = vadd.f32 %v5744_v30, %v3949_v16  ;;  %v1586_v52 = vadd.f32 %v5744_v30, %v3980_v45 }
 0x305   : > { %v1577_v55 = vpop.f32.mrf.mxu1  ;;  %v1139_v56 = vpop.f32.mrf.mxu0 }
 0x306   : > { %4265 = vtanh.f32 %v1148_v29  ;;  %v1578_v46 = vadd.f32 %v5744_v30, %v1577_v55  ;;  %v1140_v43 = vadd.f32 %v5744_v30, %v1139_v56 }
 0x307   : > { %4267 = vtanh.f32 %v1586_v52  ;;  %v3981_v62 = vpop.f32.mrf.mxu1 }
 0x308   : > { %v1589_v9 = vadd.f32 %v5744_v30, %v3981_v62  ;;  %4269 = vtanh.f32 %v1578_v46 }
 0x309   : > { %v1580_v6 = vpop.f32.mrf.mxu1 }
 0x30a   : > { %4271 = vtanh.f32 %v1589_v9  ;;  %v1581_v42 = vadd.f32 %v5744_v30, %v1580_v6 }
 0x30b   : > { %4273 = vtanh.f32 %v1140_v43 }
 0x30c   : > { %4275 = vtanh.f32 %v1581_v42 }
 0x30f   : > { %v5754_v16 = vpop.eup %4261  ;;  %v3952_v45 = vpop.f32.mrf.mxu0 }
 0x310   : > { %v1161_v29 = vadd.f32 %v5744_v30, %v3952_v45  ;;  %v1217_v52 = vmul.f32 %v5754_v16, %v5754_v16 }
 0x311   : > { %v5759_v55 = vpop.eup %4263  ;;  %v1152_v62 = vpop.f32.mrf.mxu0 }
 0x312   : > { %4277 = vtanh.f32 %v1161_v29  ;;  %1235 = vadd.xlane.f32.xlu0 %v1217_v52  ;;  %v1215_v46 = vmul.f32 %v5759_v55, %v5759_v55  ;;  %v1153_v11 = vadd.f32 %v5744_v30, %v1152_v62 }
 0x313   : > { %v5763_v56 = vpop.eup %4265  ;;  %v3953_v9 = vpop.f32.mrf.mxu0 }
 0x314   : > { %v3984_v43 = vpop.f32.mrf.mxu1  ;;  %v5765_v6 = vpop.eup %4267  ;;  %v1164_v42 = vadd.f32 %v5744_v30, %v3953_v9  ;;  %1231 = vadd.xlane.f32.xlu1 %v1215_v46  ;;  %v1218_v12 = vmul.f32 %v5763_v56, %v5763_v56 }
 0x315   : > { %v1602_v45 = vadd.f32 %v5744_v30, %v3984_v43  ;;  %v1155_v61 = vpop.f32.mrf.mxu0  ;;  %v1658_v29 = vmul.f32 %v5765_v6, %v5765_v6  ;;  %v5772_v52 = vpop.eup %4269 }
 0x316   : > { %v1593_v47 = vpop.f32.mrf.mxu1  ;;  %4279 = vtanh.f32 %v1164_v42  ;;  %v1156_v46 = vadd.f32 %v5744_v30, %v1155_v61  ;;  %v1656_v42 = vmul.f32 %v5772_v52, %v5772_v52 }
 0x317   : > { %v5776_v51 = vpop.eup %4271  ;;  %4281 = vtanh.f32 %v1602_v45  ;;  %1676 = vadd.xlane.f32.xlu0 %v1658_v29  ;;  %v1594_v43 = vadd.f32 %v5744_v30, %v1593_v47 }
 0x318   : > { %v3985_v9 = vpop.f32.mrf.mxu1  ;;  %1237 = vadd.xlane.f32.xlu1 %v1218_v12  ;;  %4283 = vtanh.f32 %v1153_v11  ;;  %v5783_v38 = vpop.eup %4273  ;;  %v1659_v45 = vmul.f32 %v5776_v51, %v5776_v51 }
 0x319   : > { %v1605_v62 = vadd.f32 %v5744_v30, %v3985_v9  ;;  %v5787_v29 = vpop.eup %4275  ;;  %v1216_v47 = vmul.f32 %v5783_v38, %v5783_v38 }
 0x31a   : > { %v1596_v34 = vpop.f32.mrf.mxu1  ;;  %v1657_v12 = vmul.f32 %v5787_v29, %v5787_v29 }
 0x31b   : > { %4285 = vtanh.f32 %v1605_v62  ;;  %1672 = vadd.xlane.f32.xlu0 %v1656_v42  ;;  %v1597_v61 = vadd.f32 %v5744_v30, %v1596_v34 }
 0x31c   : > { %4287 = vtanh.f32 %v1156_v46  ;;  %1678 = vadd.xlane.f32.xlu1 %v1659_v45 }
 0x31d   : > { %4289 = vtanh.f32 %v1594_v43 }
 0x31e   : > { %4291 = vtanh.f32 %v1597_v61 }
 0x31f   : > { %v5794_v11 = vpop.eup %4277  ;;  %1233 = vadd.xlane.f32.xlu0 %v1216_v47  ;;  %v3956_v9 = vpop.f32.mrf.mxu0 }
 0x320   : > { %v1177_v62 = vadd.f32 %v5744_v30, %v3956_v9  ;;  %1674 = vadd.xlane.f32.xlu1 %v1657_v12  ;;  %v1221_v46 = vmul.f32 %v5794_v11, %v5794_v11 }
 0x321   : > { %v1168_v34 = vpop.f32.mrf.mxu0 }
 0x322   : > { %4293 = vtanh.f32 %v1177_v62  ;;  %v1169_v12 = vadd.f32 %v5744_v30, %v1168_v34 }
 0x323   : > { %v5799_v43 = vpop.eup %4279  ;;  %1243 = vadd.xlane.f32.xlu0 %v1221_v46  ;;  %v3957_v42 = vpop.f32.mrf.mxu0 }
 0x324   : > { %v3988_v45 = vpop.f32.mrf.mxu1  ;;  %v5801_v18 = vpop.eup %4281  ;;  %v1180_v26 = vadd.f32 %v5744_v30, %v3957_v42  ;;  %v1222_v61 = vmul.f32 %v5799_v43, %v5799_v43 }
 0x325   : > { %9279 = vst [vmem:[#allocation100_spill] sm:$0xff] %v5801_v18  ;;  %v1618_v47 = vadd.f32 %v5744_v30, %v3988_v45  ;;  %v1171_v9 = vpop.f32.mrf.mxu0  ;;  %v1662_v62 = vmul.f32 %v5801_v18, %v5801_v18  ;;  %v5810_v24 = vpop.eup %4283 }
 0x326   : > { %v1609_v20 = vpop.f32.mrf.mxu1  ;;  %4295 = vtanh.f32 %v1180_v26  ;;  %1245 = vadd.xlane.f32.xlu1 %v1222_v61  ;;  %v1172_v45 = vadd.f32 %v5744_v30, %v1171_v9  ;;  %v1219_v26 = vmul.f32 %v5810_v24, %v5810_v24 }
 0x327   : > { %4297 = vtanh.f32 %v1618_v47  ;;  %1684 = vadd.xlane.f32.xlu0 %v1662_v62  ;;  %v1610_v18 = vadd.f32 %v5744_v30, %v1609_v20 }
 0x328   : > { %v5812_v46 = vpop.eup %4285  ;;  %v3989_v42 = vpop.f32.mrf.mxu1  ;;  %4299 = vtanh.f32 %v1169_v12 }
 0x329   : > { %9280 = vst [vmem:[#allocation101_spill] sm:$0xff] %v5812_v46  ;;  %v1621_v41 = vadd.f32 %v5744_v30, %v3989_v42  ;;  %v1663_v34 = vmul.f32 %v5812_v46, %v5812_v46  ;;  %v5818_v22 = vpop.eup %4287 }
 0x32a   : > { %v1612_v59 = vpop.f32.mrf.mxu1  ;;  %v5823_v61 = vpop.eup %4289  ;;  %v1220_v62 = vmul.f32 %v5818_v22, %v5818_v22 }
 0x32b   : > { %9281 = vst [vmem:[#allocation102_spill] sm:$0xff] %v5823_v61  ;;  %4301 = vtanh.f32 %v1621_v41  ;;  %1686 = vadd.xlane.f32.xlu1 %v1663_v34  ;;  %1239 = vadd.xlane.f32.xlu0 %v1219_v26  ;;  %v3960_v47 = vpop.f32.mrf.mxu0  ;;  %v1613_v9 = vadd.f32 %v5744_v30, %v1612_v59  ;;  %v5828_v42 = vpop.eup %4291  ;;  %v1660_v57 = vmul.f32 %v5823_v61, %v5823_v61 }
 0x32c   : > { %4303 = vtanh.f32 %v1172_v45  ;;  %9282 = vst [vmem:[#allocation103_spill] sm:$0xff] %v5828_v42  ;;  %v1193_v20 = vadd.f32 %v5744_v30, %v3960_v47  ;;  %v1661_v45 = vmul.f32 %v5828_v42, %v5828_v42 }
 0x32d   : > { %4305 = vtanh.f32 %v1610_v18  ;;  %v1184_v12 = vpop.f32.mrf.mxu0 }
 0x32e   : > { %4307 = vtanh.f32 %v1613_v9 }
 0x32f   : > { %1241 = vadd.xlane.f32.xlu1 %v1220_v62  ;;  %v5833_v41 = vpop.eup %4293  ;;  %1680 = vadd.xlane.f32.xlu0 %v1660_v57  ;;  %v3961_v34 = vpop.f32.mrf.mxu0  ;;  %4309 = vtanh.f32 %v1193_v20  ;;  %v1185_v57 = vadd.f32 %v5744_v30, %v1184_v12 }
 0x330   : > { %9283 = vst [vmem:[#allocation104_spill] sm:$0xff] %v5833_v41  ;;  %v1196_v59 = vadd.f32 %v5744_v30, %v3961_v34  ;;  %v1225_v18 = vmul.f32 %v5833_v41, %v5833_v41 }
 0x331   : > { %v1187_v42 = vpop.f32.mrf.mxu0 }
 0x332   : > { %v3992_v26 = vpop.f32.mrf.mxu1  ;;  %4311 = vtanh.f32 %v1196_v59  ;;  %v1188_v12 = vadd.f32 %v5744_v30, %v1187_v42 }
 0x333   : > { %1682 = vadd.xlane.f32.xlu1 %v1661_v45  ;;  %v5840_v47 = vpop.eup %4295  ;;  %1251 = vadd.xlane.f32.xlu0 %v1225_v18  ;;  %v1634_v62 = vadd.f32 %v5744_v30, %v3992_v26 }
 0x334   : > { %9284 = vst [vmem:[#allocation105_spill] sm:$0xff] %v5840_v47  ;;  %v5843_v61 = vpop.eup %4297  ;;  %v1625_v9 = vpop.f32.mrf.mxu1  ;;  %v1226_v34 = vmul.f32 %v5840_v47, %v5840_v47 }
 0x335   : > { %9285 = vst [vmem:[#allocation106_spill] sm:$0xff] %v5843_v61  ;;  %4313 = vtanh.f32 %v1634_v62  ;;  %v1666_v20 = vmul.f32 %v5843_v61, %v5843_v61  ;;  %v5850_v45 = vpop.eup %4299  ;;  %v1626_v62 = vadd.f32 %v5744_v30, %v1625_v9 }
 0x336   : > { %v3993_v18 = vpop.f32.mrf.mxu1  ;;  %4315 = vtanh.f32 %v1185_v57 }
 0x337   : > { %1253 = vadd.xlane.f32.xlu1 %v1226_v34  ;;  %1692 = vadd.xlane.f32.xlu0 %v1666_v20  ;;  %v1637_v26 = vadd.f32 %v5744_v30, %v3993_v18  ;;  %v1223_v34 = vmul.f32 %v5850_v45, %v5850_v45 }
 0x338   : > { %v5852_v41 = vpop.eup %4301  ;;  %v1628_v61 = vpop.f32.mrf.mxu1 }
 0x339   : > { %9286 = vst [vmem:[#allocation107_spill] sm:$0xff] %v5852_v41  ;;  %v1667_v59 = vmul.f32 %v5852_v41, %v5852_v41  ;;  %v5858_v47 = vpop.eup %4303  ;;  %4317 = vtanh.f32 %v1637_v26  ;;  %v1629_v57 = vadd.f32 %v5744_v30, %v1628_v61 }
 0x33a   : > { %9287 = vst [vmem:[#allocation108_spill] sm:$0xff] %v5858_v47  ;;  %v5863_v46 = vpop.eup %4305  ;;  %4319 = vtanh.f32 %v1188_v12  ;;  %v1224_v42 = vmul.f32 %v5858_v47, %v5858_v47 }
 0x33b   : > { %9288 = vst [vmem:[#allocation109_spill] sm:$0xff] %v5863_v46  ;;  %1694 = vadd.xlane.f32.xlu1 %v1667_v59  ;;  %1247 = vadd.xlane.f32.xlu0 %v1223_v34  ;;  %v5868_v20 = vpop.eup %4307  ;;  %4321 = vtanh.f32 %v1626_v62  ;;  %v1664_v9 = vmul.f32 %v5863_v46, %v5863_v46 }
 0x33c   : > { %9289 = vst [vmem:[#allocation110_spill] sm:$0xff] %v5868_v20  ;;  %v5872_v18 = vpop.eup %4309  ;;  %4323 = vtanh.f32 %v1629_v57  ;;  %v1665_v26 = vmul.f32 %v5868_v20, %v5868_v20 }
 0x33d   : > { %9290 = vst [vmem:[#allocation111_spill] sm:$0xff] %v5872_v18  ;;  %v1229_v30 = vmul.f32 %v5872_v18, %v5872_v18 }
 0x33f   : > { %1249 = vadd.xlane.f32.xlu1 %v1224_v42  ;;  %1688 = vadd.xlane.f32.xlu0 %v1664_v9  ;;  %v5876_v12 = vpop.eup %4311 }
 0x340   : > { %9291 = vst [vmem:[#allocation112_spill] sm:$0xff] %v5876_v12  ;;  %v1230_v62 = vmul.f32 %v5876_v12, %v5876_v12 }
 0x342   : > { %v5880_v61 = vpop.eup %4313 }
 0x343   : > { %9292 = vst [vmem:[#allocation113_spill] sm:$0xff] %v5880_v61  ;;  %1690 = vadd.xlane.f32.xlu1 %v1665_v26  ;;  %1259 = vadd.xlane.f32.xlu0 %v1229_v30  ;;  %v1670_v59 = vmul.f32 %v5880_v61, %v5880_v61  ;;  %v5886_v34 = vpop.eup %4315 }
 0x344   : > { %9293 = vst [vmem:[#allocation114_spill] sm:$0xff] %v5886_v34  ;;  %v1227_v26 = vmul.f32 %v5886_v34, %v5886_v34  ;;  %v9298_v34 = vld [vmem:[#allocation21_spill] sm:$0xff] }
 0x346   : > { %v5888_v57 = vpop.eup %4317 }
 0x347   : > { %9294 = vst [vmem:[#allocation115_spill] sm:$0xff] %v5888_v57  ;;  %1261 = vadd.xlane.f32.xlu1 %v1230_v62  ;;  %1700 = vadd.xlane.f32.xlu0 %v1670_v59  ;;  %v1671_v42 = vmul.f32 %v5888_v57, %v5888_v57  ;;  %v5892_v9 = vpop.eup %4319  ;;  %v4696_v57 = vmov 1  }
 0x348   : > { %9295 = vst [vmem:[#allocation116_spill] sm:$0xff] %v5892_v9  ;;  %v5896_v30 = vpop.eup %4321  ;;  %v1228_v61 = vmul.f32 %v5892_v9, %v5892_v9  ;;  %4183 = vset.pattern.permute.xlu0 %v4696_v57  ;;  %4184 = vset.pattern.permute.xlu1 %v4696_v57 }
 0x349   : > { %9296 = vst [vmem:[#allocation117_spill] sm:$0xff] %v5896_v30  ;;  %v5900_v18 = vpop.eup %4323  ;;  %v1668_v59 = vmul.f32 %v5896_v30, %v5896_v30 }
 0x34a   : > { %9297 = vst [vmem:[#allocation118_spill] sm:$0xff] %v5900_v18  ;;  %v1669_v62 = vmul.f32 %v5900_v18, %v5900_v18 }
 0x34b   : > { %1702 = vadd.xlane.f32.xlu1 %v1671_v42  ;;  %1255 = vadd.xlane.f32.xlu0 %v1227_v26  ;;  %v9299_v42 = vld [vmem:[#allocation39_spill] sm:$0xff] }
 0x34c   : > { %v5910_v12 = vsel %vm5177_vm0, %v9299_v42, %v9298_v34  ;;  %v9306_v34 = vld [vmem:[#allocation24_spill] sm:$0xff]  ;;  %v9307_v42 = vld [vmem:[#allocation41_spill] sm:$0xff]  ;;  %vm9333_vm0 = vnez %v9186_v39 }
 0x34d   : > { %v5931_v46 = vsel %vm5191_vm1, %v9307_v42, %v9306_v34  ;;  %v9314_v34 = vld [vmem:[#allocation15_spill] sm:$0xff]  ;;  %v9315_v42 = vld [vmem:[#allocation48_spill] sm:$0xff]  ;;  %v9340_v39 = vld [vmem:[#allocation57_spill] sm:$0xff] }
 0x34f   : > { %1257 = vadd.xlane.f32.xlu1 %v1228_v61  ;;  %1696 = vadd.xlane.f32.xlu0 %v1668_v59  ;;  %v9302_v61 = vld [vmem:[#allocation12_spill] sm:$0xff]  ;;  %v9303_v59 = vld [vmem:[#allocation45_spill] sm:$0xff] }
 0x350   : > { %v5920_v18 = vsel %vm5205_vm2, %v9303_v59, %v9302_v61  ;;  %v9310_v61 = vld [vmem:[#allocation23_spill] sm:$0xff]  ;;  %v9311_v59 = vld [vmem:[#allocation42_spill] sm:$0xff]  ;;  %vm9341_vm2 = vnez %v9192_v44  ;;  %v9348_v44 = vld [vmem:[#allocation60_spill] sm:$0xff] }
 0x353   : > { %1698 = vadd.xlane.f32.xlu1 %v1669_v62 }
 0x39b   : > { %v5912_v9 = vpop.xlane.xlu0 %1235 }
 0x39c   : > { %9301 = vst [vmem:[#allocation21_spill] sm:$0xff] %v5912_v9  ;;  %v1265_v30 = vsub.f32 %v5910_v12, %v5912_v9 }
 0x39d   : > { %v5922_v62 = vpop.xlane.xlu1 %1231 }
 0x39e   : > { %9305 = vst [vmem:[#allocation39_spill] sm:$0xff] %v5922_v62  ;;  %v1263_v57 = vsub.f32 %v5920_v18, %v5922_v62  ;;  %1299 = vrot.lane.b32.xlu1 %v1265_v30, %s4697_s30  ;;  %v5942_v62 = vsel %vm5235_vm4, %v9311_v59, %v9310_v61  ;;  %v9318_v61 = vld [vmem:[#allocation25_spill] sm:$0xff]  ;;  %v9319_v59 = vld [vmem:[#allocation44_spill] sm:$0xff]  ;;  %vm9349_vm4 = vnez %v9199_v48 }
 0x3a0   : > { %v5933_v9 = vpop.xlane.xlu0 %1676  ;;  %1295 = vrot.lane.b32.xlu0 %v1263_v57, %s4697_s30  ;;  %v5953_v57 = vsel %vm5222_vm3, %v9315_v42, %v9314_v34  ;;  %v9321_v34 = vld [vmem:[#allocation16_spill] sm:$0xff]  ;;  %v9322_v42 = vld [vmem:[#allocation47_spill] sm:$0xff] }
 0x3a1   : > { %9309 = vst [vmem:[#allocation40_spill] sm:$0xff] %v5933_v9  ;;  %v1706_v20 = vsub.f32 %v5931_v46, %v5933_v9  ;;  %v5944_v30 = vpop.xlane.xlu1 %1237 }
 0x3a2   : > { %9313 = vst [vmem:[#allocation12_spill] sm:$0xff] %v5944_v30  ;;  %v1266_v26 = vsub.f32 %v5942_v62, %v5944_v30  ;;  %v5964_v30 = vsel %vm5252_vm5, %v9319_v59, %v9318_v61  ;;  %v9324_v61 = vld [vmem:[#allocation50_spill] sm:$0xff] }
 0x3a3   : > { %1740 = vrot.lane.b32.xlu1 %v1706_v20, %s4697_s30  ;;  %v5986_v59 = vsel %vm5300_vm9, %v9324_v61, %v5091_v37  ;;  %v9329_v61 = vld [vmem:[#allocation53_spill] sm:$0xff]  ;;  %vm9364_vm9 = vnez %v9212_v31  ;;  %v6129_v31 = vsel %vm9371_vm8, %v5359_v10, %v5133_v13  ;;  %v9378_v10 = vld [vmem:[#allocation70_spill] sm:$0xff] }
 0x3a4   : > { %v5955_v9 = vpop.xlane.xlu0 %1672  ;;  %1301 = vrot.lane.b32.xlu0 %v1266_v26, %s4697_s30  ;;  %v5975_v26 = vsel %vm5276_vm7, %v9322_v42, %v9321_v34  ;;  %v9326_v34 = vld [vmem:[#allocation51_spill] sm:$0xff] }
 0x3a5   : > { %9317 = vst [vmem:[#allocation45_spill] sm:$0xff] %v5955_v9  ;;  %v1704_v41 = vsub.f32 %v5953_v57, %v5955_v9  ;;  %v5966_v20 = vpop.xlane.xlu1 %1678 }
 0x3a6   : > { %9320 = vst [vmem:[#allocation46_spill] sm:$0xff] %v5966_v20  ;;  %v1707_v47 = vsub.f32 %v5964_v30, %v5966_v20  ;;  %v6296_v20 = vld [vmem:[%s5168_s27 + $0x80] sm:$0xff] }
 0x3a7   : > { %1736 = vrot.lane.b32.xlu1 %v1704_v41, %s4697_s30 }
 0x3a8   : > { %v5977_v9 = vpop.xlane.xlu0 %1233  ;;  %1742 = vrot.lane.b32.xlu0 %v1707_v47, %s4697_s30  ;;  %v5997_v47 = vsel %vm5324_vm11, %v9326_v34, %v5125_v4 }
 0x3a9   : > { %9323 = vst [vmem:[#allocation24_spill] sm:$0xff] %v5977_v9  ;;  %v1264_v0 = vsub.f32 %v5975_v26, %v5977_v9  ;;  %v5988_v41 = vpop.xlane.xlu1 %1674 }
 0x3aa   : > { %9325 = vst [vmem:[#allocation41_spill] sm:$0xff] %v5988_v41  ;;  %v1705_v53 = vsub.f32 %v5986_v59, %v5988_v41  ;;  %v9335_v41 = vld [vmem:[#allocation29_spill] sm:$0xff] }
 0x3ab   : > { %1297 = vrot.lane.b32.xlu1 %v1264_v0, %s4697_s30  ;;  %v6009_v0 = vsel %vm5257_vm6, %v9329_v61, %v9328_v32  ;;  %v9336_v32 = vld [vmem:[#allocation56_spill] sm:$0xff]  ;;  %v9337_v61 = vld [vmem:[#allocation58_spill] sm:$0xff]  ;;  %vm9356_vm6 = vnez %v9206_v36 }
 0x3ac   : > { %v5999_v42 = vpop.xlane.xlu0 %1243  ;;  %1738 = vrot.lane.b32.xlu0 %v1705_v53, %s4697_s30  ;;  %v6019_v53 = vsel %vm9333_vm0, %v9332_v5, %v5129_v8  ;;  %vm9338_vm1 = vnez %v9337_v61  ;;  %v6041_v5 = vsel %vm9341_vm2, %v9340_v39, %v5117_v58  ;;  %v9345_v61 = vld [vmem:[#allocation61_spill] sm:$0xff]  ;;  %v6063_v39 = vsel %vm9349_vm4, %v9348_v44, %v5121_v63 }
 0x3ad   : > { %9327 = vst [vmem:[#allocation43_spill] sm:$0xff] %v5999_v42  ;;  %v1269_v37 = vsub.f32 %v5997_v47, %v5999_v42  ;;  %vm9346_vm3 = vnez %v9345_v61  ;;  %v9353_v61 = vld [vmem:[#allocation63_spill] sm:$0xff]  ;;  %v6085_v48 = vsel %vm9356_vm6, %v5311_v25, %v5141_v19  ;;  %v9363_v19 = vld [vmem:[#allocation65_spill] sm:$0xff]  ;;  %vm9396_vm0 = vnez %v9242_v1 }
 0x3ae   : > { %vm9354_vm5 = vnez %v9353_v61  ;;  %v6107_v36 = vsel %vm9364_vm9, %v9363_v19, %v5145_v27  ;;  %v6193_v2 = vsel %vm9396_vm0, %v5446_v60, %v5161_v54 }
 0x3af   : > { %1307 = vrot.lane.b32.xlu1 %v1269_v37, %s4697_s30  ;;  %v6011_v9 = vpop.xlane.xlu1 %1245 }
 0x3b0   : > { %9331 = vst [vmem:[#allocation23_spill] sm:$0xff] %v6011_v9  ;;  %v1270_v4 = vsub.f32 %v6009_v0, %v6011_v9  ;;  %v6021_v34 = vpop.xlane.xlu0 %1684  ;;  %v6031_v9 = vsel %vm9338_vm1, %v9336_v32, %v9335_v41  ;;  %v9343_v41 = vld [vmem:[#allocation26_spill] sm:$0xff]  ;;  %v9344_v32 = vld [vmem:[#allocation59_spill] sm:$0xff]  ;;  %vm9399_vm1 = vnez %v9237_v14 }
 0x3b1   : > { %9334 = vst [vmem:[#allocation42_spill] sm:$0xff] %v6021_v34  ;;  %v1710_v37 = vsub.f32 %v6019_v53, %v6021_v34  ;;  %v6209_v54 = vsel %vm9399_vm1, %v5470_v28, %v5149_v33  ;;  %v9406_v14 = vld [vmem:[#allocation82_spill] sm:$0xff]  ;;  %v9407_v28 = vld [vmem:[#allocation85_spill] sm:$0xff] }
 0x3b2   : > { %1309 = vrot.lane.b32.xlu0 %v1270_v4, %s4697_s30 }
 0x3b3   : > { %1748 = vrot.lane.b32.xlu1 %v1710_v37, %s4697_s30 }
 0x3b4   : > { %v6033_v42 = vpop.xlane.xlu1 %1686  ;;  %v6043_v4 = vpop.xlane.xlu0 %1239 }
 0x3b5   : > { %9339 = vst [vmem:[#allocation52_spill] sm:$0xff] %v6033_v42  ;;  %v1711_v8 = vsub.f32 %v6031_v9, %v6033_v42  ;;  %9342 = vst [vmem:[#allocation15_spill] sm:$0xff] %v6043_v4  ;;  %v1267_v37 = vsub.f32 %v6041_v5, %v6043_v4  ;;  %v6053_v42 = vsel %vm9346_vm3, %v9344_v32, %v9343_v41  ;;  %v9351_v41 = vld [vmem:[#allocation27_spill] sm:$0xff]  ;;  %v9352_v32 = vld [vmem:[#allocation62_spill] sm:$0xff]  ;;  %vm9408_vm3 = vnez %v9407_v28 }
 0x3b6   : > { %v6228_v33 = vsel %vm9408_vm3, %v9406_v14, %v5153_v40 }
 0x3b7   : > { %1750 = vrot.lane.b32.xlu0 %v1711_v8, %s4697_s30  ;;  %1303 = vrot.lane.b32.xlu1 %v1267_v37, %s4697_s30 }
 0x3b8   : > { %v6055_v34 = vpop.xlane.xlu1 %1241  ;;  %v6065_v8 = vpop.xlane.xlu0 %1680 }
 0x3b9   : > { %9347 = vst [vmem:[#allocation48_spill] sm:$0xff] %v6055_v34  ;;  %v1268_v58 = vsub.f32 %v6053_v42, %v6055_v34  ;;  %9350 = vst [vmem:[#allocation49_spill] sm:$0xff] %v6065_v8  ;;  %v1708_v37 = vsub.f32 %v6063_v39, %v6065_v8  ;;  %v6075_v34 = vsel %vm9354_vm5, %v9352_v32, %v9351_v41  ;;  %v9359_v41 = vld [vmem:[#allocation64_spill] sm:$0xff]  ;;  %v9360_v32 = vld [vmem:[#allocation66_spill] sm:$0xff] }
 0x3ba   : > { %vm9361_vm7 = vnez %v9360_v32  ;;  %v9368_v32 = vld [vmem:[#allocation68_spill] sm:$0xff] }
 0x3bb   : > { %1305 = vrot.lane.b32.xlu0 %v1268_v58, %s4697_s30  ;;  %1744 = vrot.lane.b32.xlu1 %v1708_v37, %s4697_s30  ;;  %v9358_v37 = vld [vmem:[#allocation32_spill] sm:$0xff]  ;;  %vm9369_vm11 = vnez %v9368_v32 }
 0x3bc   : > { %v6077_v4 = vpop.xlane.xlu1 %1682  ;;  %v6087_v58 = vpop.xlane.xlu0 %1251  ;;  %v6097_v61 = vsel %vm9361_vm7, %v9359_v41, %v9358_v37  ;;  %v9366_v37 = vld [vmem:[#allocation33_spill] sm:$0xff]  ;;  %v9367_v41 = vld [vmem:[#allocation67_spill] sm:$0xff] }
 0x3bd   : > { %9355 = vst [vmem:[#allocation25_spill] sm:$0xff] %v6077_v4  ;;  %v1709_v63 = vsub.f32 %v6075_v34, %v6077_v4  ;;  %9357 = vst [vmem:[#allocation44_spill] sm:$0xff] %v6087_v58  ;;  %v1273_v44 = vsub.f32 %v6085_v48, %v6087_v58 }
 0x3be   : > { %9428 = vst [vmem:[#allocation33_spill] sm:$0xff] %v6296_v20 }
 0x3bf   : > { %1746 = vrot.lane.b32.xlu0 %v1709_v63, %s4697_s30  ;;  %1315 = vrot.lane.b32.xlu1 %v1273_v44, %s4697_s30 }
 0x3c0   : > { %v6099_v4 = vpop.xlane.xlu1 %1253  ;;  %v6109_v63 = vpop.xlane.xlu0 %1692 }
 0x3c1   : > { %9362 = vst [vmem:[#allocation16_spill] sm:$0xff] %v6099_v4  ;;  %v1274_v25 = vsub.f32 %v6097_v61, %v6099_v4  ;;  %9365 = vst [vmem:[#allocation47_spill] sm:$0xff] %v6109_v63  ;;  %v1714_v44 = vsub.f32 %v6107_v36, %v6109_v63  ;;  %v6119_v4 = vsel %vm9369_vm11, %v9367_v41, %v9366_v37  ;;  %v9374_v37 = vld [vmem:[#allocation69_spill] sm:$0xff]  ;;  %v9375_v41 = vld [vmem:[#allocation71_spill] sm:$0xff] }
 0x3c2   : > { %vm9376_vm12 = vnez %v9375_v41  ;;  %v9384_v41 = vld [vmem:[#allocation74_spill] sm:$0xff] }
 0x3c3   : > { %1317 = vrot.lane.b32.xlu0 %v1274_v25, %s4697_s30  ;;  %1756 = vrot.lane.b32.xlu1 %v1714_v44, %s4697_s30  ;;  %v9373_v44 = vld [vmem:[#allocation30_spill] sm:$0xff]  ;;  %vm9385_vm15 = vnez %v9384_v41  ;;  %v9393_v41 = vld [vmem:[#allocation76_spill] sm:$0xff] }
 0x3c4   : > { %v6121_v58 = vpop.xlane.xlu1 %1694  ;;  %v6131_v25 = vpop.xlane.xlu0 %1247  ;;  %v6141_v32 = vsel %vm9376_vm12, %v9374_v37, %v9373_v44  ;;  %v9382_v44 = vld [vmem:[#allocation31_spill] sm:$0xff]  ;;  %v9383_v37 = vld [vmem:[#allocation72_spill] sm:$0xff]  ;;  %vm9394_vm10 = vnez %v9393_v41 }
 0x3c5   : > { %9370 = vst [vmem:[#allocation50_spill] sm:$0xff] %v6121_v58  ;;  %v1715_v27 = vsub.f32 %v6119_v4, %v6121_v58  ;;  %9372 = vst [vmem:[#allocation51_spill] sm:$0xff] %v6131_v25  ;;  %v1271_v19 = vsub.f32 %v6129_v31, %v6131_v25  ;;  %v6151_v25 = vsel %vm9380_vm13, %v9378_v10, %v5137_v17  ;;  %v9387_v10 = vld [vmem:[#allocation36_spill] sm:$0xff] }
 0x3c6   : > { %v9403_v41 = vld [vmem:[#allocation80_spill] sm:$0xff] }
 0x3c7   : > { %1758 = vrot.lane.b32.xlu0 %v1715_v27, %s4697_s30  ;;  %1311 = vrot.lane.b32.xlu1 %v1271_v19, %s4697_s30  ;;  %vm9404_vm2 = vnez %v9403_v41  ;;  %v9412_v41 = vld [vmem:[#allocation83_spill] sm:$0xff] }
 0x3c8   : > { %v6143_v58 = vpop.xlane.xlu1 %1249  ;;  %v6153_v27 = vpop.xlane.xlu0 %1688  ;;  %vm9413_vm4 = vnez %v9412_v41  ;;  %v9421_v41 = vmov 0  }
 0x3c9   : > { %9377 = vst [vmem:[#allocation28_spill] sm:$0xff] %v6143_v58  ;;  %v1272_v13 = vsub.f32 %v6141_v32, %v6143_v58  ;;  %9381 = vst [vmem:[#allocation53_spill] sm:$0xff] %v6153_v27  ;;  %v1712_v19 = vsub.f32 %v6151_v25, %v6153_v27  ;;  %v6163_v58 = vsel %vm9385_vm15, %v9383_v37, %v9382_v44  ;;  %v9391_v44 = vld [vmem:[#allocation37_spill] sm:$0xff]  ;;  %v9392_v37 = vld [vmem:[#allocation75_spill] sm:$0xff] }
 0x3ca   : > { %v6173_v27 = vsel %vm9389_vm14, %v9388_v21, %v9387_v10 }
 0x3cb   : > { %1313 = vrot.lane.b32.xlu0 %v1272_v13, %s4697_s30  ;;  %1752 = vrot.lane.b32.xlu1 %v1712_v19, %s4697_s30 }
 0x3cc   : > { %v6165_v63 = vpop.xlane.xlu1 %1690  ;;  %v6175_v13 = vpop.xlane.xlu0 %1259 }
 0x3cd   : > { %9386 = vst [vmem:[#allocation55_spill] sm:$0xff] %v6165_v63  ;;  %v1713_v17 = vsub.f32 %v6163_v58, %v6165_v63  ;;  %9390 = vst [vmem:[#allocation54_spill] sm:$0xff] %v6175_v13  ;;  %v1277_v19 = vsub.f32 %v6173_v27, %v6175_v13  ;;  %v6185_v63 = vsel %vm9394_vm10, %v9392_v37, %v9391_v44  ;;  %v9401_v44 = vld [vmem:[#allocation34_spill] sm:$0xff]  ;;  %v9417_v13 = vld [vmem:[#allocation84_spill] sm:$0xff] }
 0x3ce   : > { %v9402_v37 = vld [vmem:[#allocation78_spill] sm:$0xff]  ;;  %vm9418_vm5 = vnez %v9417_v13 }
 0x3cf   : > { %1754 = vrot.lane.b32.xlu0 %v1713_v17, %s4697_s30  ;;  %1323 = vrot.lane.b32.xlu1 %v1277_v19, %s4697_s30 }
 0x3d0   : > { %v6187_v8 = vpop.xlane.xlu1 %1261  ;;  %v6197_v17 = vpop.xlane.xlu0 %1700 }
 0x3d1   : > { %9395 = vst [vmem:[#allocation29_spill] sm:$0xff] %v6187_v8  ;;  %v1278_v10 = vsub.f32 %v6185_v63, %v6187_v8  ;;  %9397 = vst [vmem:[#allocation56_spill] sm:$0xff] %v6197_v17  ;;  %v1718_v21 = vsub.f32 %v6193_v2, %v6197_v17 }
 0x3d3   : > { %1325 = vrot.lane.b32.xlu0 %v1278_v10, %s4697_s30  ;;  %1764 = vrot.lane.b32.xlu1 %v1718_v21, %s4697_s30  ;;  %v6220_v10 = vsel %vm9404_vm2, %v9402_v37, %v9401_v44  ;;  %v9410_v44 = vld [vmem:[#allocation35_spill] sm:$0xff]  ;;  %v9411_v37 = vld [vmem:[#allocation81_spill] sm:$0xff] }
 0x3d4   : > { %v6203_v19 = vpop.xlane.xlu1 %1702  ;;  %v6211_v60 = vpop.xlane.xlu0 %1255  ;;  %v6242_v28 = vsel %vm9413_vm4, %v9411_v37, %v9410_v44  ;;  %v6261_v37 = vld [vmem:[%s5168_s27 + $0x10] sm:$0xff] }
 0x3d5   : > { %9398 = vst [vmem:[#allocation58_spill] sm:$0xff] %v6203_v19  ;;  %9400 = vst [vmem:[#allocation57_spill] sm:$0xff] %v6211_v60  ;;  %v1275_v1 = vsub.f32 %v6209_v54, %v6211_v60 }
 0x3d6   : > { %9420 = vst [vmem:[#allocation27_spill] sm:$0xff] %v6261_v37 }
 0x3d7   : > { %1319 = vrot.lane.b32.xlu1 %v1275_v1, %s4697_s30 }
 0x3d8   : > { %v6222_v21 = vpop.xlane.xlu1 %1257  ;;  %v6232_v60 = vpop.xlane.xlu0 %1696 }
 0x3d9   : > { %9405 = vst [vmem:[#allocation26_spill] sm:$0xff] %v6222_v21  ;;  %v1276_v8 = vsub.f32 %v6220_v10, %v6222_v21  ;;  %9409 = vst [vmem:[#allocation59_spill] sm:$0xff] %v6232_v60  ;;  %v1716_v1 = vsub.f32 %v6228_v33, %v6232_v60  ;;  %v9415_v21 = vld [vmem:[#allocation38_spill] sm:$0xff]  ;;  %v9416_v60 = vld [vmem:[#allocation77_spill] sm:$0xff] }
 0x3db   : > { %1321 = vrot.lane.b32.xlu0 %v1276_v8, %s4697_s30  ;;  %1760 = vrot.lane.b32.xlu1 %v1716_v1, %s4697_s30  ;;  %v6253_v8 = vsel %vm9418_vm5, %v9416_v60, %v9415_v21  ;;  %v6272_v21 = vld [vmem:[%s5168_s27] sm:$0xff] }
 0x3dc   : > { %v6244_v40 = vpop.xlane.xlu1 %1698  ;;  %v1719_v1 = vsub.f32 %v6253_v8, %v6203_v19  ;;  %9423 = vst [vmem:[#allocation63_spill] sm:$0xff] %v6272_v21  ;;  %v6283_v19 = vld [vmem:[%s5168_s27 + $0x90] sm:$0xff] }
 0x3dd   : > { %9414 = vst [vmem:[#allocation61_spill] sm:$0xff] %v6244_v40  ;;  %v1717_v14 = vsub.f32 %v6242_v28, %v6244_v40  ;;  %9425 = vst [vmem:[#allocation64_spill] sm:$0xff] %v6283_v19 }
 0x3df   : > { %1762 = vrot.lane.b32.xlu0 %v1717_v14, %s4697_s30 }
 0x3e3   : > { %1766 = vrot.lane.b32.xlu0 %v1719_v1, %s4697_s30 }
 0x410   : > { %v6258_v44 = vpop.permute.xlu1 %1299 }
 0x411   : > { %9419 = vst [vmem:[#allocation60_spill] sm:$0xff] %v6258_v44  ;;  %vm1345_vm6 = vcmp.lt.f32.partialorder %v6261_v37, %v6258_v44  ;;  %v6567_v37 = vld [vmem:[%s5168_s27 + $0xe0] sm:$0xff] }
 0x412   : > { %v1361_v13 = vsel %vm1345_vm6, 1, %v9421_v41  ;;  %v6269_v60 = vpop.permute.xlu0 %1295 }
 0x413   : > { %9422 = vst [vmem:[#allocation62_spill] sm:$0xff] %v6269_v60  ;;  %vm1343_vm7 = vcmp.lt.f32.partialorder %v6272_v21, %v6269_v60  ;;  %1382 = vperm.xlu0 %4183, %v1361_v13   ;;  %v6307_v21 = vld [vmem:[%s5168_s27 + $0x18] sm:$0xff] }
 0x414   : > { %v1359_v14 = vsel %vm1343_vm7, 1, %v9421_v41  ;;  %9430 = vst [vmem:[#allocation68_spill] sm:$0xff] %v6307_v21 }
 0x415   : > { %v6280_v1 = vpop.permute.xlu1 %1740  ;;  %1376 = vperm.xlu1 %4184, %v1359_v14  }
 0x416   : > { %9424 = vst [vmem:[#allocation32_spill] sm:$0xff] %v6280_v1  ;;  %vm1786_vm9 = vcmp.lt.f32.partialorder %v6283_v19, %v6280_v1  ;;  %v6287_v40 = vpop.permute.xlu0 %1301  ;;  %v6314_v1 = vld [vmem:[%s5168_s27 + $0x8] sm:$0xff]  ;;  %v6327_v19 = vld [vmem:[%s5168_s27 + $0x98] sm:$0xff] }
 0x417   : > { %9426 = vst [vmem:[#allocation66_spill] sm:$0xff] %v6287_v40  ;;  %v1802_v13 = vsel %vm1786_vm9, 1, %v9421_v41  ;;  %vm1346_vm8 = vcmp.lt.f32.partialorder %v6307_v21, %v6287_v40  ;;  %9432 = vst [vmem:[#allocation69_spill] sm:$0xff] %v6314_v1  ;;  %v6336_v40 = vld [vmem:[%s5168_s27 + $0x30] sm:$0xff] }
 0x418   : > { %1823 = vperm.xlu0 %4183, %v1802_v13   ;;  %9433 = vst [vmem:[#allocation71_spill] sm:$0xff] %v6327_v19  ;;  %9436 = vst [vmem:[#allocation31_spill] sm:$0xff] %v6336_v40 }
 0x419   : > { %v6293_v17 = vpop.permute.xlu1 %1736 }
 0x41a   : > { %9427 = vst [vmem:[#allocation65_spill] sm:$0xff] %v6293_v17  ;;  %vm1784_vm11 = vcmp.lt.f32.partialorder %v6296_v20, %v6293_v17  ;;  %v6300_v14 = vpop.permute.xlu0 %1742  ;;  %v1362_v17 = vsel %vm1346_vm8, 1, %v9421_v41 }
 0x41b   : > { %9429 = vst [vmem:[#allocation67_spill] sm:$0xff] %v6300_v14  ;;  %v1800_v60 = vsel %vm1784_vm11, 1, %v9421_v41  ;;  %vm1787_vm13 = vcmp.lt.f32.partialorder %v6327_v19, %v6300_v14  ;;  %v6358_v14 = vld [vmem:[%s5168_s27 + $0xb0] sm:$0xff] }
 0x41c   : > { %1817 = vperm.xlu1 %4184, %v1800_v60   ;;  %v1803_v21 = vsel %vm1787_vm13, 1, %v9421_v41  ;;  %9440 = vst [vmem:[#allocation73_spill] sm:$0xff] %v6358_v14 }
 0x41d   : > { %v6311_v13 = vpop.permute.xlu1 %1297 }
 0x41e   : > { %9431 = vst [vmem:[#allocation30_spill] sm:$0xff] %v6311_v13  ;;  %vm1344_vm12 = vcmp.lt.f32.partialorder %v6314_v1, %v6311_v13  ;;  %v6331_v60 = vpop.permute.xlu0 %1738 }
 0x41f   : > { %v1360_v20 = vsel %vm1344_vm12, 1, %v9421_v41  ;;  %9434 = vst [vmem:[#allocation70_spill] sm:$0xff] %v6331_v60 }
 0x420   : > { %1379 = vperm.xlu0 %4183, %v1360_v20   ;;  %1385 = vperm.xlu1 %4184, %v1362_v17   ;;  %v6349_v20 = vld [vmem:[%s5168_s27 + $0x88] sm:$0xff] }
 0x421   : > { %v6333_v44 = vpop.permute.xlu1 %1307  ;;  %9437 = vst [vmem:[#allocation72_spill] sm:$0xff] %v6349_v20  ;;  %vm1785_vm14 = vcmp.lt.f32.partialorder %v6349_v20, %v6331_v60  ;;  %v6380_v60 = vld [vmem:[%s5168_s27 + $0x20] sm:$0xff] }
 0x422   : > { %9435 = vst [vmem:[#allocation79_spill] sm:$0xff] %v6333_v44  ;;  %vm1349_vm15 = vcmp.lt.f32.partialorder %v6336_v40, %v6333_v44  ;;  %v1801_v44 = vsel %vm1785_vm14, 1, %v9421_v41  ;;  %9444 = vst [vmem:[#allocation34_spill] sm:$0xff] %v6380_v60 }
 0x423   : > { %v1365_v13 = vsel %vm1349_vm15, 1, %v9421_v41 }
 0x424   : > { %1394 = vperm.xlu0 %4183, %v1365_v13   ;;  %1826 = vperm.xlu1 %4184, %v1803_v21   ;;  %v6353_v17 = vpop.permute.xlu0 %1309  ;;  %v6371_v13 = vld [vmem:[%s5168_s27 + $0x38] sm:$0xff] }
 0x425   : > { %9438 = vst [vmem:[#allocation74_spill] sm:$0xff] %v6353_v17  ;;  %v6355_v1 = vpop.permute.xlu1 %1748  ;;  %9441 = vst [vmem:[#allocation37_spill] sm:$0xff] %v6371_v13  ;;  %vm8869_vm0 = vcmp.lt.f32.partialorder %v6371_v13, %v6353_v17  ;;  %v6402_v17 = vld [vmem:[%s5168_s27 + $0xa0] sm:$0xff] }
 0x426   : > { %9439 = vst [vmem:[#allocation36_spill] sm:$0xff] %v6355_v1  ;;  %vm1790_vm10 = vcmp.lt.f32.partialorder %v6358_v14, %v6355_v1  ;;  %v1366_v1 = vsel %vm8869_vm0, 1, %v9421_v41  ;;  %9448 = vst [vmem:[#allocation85_spill] sm:$0xff] %v6402_v17 }
 0x427   : > { %v1806_v21 = vsel %vm1790_vm10, 1, %v9421_v41 }
 0x428   : > { %1835 = vperm.xlu0 %4183, %v1806_v21   ;;  %1820 = vperm.xlu1 %4184, %v1801_v44   ;;  %v6393_v21 = vld [vmem:[%s5168_s27 + $0xb8] sm:$0xff] }
 0x429   : > { %v6375_v40 = vpop.permute.xlu0 %1750  ;;  %v6377_v19 = vpop.permute.xlu1 %1303  ;;  %9445 = vst [vmem:[#allocation78_spill] sm:$0xff] %v6393_v21 }
 0x42a   : > { %9442 = vst [vmem:[#allocation75_spill] sm:$0xff] %v6375_v40  ;;  %9443 = vst [vmem:[#allocation76_spill] sm:$0xff] %v6377_v19  ;;  %vm8878_vm1 = vcmp.lt.f32.partialorder %v6380_v60, %v6377_v19  ;;  %vm8827_vm2 = vcmp.lt.f32.partialorder %v6393_v21, %v6375_v40  ;;  %v6424_v40 = vld [vmem:[%s5168_s27 + $0x50] sm:$0xff] }
 0x42b   : > { %v1363_v44 = vsel %vm8878_vm1, 1, %v9421_v41  ;;  %v1807_v13 = vsel %vm8827_vm2, 1, %v9421_v41  ;;  %9452 = vst [vmem:[#allocation38_spill] sm:$0xff] %v6424_v40 }
 0x42c   : > { %1388 = vperm.xlu0 %4183, %v1363_v44   ;;  %1397 = vperm.xlu1 %4184, %v1366_v1   ;;  %v6415_v44 = vld [vmem:[%s5168_s27 + $0x28] sm:$0xff] }
 0x42d   : > { %v6397_v14 = vpop.permute.xlu0 %1305  ;;  %v6399_v20 = vpop.permute.xlu1 %1744  ;;  %9449 = vst [vmem:[#allocation35_spill] sm:$0xff] %v6415_v44 }
 0x42e   : > { %9446 = vst [vmem:[#allocation80_spill] sm:$0xff] %v6397_v14  ;;  %9447 = vst [vmem:[#allocation82_spill] sm:$0xff] %v6399_v20  ;;  %vm8879_vm3 = vcmp.lt.f32.partialorder %v6402_v17, %v6399_v20  ;;  %vm8831_vm4 = vcmp.lt.f32.partialorder %v6415_v44, %v6397_v14  ;;  %v6446_v14 = vld [vmem:[%s5168_s27 + $0xd0] sm:$0xff] }
 0x42f   : > { %v1804_v1 = vsel %vm8879_vm3, 1, %v9421_v41  ;;  %v1364_v21 = vsel %vm8831_vm4, 1, %v9421_v41  ;;  %9456 = vst [vmem:[#allocation120_spill] sm:$0xff] %v6446_v14 }
 0x430   : > { %1829 = vperm.xlu0 %4183, %v1804_v1   ;;  %1838 = vperm.xlu1 %4184, %v1807_v13   ;;  %v6437_v1 = vld [vmem:[%s5168_s27 + $0xa8] sm:$0xff] }
 0x431   : > { %v6419_v19 = vpop.permute.xlu0 %1746  ;;  %v6421_v60 = vpop.permute.xlu1 %1315  ;;  %9453 = vst [vmem:[#allocation77_spill] sm:$0xff] %v6437_v1 }
 0x432   : > { %9450 = vst [vmem:[#allocation81_spill] sm:$0xff] %v6419_v19  ;;  %9451 = vst [vmem:[#allocation83_spill] sm:$0xff] %v6421_v60  ;;  %vm8833_vm5 = vcmp.lt.f32.partialorder %v6424_v40, %v6421_v60  ;;  %vm8837_vm2 = vcmp.lt.f32.partialorder %v6437_v1, %v6419_v19  ;;  %v6468_v19 = vld [vmem:[%s5168_s27 + $0x40] sm:$0xff] }
 0x433   : > { %v1369_v13 = vsel %vm8833_vm5, 1, %v9421_v41  ;;  %v1805_v60 = vsel %vm8837_vm2, 1, %v9421_v41  ;;  %9460 = vst [vmem:[#allocation124_spill] sm:$0xff] %v6468_v19 }
 0x434   : > { %1406 = vperm.xlu0 %4183, %v1369_v13   ;;  %1391 = vperm.xlu1 %4184, %v1364_v21   ;;  %v6459_v13 = vld [vmem:[%s5168_s27 + $0x58] sm:$0xff] }
 0x435   : > { %v6441_v20 = vpop.permute.xlu0 %1317  ;;  %v6443_v17 = vpop.permute.xlu1 %1756  ;;  %9457 = vst [vmem:[#allocation121_spill] sm:$0xff] %v6459_v13 }
 0x436   : > { %9454 = vst [vmem:[#allocation84_spill] sm:$0xff] %v6441_v20  ;;  %9455 = vst [vmem:[#allocation119_spill] sm:$0xff] %v6443_v17  ;;  %vm8839_vm4 = vcmp.lt.f32.partialorder %v6446_v14, %v6443_v17  ;;  %vm8843_vm5 = vcmp.lt.f32.partialorder %v6459_v13, %v6441_v20  ;;  %v6490_v20 = vld [vmem:[%s5168_s27 + $0xc0] sm:$0xff] }
 0x437   : > { %v1810_v21 = vsel %vm8839_vm4, 1, %v9421_v41  ;;  %v1370_v17 = vsel %vm8843_vm5, 1, %v9421_v41  ;;  %9464 = vst [vmem:[#allocation128_spill] sm:$0xff] %v6490_v20 }
 0x438   : > { %1847 = vperm.xlu0 %4183, %v1810_v21   ;;  %1832 = vperm.xlu1 %4184, %v1805_v60   ;;  %v6481_v21 = vld [vmem:[%s5168_s27 + $0xd8] sm:$0xff] }
 0x439   : > { %v6463_v40 = vpop.permute.xlu0 %1758  ;;  %v6465_v44 = vpop.permute.xlu1 %1311  ;;  %9461 = vst [vmem:[#allocation125_spill] sm:$0xff] %v6481_v21 }
 0x43a   : > { %9458 = vst [vmem:[#allocation122_spill] sm:$0xff] %v6463_v40  ;;  %9459 = vst [vmem:[#allocation123_spill] sm:$0xff] %v6465_v44  ;;  %vm8845_vm2 = vcmp.lt.f32.partialorder %v6468_v19, %v6465_v44  ;;  %vm8849_vm4 = vcmp.lt.f32.partialorder %v6481_v21, %v6463_v40  ;;  %v6512_v40 = vld [vmem:[%s5168_s27 + $0x70] sm:$0xff] }
 0x43b   : > { %v1367_v60 = vsel %vm8845_vm2, 1, %v9421_v41  ;;  %v1811_v13 = vsel %vm8849_vm4, 1, %v9421_v41  ;;  %9468 = vst [vmem:[#allocation132_spill] sm:$0xff] %v6512_v40 }
 0x43c   : > { %1400 = vperm.xlu0 %4183, %v1367_v60   ;;  %1409 = vperm.xlu1 %4184, %v1370_v17   ;;  %v6503_v60 = vld [vmem:[%s5168_s27 + $0x48] sm:$0xff] }
 0x43d   : > { %v6485_v14 = vpop.permute.xlu0 %1313  ;;  %v6487_v1 = vpop.permute.xlu1 %1752  ;;  %9465 = vst [vmem:[#allocation129_spill] sm:$0xff] %v6503_v60 }
 0x43e   : > { %9462 = vst [vmem:[#allocation126_spill] sm:$0xff] %v6485_v14  ;;  %9463 = vst [vmem:[#allocation127_spill] sm:$0xff] %v6487_v1  ;;  %vm8851_vm5 = vcmp.lt.f32.partialorder %v6490_v20, %v6487_v1  ;;  %vm8857_vm2 = vcmp.lt.f32.partialorder %v6503_v60, %v6485_v14  ;;  %v6562_v60 = vld [vmem:[%s5168_s27 + $0x68] sm:$0xff] }
 0x43f   : > { %v1808_v17 = vsel %vm8851_vm5, 1, %v9421_v41  ;;  %v1368_v21 = vsel %vm8857_vm2, 1, %v9421_v41  ;;  %9474 = vst [vmem:[#allocation138_spill] sm:$0xff] %v6562_v60 }
 0x440   : > { %1841 = vperm.xlu0 %4183, %v1808_v17   ;;  %1850 = vperm.xlu1 %4184, %v1811_v13   ;;  %v6525_v17 = vld [vmem:[%s5168_s27 + $0xc8] sm:$0xff] }
 0x441   : > { %v6507_v44 = vpop.permute.xlu0 %1754  ;;  %v6509_v19 = vpop.permute.xlu1 %1323  ;;  %9469 = vst [vmem:[#allocation133_spill] sm:$0xff] %v6525_v17 }
 0x442   : > { %9466 = vst [vmem:[#allocation130_spill] sm:$0xff] %v6507_v44  ;;  %9467 = vst [vmem:[#allocation131_spill] sm:$0xff] %v6509_v19  ;;  %vm8856_vm4 = vcmp.lt.f32.partialorder %v6512_v40, %v6509_v19  ;;  %vm8862_vm5 = vcmp.lt.f32.partialorder %v6525_v17, %v6507_v44  ;;  %v6538_v19 = vld [vmem:[%s5168_s27 + $0x78] sm:$0xff] }
 0x443   : > { %v1373_v13 = vsel %vm8856_vm4, 1, %v9421_v41  ;;  %v1809_v14 = vsel %vm8862_vm5, 1, %v9421_v41  ;;  %9471 = vst [vmem:[#allocation135_spill] sm:$0xff] %v6538_v19 }
 0x444   : > { %1418 = vperm.xlu0 %4183, %v1373_v13   ;;  %1403 = vperm.xlu1 %4184, %v1368_v21   ;;  %v6545_v21 = vld [vmem:[%s5168_s27 + $0x60] sm:$0xff] }
 0x445   : > { %v6529_v1 = vpop.permute.xlu1 %1764  ;;  %v6531_v20 = vpop.permute.xlu0 %1325 }
 0x446   : > { %9470 = vst [vmem:[#allocation134_spill] sm:$0xff] %v6531_v20  ;;  %vm8864_vm4 = vcmp.lt.f32.partialorder %v6538_v19, %v6531_v20  ;;  %v6580_v20 = vld [vmem:[%s5168_s27 + $0xf0] sm:$0xff] }
 0x447   : > { %v1374_v40 = vsel %vm8864_vm4, 1, %v9421_v41 }
 0x448   : > { %1844 = vperm.xlu1 %4184, %v1809_v14  }
 0x449   : > { %v6542_v13 = vpop.permute.xlu1 %1319 }
 0x44a   : > { %9472 = vst [vmem:[#allocation136_spill] sm:$0xff] %v6542_v13  ;;  %vm8866_vm2 = vcmp.lt.f32.partialorder %v6545_v21, %v6542_v13  ;;  %v6587_v13 = vld [vmem:[%s5168_s27 + $0xe8] sm:$0xff] }
 0x44b   : > { %v1371_v44 = vsel %vm8866_vm2, 1, %v9421_v41  ;;  %vm8877_vm2 = vcmp.lt.f32.partialorder %v6580_v20, %v6529_v1 }
 0x44c   : > { %1412 = vperm.xlu0 %4183, %v1371_v44   ;;  %1421 = vperm.xlu1 %4184, %v1374_v40  }
 0x44d   : > { %v6557_v14 = vpop.permute.xlu0 %1321  ;;  %v6559_v17 = vpop.permute.xlu1 %1760 }
 0x44e   : > { %9473 = vst [vmem:[#allocation137_spill] sm:$0xff] %v6557_v14  ;;  %vm8872_vm5 = vcmp.lt.f32.partialorder %v6562_v60, %v6557_v14  ;;  %vm8876_vm4 = vcmp.lt.f32.partialorder %v6567_v37, %v6559_v17  ;;  %v1814_v60 = vsel %vm8877_vm2, 1, %v9421_v41 }
 0x44f   : > { %v1372_v40 = vsel %vm8872_vm5, 1, %v9421_v41  ;;  %v1812_v44 = vsel %vm8876_vm4, 1, %v9421_v41 }
 0x450   : > { %1853 = vperm.xlu0 %4183, %v1812_v44   ;;  %1415 = vperm.xlu1 %4184, %v1372_v40   ;;  %v6602_v44 = vld [vmem:[%s5168_s27 + $0xf8] sm:$0xff] }
 0x451   : > { %v6584_v19 = vpop.permute.xlu0 %1762 }
 0x452   : > { %9475 = vst [vmem:[#allocation139_spill] sm:$0xff] %v6584_v19  ;;  %vm8875_vm0 = vcmp.lt.f32.partialorder %v6587_v13, %v6584_v19 }
 0x453   : > { %v1813_v14 = vsel %vm8875_vm0, 1, %v9421_v41 }
 0x454   : > { %1859 = vperm.xlu0 %4183, %v1814_v60   ;;  %1856 = vperm.xlu1 %4184, %v1813_v14   ;;  %v9492_v60 = vld [vmem:[#allocation102_spill] sm:$0xff] }
 0x455   : > { %v6599_v40 = vpop.permute.xlu0 %1766 }
 0x456   : > { %vm8874_vm5 = vcmp.lt.f32.partialorder %v6602_v44, %v6599_v40 }
 0x457   : > { %v1815_v19 = vsel %vm8874_vm5, 1, %v9421_v41 }
 0x458   : > { %1471 = vrot.lane.b32.xlu0 %v5920_v18, %s4697_s30  ;;  %1862 = vperm.xlu1 %4184, %v1815_v19  }
 0x45c   : > { %1475 = vrot.lane.b32.xlu0 %v5910_v12, %s4697_s30  ;;  %1473 = vrot.lane.b32.xlu1 %v5975_v26, %s4697_s30 }
 0x460   : > { %1479 = vrot.lane.b32.xlu0 %v6041_v5, %s4697_s30  ;;  %1477 = vrot.lane.b32.xlu1 %v5942_v62, %s4697_s30  ;;  %v9478_v5 = vld [vmem:[#allocation87_spill] sm:$0xff] }
 0x464   : > { %1483 = vrot.lane.b32.xlu0 %v5997_v47, %s4697_s30  ;;  %1481 = vrot.lane.b32.xlu1 %v6053_v42, %s4697_s30  ;;  %v9476_v47 = vld [vmem:[#allocation86_spill] sm:$0xff] }
 0x468   : > { %1487 = vrot.lane.b32.xlu0 %v6129_v31, %s4697_s30  ;;  %1485 = vrot.lane.b32.xlu1 %v6009_v0, %s4697_s30  ;;  %v4530_v31 = vld [vmem:[#allocation2 + $0x18] sm:$0xff]  }
 0x46c   : > { %1491 = vrot.lane.b32.xlu0 %v6085_v48, %s4697_s30  ;;  %1489 = vrot.lane.b32.xlu1 %v6141_v32, %s4697_s30  ;;  %v9483_v32 = vld [vmem:[#allocation91_spill] sm:$0xff] }
 0x470   : > { %1495 = vrot.lane.b32.xlu0 %v6209_v54, %s4697_s30  ;;  %1493 = vrot.lane.b32.xlu1 %v6097_v61, %s4697_s30  ;;  %v9487_v54 = vld [vmem:[#allocation89_spill] sm:$0xff] }
 0x474   : > { %1499 = vrot.lane.b32.xlu0 %v6173_v27, %s4697_s30  ;;  %1497 = vrot.lane.b32.xlu1 %v6220_v10, %s4697_s30 }
 0x478   : > { %1912 = vrot.lane.b32.xlu0 %v5953_v57, %s4697_s30  ;;  %1501 = vrot.lane.b32.xlu1 %v6185_v63, %s4697_s30 }
 0x47c   : > { %1916 = vrot.lane.b32.xlu0 %v5931_v46, %s4697_s30  ;;  %1914 = vrot.lane.b32.xlu1 %v5986_v59, %s4697_s30 }
 0x480   : > { %1920 = vrot.lane.b32.xlu0 %v6063_v39, %s4697_s30  ;;  %1918 = vrot.lane.b32.xlu1 %v5964_v30, %s4697_s30  ;;  %v9480_v39 = vld [vmem:[#allocation88_spill] sm:$0xff] }
 0x484   : > { %1924 = vrot.lane.b32.xlu0 %v6019_v53, %s4697_s30  ;;  %1922 = vrot.lane.b32.xlu1 %v6075_v34, %s4697_s30 }
 0x488   : > { %1928 = vrot.lane.b32.xlu0 %v6151_v25, %s4697_s30  ;;  %1926 = vrot.lane.b32.xlu1 %v6031_v9, %s4697_s30 }
 0x48c   : > { %1932 = vrot.lane.b32.xlu0 %v6107_v36, %s4697_s30  ;;  %1930 = vrot.lane.b32.xlu1 %v6163_v58, %s4697_s30  ;;  %v4528_v36 = vld [vmem:[#allocation2 + $0x28] sm:$0xff]  }
 0x48e   : > { %v1383_v46 = vpop.permute.xlu0 %1382 }
 0x48f   : > { %vm1425_vm5 = vcmp.eq.s32.totalorder %v1383_v46, 1  ;;  %v9494_v46 = vld [vmem:[#allocation93_spill] sm:$0xff] }
 0x490   : > { %1936 = vrot.lane.b32.xlu0 %v6228_v33, %s4697_s30  ;;  %1934 = vrot.lane.b32.xlu1 %v6119_v4, %s4697_s30  ;;  %v1377_v18 = vpop.permute.xlu1 %1376  ;;  %v6676_v57 = vsel %vm1425_vm5, %v5754_v16, %v5574_v23 }
 0x491   : > { %vm1423_vm0 = vcmp.eq.s32.totalorder %v1377_v18, 1  ;;  %v9495_v18 = vld [vmem:[#allocation103_spill] sm:$0xff] }
 0x492   : > { %v6680_v26 = vsel %vm1423_vm0, %v5759_v55, %v5566_v35  ;;  %v4526_v35 = vld [vmem:[#allocation2 + $0x38] sm:$0xff]  }
 0x493   : > { %v1824_v12 = vpop.permute.xlu0 %1823 }
 0x494   : > { %1940 = vrot.lane.b32.xlu0 %v6193_v2, %s4697_s30  ;;  %1938 = vrot.lane.b32.xlu1 %v6242_v28, %s4697_s30  ;;  %v9485_v2 = vld [vmem:[#allocation90_spill] sm:$0xff] }
 0x495   : > { %v4531_v28 = vld [vmem:[#allocation2 + $0x10] sm:$0xff]  }
 0x497   : > { %v1818_v9 = vpop.permute.xlu1 %1817 }
 0x498   : > { %1942 = vrot.lane.b32.xlu1 %v6253_v8, %s4697_s30  ;;  %vm1864_vm0 = vcmp.eq.s32.totalorder %v1818_v9, 1  ;;  %v9497_v9 = vld [vmem:[#allocation92_spill] sm:$0xff] }
 0x499   : > { %v6700_v34 = vsel %vm1864_vm0, %v5772_v52, %v5586_v49 }
 0x49a   : > { %9477 = vst [vmem:[#allocation86_spill] sm:$0xff] %v6700_v34 }
 0x49b   : > { %v1386_v62 = vpop.permute.xlu1 %1385  ;;  %v1380_v30 = vpop.permute.xlu0 %1379 }
 0x49c   : > { %vm1426_vm4 = vcmp.eq.s32.totalorder %v1386_v62, 1  ;;  %vm1424_vm2 = vcmp.eq.s32.totalorder %v1380_v30, 1  ;;  %v9498_v62 = vld [vmem:[#allocation100_spill] sm:$0xff] }
 0x49d   : > { %v6684_v59 = vsel %vm1426_vm4, %v5763_v56, %v5562_v50  ;;  %v6688_v42 = vsel %vm1424_vm2, %v5783_v38, %v9476_v47  ;;  %vm1866_vm4 = vcmp.eq.s32.totalorder %v1824_v12, 1  ;;  %v4527_v56 = vld [vmem:[#allocation2 + $0x30] sm:$0xff]  }
 0x49e   : > { %v1977_v0 = vpack.c.bf16 %v6684_v59, %v6676_v57  ;;  %v1976_v53 = vpack.c.bf16 %v6688_v42, %v6680_v26  ;;  %v6708_v48 = vsel %vm1866_vm4, %v5765_v6, %v9480_v39  ;;  %v4529_v6 = vld [vmem:[#allocation2 + $0x20] sm:$0xff]  }
 0x49f   : > { %v1827_v23 = vpop.permute.xlu1 %1826  ;;  %v1395_v16 = vpop.permute.xlu0 %1394  ;;  %9481 = vst [vmem:[#allocation88_spill] sm:$0xff] %v6708_v48 }
 0x4a0   : > { %4010 = vmatprep.mubr.bf16.mxu0 %v1976_v53  ;;  %vm1867_vm5 = vcmp.eq.s32.totalorder %v1827_v23, 1  ;;  %vm1429_vm4 = vcmp.eq.s32.totalorder %v1395_v16, 1  ;;  %v4532_v23 = vld [vmem:[#allocation2 + $0x8] sm:$0xff]  }
 0x4a1   : > { %4011 = vmatmul.mubr.bf16.vlgmr.msra.gmra.mxu0 %v1977_v0  ;;  %v6696_v38 = vsel %vm1867_vm5, %v5776_v51, %v5582_v3  ;;  %v6728_v10 = vsel %vm1429_vm4, %v5794_v11, %v9487_v54  ;;  %v9491_v11 = vld [vmem:[#allocation94_spill] sm:$0xff] }
 0x4a2   : > { %4059 = vmatpush3.bf16.msra.mxu0 %v4526_v35  ;;  %v2418_v3 = vpack.c.bf16 %v6696_v38, %v6708_v48  ;;  %9488 = vst [vmem:[#allocation89_spill] sm:$0xff] %v6728_v10 }
 0x4a3   : > { %v1821_v50 = vpop.permute.xlu1 %1820  ;;  %v1836_v55 = vpop.permute.xlu0 %1835  ;;  %4060 = vmatprep.subr.bf16.mxu0 %v4527_v56 }
 0x4a4   : > { %vm1865_vm2 = vcmp.eq.s32.totalorder %v1821_v50, 1 }
 0x4a5   : > { %v6704_v4 = vsel %vm1865_vm2, %v5787_v29, %v9478_v5  ;;  %v9501_v5 = vld [vmem:[#allocation105_spill] sm:$0xff] }
 0x4a6   : > { %9479 = vst [vmem:[#allocation87_spill] sm:$0xff] %v6704_v4  ;;  %v2417_v58 = vpack.c.bf16 %v6704_v4, %v6700_v34  ;;  %4061 = vmatpush3.bf16.msra.mxu0 %v4527_v56 }
 0x4a7   : > { %v1398_v51 = vpop.permute.xlu1 %1397  ;;  %v1389_v61 = vpop.permute.xlu0 %1388  ;;  %4062 = vmatprep.subr.bf16.mxu0 %v4528_v36 }
 0x4a8   : > { %4042 = vmatprep.mubr.bf16.mxu1 %v2417_v58  ;;  %vm1430_vm5 = vcmp.eq.s32.totalorder %v1398_v51, 1  ;;  %vm1427_vm0 = vcmp.eq.s32.totalorder %v1389_v61, 1  ;;  %v9503_v58 = vld [vmem:[#allocation97_spill] sm:$0xff]  ;;  %v9505_v51 = vld [vmem:[#allocation96_spill] sm:$0xff] }
 0x4a9   : > { %4043 = vmatmul.mubr.bf16.vlgmr.msra.gmra.mxu1 %v2418_v3  ;;  %v6716_v25 = vsel %vm1430_vm5, %v5799_v43, %v5623_v7  ;;  %v6720_v27 = vsel %vm1427_vm0, %v5810_v24, %v9483_v32  ;;  %vm1870_vm5 = vcmp.eq.s32.totalorder %v1836_v55, 1  ;;  %v9506_v61 = vld [vmem:[#allocation108_spill] sm:$0xff] }
 0x4aa   : > { %4091 = vmatpush3.bf16.msra.mxu1 %v4526_v35  ;;  %4063 = vmatpush3.bf16.msra.mxu0 %v4528_v36  ;;  %9482 = vst [vmem:[#allocation140_spill] sm:$0xff] %v6716_v25  ;;  %9484 = vst [vmem:[#allocation91_spill] sm:$0xff] %v6720_v27  ;;  %v1979_v24 = vpack.c.bf16 %v6716_v25, %v6728_v10  ;;  %v6748_v30 = vsel %vm1870_vm5, %v9498_v62, %v9497_v9  ;;  %v4533_v35 = vld [vmem:[#allocation2] sm:$0xff]  }
 0x4ab   : > { %v1839_v49 = vpop.permute.xlu1 %1838  ;;  %v1830_v52 = vpop.permute.xlu0 %1829  ;;  %4092 = vmatprep.subr.bf16.mxu1 %v4527_v56  ;;  %4064 = vmatprep.subr.bf16.mxu0 %v4529_v6  ;;  %9499 = vst [vmem:[#allocation93_spill] sm:$0xff] %v6748_v30  ;;  %v9511_v32 = vld [vmem:[#allocation8_spill] sm:$0xff] }
 0x4ac   : > { %vm1871_vm1 = vcmp.eq.s32.totalorder %v1839_v49, 1  ;;  %vm1868_vm3 = vcmp.eq.s32.totalorder %v1830_v52, 1  ;;  %v9508_v49 = vld [vmem:[#allocation95_spill] sm:$0xff]  ;;  %v9509_v52 = vld [vmem:[#allocation104_spill] sm:$0xff] }
 0x4ad   : > { %v6740_v14 = vsel %vm1868_vm3, %v9492_v60, %v9491_v11  ;;  %v9521_v60 = vld [vmem:[#allocation106_spill] sm:$0xff]  ;;  %v9579_v10 = vld [vmem:[#allocation40_spill] sm:$0xff] }
 0x4ae   : > { %4093 = vmatpush3.bf16.msra.mxu1 %v4527_v56  ;;  %4065 = vmatpush3.bf16.msra.mxu0 %v4529_v6  ;;  %9493 = vst [vmem:[#allocation94_spill] sm:$0xff] %v6740_v14  ;;  %v9500_v56 = vld [vmem:[#allocation98_spill] sm:$0xff] }
 0x4af   : > { %v1392_v29 = vpop.permute.xlu1 %1391  ;;  %v1407_v63 = vpop.permute.xlu0 %1406  ;;  %4094 = vmatprep.subr.bf16.mxu1 %v4528_v36  ;;  %4066 = vmatprep.subr.bf16.mxu0 %v4530_v31 }
 0x4b0   : > { %vm1428_vm2 = vcmp.eq.s32.totalorder %v1392_v29, 1  ;;  %vm1433_vm4 = vcmp.eq.s32.totalorder %v1407_v63, 1 }
 0x4b1   : > { %v6724_v19 = vsel %vm1428_vm2, %v5818_v22, %v9485_v2  ;;  %v9489_v22 = vld [vmem:[#allocation101_spill] sm:$0xff]  ;;  %v9512_v2 = vld [vmem:[#allocation107_spill] sm:$0xff] }
 0x4b2   : > { %9486 = vst [vmem:[#allocation90_spill] sm:$0xff] %v6724_v19  ;;  %v1978_v33 = vpack.c.bf16 %v6724_v19, %v6720_v27  ;;  %4095 = vmatpush3.bf16.msra.mxu1 %v4528_v36  ;;  %4067 = vmatpush3.bf16.msra.mxu0 %v4530_v31  ;;  %v6736_v8 = vsel %vm1871_vm1, %v9489_v22, %v5648_v15  ;;  %v9518_v22 = vld [vmem:[#allocation110_spill] sm:$0xff] }
 0x4b3   : > { %v1833_v7 = vpop.permute.xlu1 %1832  ;;  %v1848_v43 = vpop.permute.xlu0 %1847  ;;  %4096 = vmatprep.subr.bf16.mxu1 %v4529_v6  ;;  %4068 = vmatprep.subr.bf16.mxu0 %v4531_v28  ;;  %9490 = vst [vmem:[#allocation101_spill] sm:$0xff] %v6736_v8  ;;  %v2420_v53 = vpack.c.bf16 %v6736_v8, %v6748_v30 }
 0x4b4   : > { %vm1869_vm0 = vcmp.eq.s32.totalorder %v1833_v7, 1  ;;  %4014 = vmatprep.mubr.bf16.mxu0 %v1978_v33  ;;  %v9514_v33 = vld [vmem:[#allocation9_spill] sm:$0xff] }
 0x4b5   : > { %v6744_v12 = vsel %vm1869_vm0, %v9495_v18, %v9494_v46  ;;  %4015 = vmatmul.mubr.bf16.gmra.mxu0 %v1979_v24  ;;  %v9515_v7 = vld [vmem:[#allocation109_spill] sm:$0xff] }
 0x4b6   : > { %9496 = vst [vmem:[#allocation102_spill] sm:$0xff] %v6744_v12  ;;  %v2419_v47 = vpack.c.bf16 %v6744_v12, %v6740_v14  ;;  %4097 = vmatpush3.bf16.msra.mxu1 %v4529_v6  ;;  %4069 = vmatpush3.bf16.msra.mxu0 %v4531_v28  ;;  %v6768_v6 = vsel %vm1433_vm4, %v9509_v52, %v9508_v49  ;;  %v4698_v14 = vmov 2  }
 0x4b7   : > { %v1410_v15 = vpop.permute.xlu1 %1409  ;;  %v1401_v0 = vpop.permute.xlu0 %1400  ;;  %4098 = vmatprep.subr.bf16.mxu1 %v4530_v31  ;;  %4070 = vmatprep.subr.bf16.mxu0 %v4532_v23  ;;  %9510 = vst [vmem:[#allocation98_spill] sm:$0xff] %v6768_v6 }
 0x4b8   : > { %4046 = vmatprep.mubr.bf16.mxu1 %v2419_v47  ;;  %vm1434_vm1 = vcmp.eq.s32.totalorder %v1410_v15, 1  ;;  %vm1431_vm3 = vcmp.eq.s32.totalorder %v1401_v0, 1  ;;  %4185 = vset.pattern.permute.xlu0 %v4698_v14 }
 0x4b9   : > { %4047 = vmatmul.mubr.bf16.gmra.mxu1 %v2420_v53  ;;  %v6756_v39 = vsel %vm1434_vm1, %v9501_v5, %v9500_v56  ;;  %v6760_v3 = vsel %vm1431_vm3, %v5850_v45, %v9503_v58  ;;  %vm1874_vm1 = vcmp.eq.s32.totalorder %v1848_v43, 1  ;;  %v9520_v43 = vld [vmem:[#allocation99_spill] sm:$0xff]  ;;  %v9523_v53 = vld [vmem:[#allocation14_spill] sm:$0xff]  ;;  %v9529_v56 = vld [vmem:[#allocation20_spill] sm:$0xff]  ;;  %4186 = vset.pattern.permute.xlu1 %v4698_v14 }
 0x4ba   : > { %4099 = vmatpush3.bf16.msra.mxu1 %v4530_v31  ;;  %4071 = vmatpush3.bf16.msra.mxu0 %v4532_v23  ;;  %9502 = vst [vmem:[#allocation103_spill] sm:$0xff] %v6756_v39  ;;  %9504 = vst [vmem:[#allocation92_spill] sm:$0xff] %v6760_v3  ;;  %v1981_v45 = vpack.c.bf16 %v6756_v39, %v6768_v6  ;;  %v6788_v46 = vsel %vm1874_vm1, %v9521_v60, %v9520_v43  ;;  %v9530_v5 = vld [vmem:[#allocation116_spill] sm:$0xff]  ;;  %v9541_v60 = vld [vmem:[#allocation13_spill] sm:$0xff] }
 0x4bb   : > { %v1851_v16 = vpop.permute.xlu1 %1850  ;;  %4100 = vmatprep.subr.bf16.mxu1 %v4531_v28  ;;  %4072 = vmatprep.subr.bf16.mxu0 %v4533_v35  ;;  %v1842_v50 = vpop.permute.xlu0 %1841  ;;  %9522 = vst [vmem:[#allocation108_spill] sm:$0xff] %v6788_v46 }
 0x4bc   : > { %vm1875_vm5 = vcmp.eq.s32.totalorder %v1851_v16, 1  ;;  %vm1872_vm0 = vcmp.eq.s32.totalorder %v1842_v50, 1  ;;  %v9526_v50 = vld [vmem:[#allocation17_spill] sm:$0xff] }
 0x4bd   : > { %v6776_v54 = vsel %vm1875_vm5, %v9512_v2, %v9511_v32  ;;  %v6780_v24 = vsel %vm1872_vm0, %v9515_v7, %v9514_v33  ;;  %v9536_v32 = vld [vmem:[#allocation117_spill] sm:$0xff]  ;;  %v9538_v33 = vld [vmem:[#allocation22_spill] sm:$0xff] }
 0x4be   : > { %4101 = vmatpush3.bf16.msra.mxu1 %v4531_v28  ;;  %4073 = vmatpush3.bf16.msra.mxu0 %v4533_v35  ;;  %9513 = vst [vmem:[#allocation105_spill] sm:$0xff] %v6776_v54  ;;  %9516 = vst [vmem:[#allocation97_spill] sm:$0xff] %v6780_v24  ;;  %v9517_v28 = vld [vmem:[#allocation10_spill] sm:$0xff]  ;;  %v2422_v47 = vpack.c.bf16 %v6776_v54, %v6788_v46 }
 0x4bf   : > { %v1404_v55 = vpop.permute.xlu1 %1403  ;;  %4102 = vmatprep.subr.bf16.mxu1 %v4532_v23  ;;  %v1419_v63 = vpop.permute.xlu0 %1418  ;;  %v9539_v7 = vld [vmem:[#allocation118_spill] sm:$0xff] }
 0x4c0   : > { %vm1432_vm2 = vcmp.eq.s32.totalorder %v1404_v55, 1  ;;  %vm1437_vm5 = vcmp.eq.s32.totalorder %v1419_v63, 1  ;;  %v9527_v55 = vld [vmem:[#allocation114_spill] sm:$0xff] }
 0x4c1   : > { %v6764_v36 = vsel %vm1432_vm2, %v9506_v61, %v9505_v51  ;;  %v9532_v51 = vld [vmem:[#allocation11_spill] sm:$0xff] }
 0x4c2   : > { %9507 = vst [vmem:[#allocation100_spill] sm:$0xff] %v6764_v36  ;;  %v1980_v29 = vpack.c.bf16 %v6764_v36, %v6760_v3  ;;  %4103 = vmatpush3.bf16.msra.mxu1 %v4532_v23  ;;  %v9524_v23 = vld [vmem:[#allocation112_spill] sm:$0xff]  ;;  %v9533_v61 = vld [vmem:[#allocation111_spill] sm:$0xff] }
 0x4c3   : > { %v1845_v31 = vpop.permute.xlu1 %1844  ;;  %4104 = vmatprep.subr.bf16.mxu1 %v4533_v35  ;;  %v6808_v49 = vsel %vm1437_vm5, %v9533_v61, %v9532_v51 }
 0x4c4   : > { %vm1873_vm3 = vcmp.eq.s32.totalorder %v1845_v31, 1  ;;  %4018 = vmatprep.mubr.bf16.mxu0 %v1980_v29  ;;  %9534 = vst [vmem:[#allocation107_spill] sm:$0xff] %v6808_v49 }
 0x4c5   : > { %v6784_v11 = vsel %vm1873_vm3, %v9518_v22, %v9517_v28  ;;  %4019 = vmatmul.mubr.bf16.gmra.mxu0 %v1981_v45  ;;  %v9535_v45 = vld [vmem:[#allocation19_spill] sm:$0xff] }
 0x4c6   : > { %9519 = vst [vmem:[#allocation96_spill] sm:$0xff] %v6784_v11  ;;  %v2421_v18 = vpack.c.bf16 %v6784_v11, %v6780_v24  ;;  %4105 = vmatpush3.bf16.msra.mxu1 %v4533_v35 }
 0x4c7   : > { %v1422_v9 = vpop.permute.xlu1 %1421  ;;  %v1413_v62 = vpop.permute.xlu0 %1412 }
 0x4c8   : > { %4050 = vmatprep.mubr.bf16.mxu1 %v2421_v18  ;;  %vm1438_vm4 = vcmp.eq.s32.totalorder %v1422_v9, 1  ;;  %vm1435_vm2 = vcmp.eq.s32.totalorder %v1413_v62, 1  ;;  %v9542_v18 = vld [vmem:[#allocation113_spill] sm:$0xff]  ;;  %v9544_v62 = vld [vmem:[#allocation18_spill] sm:$0xff] }
 0x4c9   : > { %4051 = vmatmul.mubr.bf16.gmra.mxu1 %v2422_v47  ;;  %v6796_v16 = vsel %vm1438_vm4, %v9524_v23, %v9523_v53  ;;  %v6800_v35 = vsel %vm1435_vm2, %v9527_v55, %v9526_v50  ;;  %v9545_v47 = vld [vmem:[#allocation115_spill] sm:$0xff]  ;;  %v6837_v23 = vld [vmem:[%s8620_s2] ss:$0 sm:$0xff] }
 0x4ca   : > { %9525 = vst [vmem:[#allocation95_spill] sm:$0xff] %v6796_v16  ;;  %9528 = vst [vmem:[#allocation104_spill] sm:$0xff] %v6800_v35  ;;  %v1983_v31 = vpack.c.bf16 %v6796_v16, %v6808_v49 }
 0x4cb   : > { %v1416_v15 = vpop.permute.xlu1 %1415  ;;  %v1854_v0 = vpop.permute.xlu0 %1853 }
 0x4cc   : > { %vm1436_vm0 = vcmp.eq.s32.totalorder %v1416_v15, 1  ;;  %vm1876_vm1 = vcmp.eq.s32.totalorder %v1854_v0, 1 }
 0x4cd   : > { %v6804_v58 = vsel %vm1436_vm0, %v9530_v5, %v9529_v56  ;;  %v6816_v2 = vsel %vm1876_vm1, %v9536_v32, %v9535_v45 }
 0x4ce   : > { %9531 = vst [vmem:[#allocation8_spill] sm:$0xff] %v6804_v58  ;;  %v1982_v52 = vpack.c.bf16 %v6804_v58, %v6800_v35  ;;  %9537 = vst [vmem:[#allocation9_spill] sm:$0xff] %v6816_v2 }
 0x4cf   : > { %v1857_v29 = vpop.permute.xlu1 %1856  ;;  %v1860_v63 = vpop.permute.xlu0 %1859 }
 0x4d0   : > { %vm1877_vm3 = vcmp.eq.s32.totalorder %v1857_v29, 1  ;;  %4022 = vmatprep.mubr.bf16.mxu0 %v1982_v52  ;;  %vm1878_vm4 = vcmp.eq.s32.totalorder %v1860_v63, 1 }
 0x4d1   : > { %v6820_v28 = vsel %vm1877_vm3, %v9539_v7, %v9538_v33  ;;  %4023 = vmatmul.mubr.bf16.gmra.mxu0 %v1983_v31  ;;  %v6826_v9 = vsel %vm1878_vm4, %v9542_v18, %v9541_v60  ;;  %vm9687_vm4 = vcmp.lt.f32.partialorder %v6580_v20, %v6529_v1  ;;  %v9694_v1 = vld [vmem:[#allocation59_spill] sm:$0xff] }
 0x4d2   : > { %9540 = vst [vmem:[#allocation109_spill] sm:$0xff] %v6820_v28  ;;  %v2423_v22 = vpack.c.bf16 %v6820_v28, %v6816_v2  ;;  %9543 = vst [vmem:[#allocation10_spill] sm:$0xff] %v6826_v9 }
 0x4d3   : > { %v1863_v43 = vpop.permute.xlu1 %1862 }
 0x4d4   : > { %vm1879_vm2 = vcmp.eq.s32.totalorder %v1863_v43, 1  ;;  %4054 = vmatprep.mubr.bf16.mxu1 %v2423_v22 }
 0x4d5   : > { %v6830_v15 = vsel %vm1879_vm2, %v9545_v47, %v9544_v62 }
 0x4d6   : > { %9546 = vst [vmem:[#allocation110_spill] sm:$0xff] %v6830_v15  ;;  %v2424_v0 = vpack.c.bf16 %v6830_v15, %v6826_v9 }
 0x4d8   : > { %4055 = vmatmul.mubr.bf16.gmra.mxu1 %v2424_v0 }
 0x561   : > { %v4012_v53 = vpop.f32.mrf.mxu0 }
 0x562   : > { %v2027_v50 = vadd.f32 %v6837_v23, %v4012_v53 }
 0x563   : > { %v2018_v55 = vpop.f32.mrf.mxu0 }
 0x564   : > { %4325 = vtanh.f32 %v2027_v50  ;;  %v2019_v56 = vadd.f32 %v6837_v23, %v2018_v55 }
 0x565   : > { %v4013_v5 = vpop.f32.mrf.mxu0 }
 0x566   : > { %v2030_v45 = vadd.f32 %v6837_v23, %v4013_v5 }
 0x567   : > { %v2021_v63 = vpop.f32.mrf.mxu0 }
 0x568   : > { %v2022_v7 = vadd.f32 %v6837_v23, %v2021_v63 }
 0x569   : > { %v4044_v51 = vpop.f32.mrf.mxu1 }
 0x56a   : > { %v2468_v61 = vadd.f32 %v6837_v23, %v4044_v51 }
 0x56b   : > { %v2459_v52 = vpop.f32.mrf.mxu1 }
 0x56c   : > { %4327 = vtanh.f32 %v2468_v61  ;;  %v2460_v29 = vadd.f32 %v6837_v23, %v2459_v52 }
 0x56d   : > { %4329 = vtanh.f32 %v2019_v56  ;;  %v4045_v31 = vpop.f32.mrf.mxu1 }
 0x56e   : > { %4331 = vtanh.f32 %v2460_v29  ;;  %v2471_v32 = vadd.f32 %v6837_v23, %v4045_v31 }
 0x56f   : > { %v2462_v33 = vpop.f32.mrf.mxu1 }
 0x570   : > { %4333 = vtanh.f32 %v2471_v32  ;;  %v2463_v43 = vadd.f32 %v6837_v23, %v2462_v33 }
 0x571   : > { %v6846_v22 = vpop.eup %4325  ;;  %4335 = vtanh.f32 %v2030_v45 }
 0x572   : > { %v2099_v60 = vmul.f32 %v6846_v22, %v6846_v22  ;;  %4337 = vtanh.f32 %v2022_v7 }
 0x573   : > { %4339 = vtanh.f32 %v2463_v43 }
 0x574   : > { %2117 = vadd.xlane.f32.xlu0 %v2099_v60 }
 0x575   : > { %v4016_v18 = vpop.f32.mrf.mxu0 }
 0x576   : > { %v2043_v62 = vadd.f32 %v6837_v23, %v4016_v18 }
 0x577   : > { %v2034_v47 = vpop.f32.mrf.mxu0 }
 0x578   : > { %4341 = vtanh.f32 %v2043_v62  ;;  %v2035_v0 = vadd.f32 %v6837_v23, %v2034_v47 }
 0x579   : > { %v6853_v53 = vpop.eup %4327  ;;  %v4048_v50 = vpop.f32.mrf.mxu1 }
 0x57a   : > { %9547 = vst [vmem:[#allocation99_spill] sm:$0xff] %v6853_v53  ;;  %v6855_v55 = vpop.eup %4329  ;;  %v2484_v56 = vadd.f32 %v6837_v23, %v4048_v50  ;;  %v2540_v5 = vmul.f32 %v6853_v53, %v6853_v53  ;;  %4343 = vtanh.f32 %v2035_v0  ;;  %v4017_v52 = vpop.f32.mrf.mxu0 }
 0x57b   : > { %v6860_v51 = vpop.eup %4331  ;;  %v2475_v61 = vpop.f32.mrf.mxu1  ;;  %v2097_v33 = vmul.f32 %v6855_v55, %v6855_v55  ;;  %v2046_v43 = vadd.f32 %v6837_v23, %v4017_v52 }
 0x57c   : > { %9548 = vst [vmem:[#allocation106_spill] sm:$0xff] %v6860_v51  ;;  %v2476_v29 = vadd.f32 %v6837_v23, %v2475_v61  ;;  %2558 = vadd.xlane.f32.xlu0 %v2540_v5  ;;  %v2538_v63 = vmul.f32 %v6860_v51, %v6860_v51  ;;  %4345 = vtanh.f32 %v2484_v56  ;;  %v2037_v18 = vpop.f32.mrf.mxu0 }
 0x57d   : > { %v6865_v31 = vpop.eup %4333  ;;  %v4049_v45 = vpop.f32.mrf.mxu1  ;;  %v2038_v5 = vadd.f32 %v6837_v23, %v2037_v18 }
 0x57e   : > { %9549 = vst [vmem:[#allocation14_spill] sm:$0xff] %v6865_v31  ;;  %v2487_v32 = vadd.f32 %v6837_v23, %v4049_v45  ;;  %2554 = vadd.xlane.f32.xlu1 %v2538_v63  ;;  %v6870_v7 = vpop.eup %4335  ;;  %4347 = vtanh.f32 %v2476_v29  ;;  %v2541_v47 = vmul.f32 %v6865_v31, %v6865_v31 }
 0x57f   : > { %v2478_v60 = vpop.f32.mrf.mxu1  ;;  %v6876_v0 = vpop.eup %4337  ;;  %v2100_v50 = vmul.f32 %v6870_v7, %v6870_v7 }
 0x580   : > { %4349 = vtanh.f32 %v2487_v32  ;;  %v2479_v62 = vadd.f32 %v6837_v23, %v2478_v60  ;;  %2113 = vadd.xlane.f32.xlu0 %v2097_v33  ;;  %v6880_v56 = vpop.eup %4339  ;;  %v2098_v61 = vmul.f32 %v6876_v0, %v6876_v0 }
 0x581   : > { %9550 = vst [vmem:[#allocation112_spill] sm:$0xff] %v6880_v56  ;;  %4351 = vtanh.f32 %v2046_v43  ;;  %v2539_v45 = vmul.f32 %v6880_v56, %v6880_v56 }
 0x582   : > { %2560 = vadd.xlane.f32.xlu1 %v2541_v47  ;;  %4353 = vtanh.f32 %v2479_v62 }
 0x583   : > { %4355 = vtanh.f32 %v2038_v5 }
 0x584   : > { %2119 = vadd.xlane.f32.xlu0 %v2100_v50 }
 0x585   : > { %v6885_v52 = vpop.eup %4341  ;;  %v4020_v29 = vpop.f32.mrf.mxu0 }
 0x586   : > { %9551 = vst [vmem:[#allocation17_spill] sm:$0xff] %v6885_v52  ;;  %v2059_v63 = vadd.f32 %v6837_v23, %v4020_v29  ;;  %2115 = vadd.xlane.f32.xlu1 %v2098_v61  ;;  %v2103_v43 = vmul.f32 %v6885_v52, %v6885_v52 }
 0x587   : > { %v2050_v32 = vpop.f32.mrf.mxu0  ;;  %v6893_v60 = vpop.eup %4343 }
 0x588   : > { %4357 = vtanh.f32 %v2059_v63  ;;  %v2051_v33 = vadd.f32 %v6837_v23, %v2050_v32  ;;  %2556 = vadd.xlane.f32.xlu0 %v2539_v45  ;;  %9552 = vst [vmem:[#allocation114_spill] sm:$0xff] %v6893_v60  ;;  %v2101_v45 = vmul.f32 %v6893_v60, %v6893_v60 }
 0x589   : > { %v4052_v18 = vpop.f32.mrf.mxu1  ;;  %v6895_v62 = vpop.eup %4345 }
 0x58a   : > { %9553 = vst [vmem:[#allocation20_spill] sm:$0xff] %v6895_v62  ;;  %v2500_v47 = vadd.f32 %v6837_v23, %v4052_v18  ;;  %2125 = vadd.xlane.f32.xlu1 %v2103_v43  ;;  %v4021_v50 = vpop.f32.mrf.mxu0  ;;  %v2544_v5 = vmul.f32 %v6895_v62, %v6895_v62  ;;  %4359 = vtanh.f32 %v2051_v33 }
 0x58b   : > { %v2491_v61 = vpop.f32.mrf.mxu1  ;;  %v6900_v29 = vpop.eup %4347  ;;  %v2062_v18 = vadd.f32 %v6837_v23, %v4021_v50 }
 0x58c   : > { %9554 = vst [vmem:[#allocation116_spill] sm:$0xff] %v6900_v29  ;;  %v2492_v63 = vadd.f32 %v6837_v23, %v2491_v61  ;;  %4361 = vtanh.f32 %v2500_v47  ;;  %2566 = vadd.xlane.f32.xlu0 %v2544_v5  ;;  %v2053_v15 = vpop.f32.mrf.mxu0  ;;  %v2542_v33 = vmul.f32 %v6900_v29, %v6900_v29 }
 0x58d   : > { %v6905_v32 = vpop.eup %4349  ;;  %v4053_v9 = vpop.f32.mrf.mxu1  ;;  %v2054_v50 = vadd.f32 %v6837_v23, %v2053_v15 }
 0x58e   : > { %9555 = vst [vmem:[#allocation11_spill] sm:$0xff] %v6905_v32  ;;  %v2503_v43 = vadd.f32 %v6837_v23, %v4053_v9  ;;  %2121 = vadd.xlane.f32.xlu1 %v2101_v45  ;;  %4363 = vtanh.f32 %v2492_v63  ;;  %v6911_v61 = vpop.eup %4351  ;;  %v2545_v47 = vmul.f32 %v6905_v32, %v6905_v32 }
 0x58f   : > { %v2494_v2 = vpop.f32.mrf.mxu1  ;;  %9556 = vst [vmem:[#allocation111_spill] sm:$0xff] %v6911_v61  ;;  %v6916_v5 = vpop.eup %4353  ;;  %v2104_v63 = vmul.f32 %v6911_v61, %v6911_v61  ;;  %v9575_v61 = vld [vmem:[#allocation21_spill] sm:$0xff] }
 0x590   : > { %4365 = vtanh.f32 %v2503_v43  ;;  %v2495_v28 = vadd.f32 %v6837_v23, %v2494_v2  ;;  %9557 = vst [vmem:[#allocation19_spill] sm:$0xff] %v6916_v5  ;;  %2562 = vadd.xlane.f32.xlu0 %v2542_v33  ;;  %v6921_v45 = vpop.eup %4355  ;;  %v2543_v2 = vmul.f32 %v6916_v5, %v6916_v5 }
 0x591   : > { %v4024_v9 = vpop.f32.mrf.mxu0  ;;  %4367 = vtanh.f32 %v2062_v18  ;;  %9558 = vst [vmem:[#allocation117_spill] sm:$0xff] %v6921_v45  ;;  %v2102_v15 = vmul.f32 %v6921_v45, %v6921_v45 }
 0x592   : > { %2568 = vadd.xlane.f32.xlu1 %v2545_v47  ;;  %4369 = vtanh.f32 %v2495_v28  ;;  %v2075_v43 = vadd.f32 %v6837_v23, %v4024_v9 }
 0x593   : > { %v2066_v35 = vpop.f32.mrf.mxu0  ;;  %4371 = vtanh.f32 %v2054_v50 }
 0x594   : > { %2127 = vadd.xlane.f32.xlu0 %v2104_v63  ;;  %4373 = vtanh.f32 %v2075_v43  ;;  %v2067_v18 = vadd.f32 %v6837_v23, %v2066_v35 }
 0x595   : > { %v6926_v16 = vpop.eup %4357 }
 0x596   : > { %9559 = vst [vmem:[#allocation22_spill] sm:$0xff] %v6926_v16  ;;  %2564 = vadd.xlane.f32.xlu1 %v2543_v2  ;;  %v2107_v28 = vmul.f32 %v6926_v16, %v6926_v16  ;;  %v4025_v2 = vpop.f32.mrf.mxu0 }
 0x597   : > { %v6933_v47 = vpop.eup %4359 }
 0x598   : > { %v4056_v33 = vpop.f32.mrf.mxu1  ;;  %9560 = vst [vmem:[#allocation118_spill] sm:$0xff] %v6933_v47  ;;  %2123 = vadd.xlane.f32.xlu0 %v2102_v15  ;;  %v2105_v15 = vmul.f32 %v6933_v47, %v6933_v47  ;;  %v2069_v24 = vpop.f32.mrf.mxu0 }
 0x599   : > { %v2516_v9 = vadd.f32 %v6837_v23, %v4056_v33  ;;  %v6936_v58 = vpop.eup %4361 }
 0x59a   : > { %9561 = vst [vmem:[#allocation13_spill] sm:$0xff] %v6936_v58  ;;  %2133 = vadd.xlane.f32.xlu1 %v2107_v28  ;;  %v2507_v63 = vpop.f32.mrf.mxu1  ;;  %v2548_v43 = vmul.f32 %v6936_v58, %v6936_v58 }
 0x59b   : > { %4375 = vtanh.f32 %v2516_v9  ;;  %v2508_v50 = vadd.f32 %v6837_v23, %v2507_v63  ;;  %v6941_v35 = vpop.eup %4363  ;;  %v6948_v9 = vpop.permute.xlu0 %1471  ;;  %v2078_v63 = vadd.f32 %v6837_v23, %v4025_v2  ;;  %v2070_v2 = vadd.f32 %v6837_v23, %v2069_v24 }
 0x59c   : > { %9562 = vst [vmem:[#allocation113_spill] sm:$0xff] %v6941_v35  ;;  %4377 = vtanh.f32 %v2067_v18  ;;  %v4057_v49 = vpop.f32.mrf.mxu1  ;;  %2574 = vadd.xlane.f32.xlu0 %v2548_v43  ;;  %v2546_v18 = vmul.f32 %v6941_v35, %v6941_v35 }
 0x59d   : > { %v6945_v54 = vpop.eup %4365  ;;  %v2519_v33 = vadd.f32 %v6837_v23, %v4057_v49  ;;  %4379 = vtanh.f32 %v2508_v50 }
 0x59e   : > { %9563 = vst [vmem:[#allocation18_spill] sm:$0xff] %v6945_v54  ;;  %2129 = vadd.xlane.f32.xlu1 %v2105_v15  ;;  %v2510_v28 = vpop.f32.mrf.mxu1  ;;  %v6953_v11 = vpop.eup %4367  ;;  %v2549_v43 = vmul.f32 %v6945_v54, %v6945_v54 }
 0x59f   : > { %9564 = vst [vmem:[#allocation115_spill] sm:$0xff] %v6953_v11  ;;  %4381 = vtanh.f32 %v2519_v33  ;;  %v2511_v58 = vadd.f32 %v6837_v23, %v2510_v28  ;;  %v6958_v49 = vpop.eup %4369  ;;  %v2108_v50 = vmul.f32 %v6953_v11, %v6953_v11  ;;  %v1476_v35 = vpop.permute.xlu0 %1475 }
 0x5a0   : > { %9565 = vst [vmem:[#allocation141_spill] sm:$0xff] %v6958_v49  ;;  %2570 = vadd.xlane.f32.xlu0 %v2546_v18  ;;  %4383 = vtanh.f32 %v2078_v63  ;;  %v6963_v15 = vpop.eup %4371  ;;  %v2547_v33 = vmul.f32 %v6958_v49, %v6958_v49  ;;  %v7049_v27 = vsel %vm1345_vm6, %v9575_v61, %v1476_v35  ;;  %v9584_v35 = vld [vmem:[#allocation39_spill] sm:$0xff] }
 0x5a1   : > { %9566 = vst [vmem:[#allocation142_spill] sm:$0xff] %v6963_v15  ;;  %4385 = vtanh.f32 %v2511_v58  ;;  %v6967_v28 = vpop.eup %4373  ;;  %v2106_v63 = vmul.f32 %v6963_v15, %v6963_v15  ;;  %v6977_v58 = vpop.permute.xlu1 %1473  ;;  %v7078_v4 = vsel %vm1343_vm7, %v9584_v35, %v6948_v9 }
 0x5a2   : > { %2576 = vadd.xlane.f32.xlu1 %v2549_v43  ;;  %9567 = vst [vmem:[#allocation143_spill] sm:$0xff] %v6967_v28  ;;  %4387 = vtanh.f32 %v2070_v2  ;;  %v2111_v24 = vmul.f32 %v6967_v28, %v6967_v28 }
 0x5a4   : > { %2135 = vadd.xlane.f32.xlu0 %v2108_v50  ;;  %v6981_v50 = vpop.permute.xlu0 %1479 }
 0x5a5   : > { %v6989_v28 = vpop.permute.xlu1 %1477 }
 0x5a6   : > { %2572 = vadd.xlane.f32.xlu1 %v2547_v33 }
 0x5a8   : > { %v6971_v18 = vpop.eup %4375  ;;  %2131 = vadd.xlane.f32.xlu0 %v2106_v63  ;;  %v6999_v46 = vpop.permute.xlu0 %1483 }
 0x5a9   : > { %9568 = vst [vmem:[#allocation144_spill] sm:$0xff] %v6971_v18  ;;  %v6975_v23 = vpop.eup %4377  ;;  %v2552_v43 = vmul.f32 %v6971_v18, %v6971_v18 }
 0x5aa   : > { %9569 = vst [vmem:[#allocation145_spill] sm:$0xff] %v6975_v23  ;;  %2141 = vadd.xlane.f32.xlu1 %v2111_v24  ;;  %v6983_v2 = vpop.eup %4379  ;;  %v2109_v33 = vmul.f32 %v6975_v23, %v6975_v23 }
 0x5ab   : > { %9570 = vst [vmem:[#allocation146_spill] sm:$0xff] %v6983_v2  ;;  %v2550_v63 = vmul.f32 %v6983_v2, %v6983_v2  ;;  %v7007_v2 = vpop.permute.xlu1 %1481 }
 0x5ac   : > { %v6987_v54 = vpop.eup %4381  ;;  %2582 = vadd.xlane.f32.xlu0 %v2552_v43  ;;  %v7009_v11 = vpop.permute.xlu0 %1487 }
 0x5ad   : > { %9571 = vst [vmem:[#allocation147_spill] sm:$0xff] %v6987_v54  ;;  %v6993_v49 = vpop.eup %4383  ;;  %v2553_v24 = vmul.f32 %v6987_v54, %v6987_v54 }
 0x5ae   : > { %2137 = vadd.xlane.f32.xlu1 %v2109_v33  ;;  %9572 = vst [vmem:[#allocation148_spill] sm:$0xff] %v6993_v49  ;;  %v6997_v18 = vpop.eup %4385  ;;  %v2112_v43 = vmul.f32 %v6993_v49, %v6993_v49 }
 0x5af   : > { %9573 = vst [vmem:[#allocation149_spill] sm:$0xff] %v6997_v18  ;;  %v7003_v33 = vpop.eup %4387  ;;  %v2551_v23 = vmul.f32 %v6997_v18, %v6997_v18 }
 0x5b0   : > { %2578 = vadd.xlane.f32.xlu0 %v2550_v63  ;;  %9574 = vst [vmem:[#allocation150_spill] sm:$0xff] %v7003_v33  ;;  %v2110_v54 = vmul.f32 %v7003_v33, %v7003_v33  ;;  %v7013_v63 = vpop.permute.xlu1 %1485 }
 0x5b2   : > { %2584 = vadd.xlane.f32.xlu1 %v2553_v24  ;;  %v7015_v24 = vpop.permute.xlu0 %1491 }
 0x5b4   : > { %2143 = vadd.xlane.f32.xlu0 %v2112_v43  ;;  %v7017_v49 = vpop.permute.xlu1 %1489 }
 0x5b6   : > { %2580 = vadd.xlane.f32.xlu1 %v2551_v23  ;;  %v7019_v39 = vpop.permute.xlu0 %1495 }
 0x5b8   : > { %2139 = vadd.xlane.f32.xlu0 %v2110_v54  ;;  %v7021_v47 = vpop.permute.xlu1 %1493 }
 0x5ba   : > { %v7023_v18 = vpop.permute.xlu0 %1499 }
 0x5bc   : > { %v7025_v43 = vpop.permute.xlu1 %1497 }
 0x5be   : > { %v1913_v23 = vpop.permute.xlu0 %1912 }
 0x5c0   : > { %v7027_v3 = vpop.permute.xlu1 %1501 }
 0x5c2   : > { %v1917_v15 = vpop.permute.xlu0 %1916 }
 0x5c3   : > { %v7064_v56 = vsel %vm1786_vm9, %v9579_v10, %v1917_v15  ;;  %v9588_v10 = vld [vmem:[#allocation46_spill] sm:$0xff] }
 0x5c4   : > { %v1915_v33 = vpop.permute.xlu1 %1914 }
 0x5c6   : > { %v1921_v54 = vpop.permute.xlu0 %1920 }
 0x5c8   : > { %v1919_v36 = vpop.permute.xlu1 %1918 }
 0x5ca   : > { %v1925_v16 = vpop.permute.xlu0 %1924 }
 0x5cc   : > { %v7029_v6 = vpop.permute.xlu1 %1922 }
 0x5ce   : > { %v7031_v62 = vpop.permute.xlu0 %1928 }
 0x5d0   : > { %v7033_v30 = vpop.permute.xlu1 %1926 }
 0x5d2   : > { %v7035_v5 = vpop.permute.xlu0 %1932 }
 0x5d4   : > { %v7037_v12 = vpop.permute.xlu1 %1930 }
 0x5d6   : > { %v7039_v29 = vpop.permute.xlu0 %1936 }
 0x5d8   : > { %v7041_v32 = vpop.permute.xlu1 %1934 }
 0x5da   : > { %v7043_v8 = vpop.permute.xlu0 %1940 }
 0x5dc   : > { %v7051_v45 = vpop.permute.xlu1 %1938 }
 0x5e0   : > { %v7058_v14 = vpop.permute.xlu1 %1942 }
 0x5fd   : > { %v7053_v19 = vpop.xlane.xlu0 %2117 }
 0x5fe   : > { %9578 = vst [vmem:[#allocation21_spill] sm:$0xff] %v7053_v19  ;;  %v2147_v52 = vsub.f32 %v7049_v27, %v7053_v19  ;;  %v9592_v19 = vld [vmem:[#allocation45_spill] sm:$0xff] }
 0x600   : > { %2181 = vrot.lane.b32.xlu1 %v2147_v52, %s4697_s30  ;;  %v7099_v52 = vsel %vm1784_vm11, %v9592_v19, %v1913_v23  ;;  %v9600_v19 = vld [vmem:[#allocation12_spill] sm:$0xff] }
 0x605   : > { %v7066_v25 = vpop.xlane.xlu0 %2558 }
 0x606   : > { %9582 = vst [vmem:[#allocation27_spill] sm:$0xff] %v7066_v25  ;;  %v2588_v60 = vsub.f32 %v7064_v56, %v7066_v25  ;;  %v7088_v25 = vsel %vm1787_vm13, %v9588_v10, %v1919_v36  ;;  %v9596_v36 = vld [vmem:[#allocation24_spill] sm:$0xff] }
 0x607   : > { %v7070_v61 = vpop.xlane.xlu1 %2554 }
 0x608   : > { %9583 = vst [vmem:[#allocation60_spill] sm:$0xff] %v7070_v61  ;;  %2622 = vrot.lane.b32.xlu1 %v2588_v60, %s4697_s30  ;;  %v2586_v53 = vsub.f32 %v7099_v52, %v7070_v61 }
 0x609   : > { %v7080_v51 = vpop.xlane.xlu0 %2113 }
 0x60a   : > { %9587 = vst [vmem:[#allocation40_spill] sm:$0xff] %v7080_v51  ;;  %v2145_v48 = vsub.f32 %v7078_v4, %v7080_v51 }
 0x60b   : > { %v7090_v34 = vpop.xlane.xlu1 %2560 }
 0x60c   : > { %9591 = vst [vmem:[#allocation64_spill] sm:$0xff] %v7090_v34  ;;  %v2589_v60 = vsub.f32 %v7088_v25, %v7090_v34  ;;  %2177 = vrot.lane.b32.xlu1 %v2145_v48, %s4697_s30  ;;  %v7111_v34 = vsel %vm1344_vm12, %v9596_v36, %v6977_v58  ;;  %v9604_v36 = vld [vmem:[#allocation41_spill] sm:$0xff] }
 0x60d   : > { %v7101_v51 = vpop.xlane.xlu0 %2119 }
 0x60e   : > { %9595 = vst [vmem:[#allocation32_spill] sm:$0xff] %v7101_v51  ;;  %2624 = vrot.lane.b32.xlu0 %v2589_v60, %s4697_s30  ;;  %v7123_v60 = vsel %vm1346_vm8, %v9600_v19, %v6989_v28  ;;  %v9608_v28 = vld [vmem:[#allocation42_spill] sm:$0xff]  ;;  %v9617_v19 = vld [vmem:[#allocation85_spill] sm:$0xff] }
 0x60f   : > { %v7113_v48 = vpop.xlane.xlu1 %2115  ;;  %v2148_v58 = vsub.f32 %v7123_v60, %v7101_v51  ;;  %v7145_v51 = vsel %vm1790_vm10, %v9608_v28, %v1925_v16  ;;  %v9616_v28 = vld [vmem:[#allocation49_spill] sm:$0xff] }
 0x610   : > { %9599 = vst [vmem:[#allocation39_spill] sm:$0xff] %v7113_v48  ;;  %v2146_v23 = vsub.f32 %v7111_v34, %v7113_v48  ;;  %2618 = vrot.lane.b32.xlu1 %v2586_v53, %s4697_s30  ;;  %v7134_v48 = vsel %vm1785_vm14, %v9604_v36, %v1915_v33  ;;  %v9612_v33 = vld [vmem:[#allocation43_spill] sm:$0xff]  ;;  %v9623_v36 = vld [vmem:[#allocation76_spill] sm:$0xff] }
 0x611   : > { %v7125_v61 = vpop.xlane.xlu0 %2556  ;;  %v7155_v15 = vsel %vm1349_vm15, %v9612_v33, %v6999_v46  ;;  %v9621_v46 = vld [vmem:[#allocation15_spill] sm:$0xff]  ;;  %v9622_v33 = vld [vmem:[#allocation34_spill] sm:$0xff] }
 0x612   : > { %9603 = vst [vmem:[#allocation63_spill] sm:$0xff] %v7125_v61  ;;  %2179 = vrot.lane.b32.xlu0 %v2146_v23, %s4697_s30  ;;  %v2587_v9 = vsub.f32 %v7134_v48, %v7125_v61  ;;  %vm9624_vm7 = vcmp.lt.f32.partialorder %v9622_v33, %v9623_v36  ;;  %v9633_v36 = vld [vmem:[#allocation75_spill] sm:$0xff] }
 0x613   : > { %v7136_v53 = vpop.xlane.xlu1 %2125  ;;  %v7178_v10 = vsel %vm9624_vm7, %v9621_v46, %v6981_v50  ;;  %v9631_v50 = vld [vmem:[#allocation52_spill] sm:$0xff]  ;;  %v9632_v46 = vld [vmem:[#allocation78_spill] sm:$0xff] }
 0x614   : > { %9607 = vst [vmem:[#allocation62_spill] sm:$0xff] %v7136_v53  ;;  %2183 = vrot.lane.b32.xlu1 %v2148_v58, %s4697_s30  ;;  %v2151_v16 = vsub.f32 %v7155_v15, %v7136_v53  ;;  %vm9634_vm11 = vcmp.lt.f32.partialorder %v9632_v46, %v9633_v36  ;;  %v9643_v36 = vld [vmem:[#allocation81_spill] sm:$0xff] }
 0x615   : > { %v7147_v23 = vpop.xlane.xlu0 %2566 }
 0x616   : > { %9611 = vst [vmem:[#allocation46_spill] sm:$0xff] %v7147_v23  ;;  %2620 = vrot.lane.b32.xlu0 %v2587_v9, %s4697_s30  ;;  %v2592_v58 = vsub.f32 %v7145_v51, %v7147_v23  ;;  %v9618_v9 = vld [vmem:[#allocation82_spill] sm:$0xff] }
 0x617   : > { %v7159_v61 = vpop.xlane.xlu1 %2121  ;;  %vm9619_vm6 = vcmp.lt.f32.partialorder %v9617_v19, %v9618_v9  ;;  %v9628_v19 = vld [vmem:[#allocation74_spill] sm:$0xff] }
 0x618   : > { %9615 = vst [vmem:[#allocation71_spill] sm:$0xff] %v7159_v61  ;;  %2630 = vrot.lane.b32.xlu1 %v2592_v58, %s4697_s30  ;;  %v7168_v35 = vsel %vm9619_vm6, %v9616_v28, %v1921_v54  ;;  %v2149_v54 = vsub.f32 %v7178_v10, %v7159_v61  ;;  %v9626_v28 = vld [vmem:[#allocation23_spill] sm:$0xff]  ;;  %vm9695_vm6 = vcmp.lt.f32.partialorder %v6567_v37, %v6559_v17 }
 0x619   : > { %v7170_v31 = vpop.xlane.xlu0 %2562 }
 0x61a   : > { %9620 = vst [vmem:[#allocation67_spill] sm:$0xff] %v7170_v31  ;;  %2189 = vrot.lane.b32.xlu0 %v2151_v16, %s4697_s30  ;;  %v2590_v58 = vsub.f32 %v7168_v35, %v7170_v31  ;;  %v9627_v16 = vld [vmem:[#allocation37_spill] sm:$0xff]  ;;  %v7202_v31 = vsel %vm9634_vm11, %v9631_v50, %v7033_v30 }
 0x61b   : > { %v7182_v53 = vpop.xlane.xlu1 %2568  ;;  %vm9629_vm9 = vcmp.lt.f32.partialorder %v9627_v16, %v9628_v19  ;;  %v9638_v16 = vld [vmem:[#allocation80_spill] sm:$0xff]  ;;  %v9641_v30 = vld [vmem:[#allocation25_spill] sm:$0xff] }
 0x61c   : > { %9625 = vst [vmem:[#allocation45_spill] sm:$0xff] %v7182_v53  ;;  %2626 = vrot.lane.b32.xlu1 %v2590_v58, %s4697_s30  ;;  %v7192_v9 = vsel %vm9629_vm9, %v9626_v28, %v7013_v63  ;;  %v2593_v63 = vsub.f32 %v7202_v31, %v7182_v53  ;;  %v9636_v28 = vld [vmem:[#allocation48_spill] sm:$0xff]  ;;  %v9642_v50 = vld [vmem:[#allocation77_spill] sm:$0xff] }
 0x61d   : > { %v7194_v33 = vpop.xlane.xlu0 %2127  ;;  %vm9644_vm12 = vcmp.lt.f32.partialorder %v9642_v50, %v9643_v36  ;;  %v9653_v36 = vld [vmem:[#allocation83_spill] sm:$0xff] }
 0x61e   : > { %9630 = vst [vmem:[#allocation33_spill] sm:$0xff] %v7194_v33  ;;  %2185 = vrot.lane.b32.xlu0 %v2149_v54, %s4697_s30  ;;  %v2152_v58 = vsub.f32 %v7192_v9, %v7194_v33  ;;  %v9637_v54 = vld [vmem:[#allocation35_spill] sm:$0xff]  ;;  %v7226_v33 = vsel %vm9644_vm12, %v9641_v30, %v7029_v6  ;;  %v9651_v6 = vld [vmem:[#allocation44_spill] sm:$0xff]  ;;  %v9652_v30 = vld [vmem:[#allocation38_spill] sm:$0xff]  ;;  %vm9716_vm12 = vcmp.lt.f32.partialorder %v6602_v44, %v6599_v40 }
 0x61f   : > { %v7206_v61 = vpop.xlane.xlu1 %2564  ;;  %vm9639_vm8 = vcmp.lt.f32.partialorder %v9637_v54, %v9638_v16  ;;  %v9648_v54 = vld [vmem:[#allocation119_spill] sm:$0xff]  ;;  %vm9654_vm15 = vcmp.lt.f32.partialorder %v9652_v30, %v9653_v36 }
 0x620   : > { %9635 = vst [vmem:[#allocation65_spill] sm:$0xff] %v7206_v61  ;;  %2191 = vrot.lane.b32.xlu1 %v2152_v58, %s4697_s30  ;;  %v7216_v19 = vsel %vm9639_vm8, %v9636_v28, %v7007_v2  ;;  %v2591_v2 = vsub.f32 %v7226_v33, %v7206_v61  ;;  %v9646_v28 = vld [vmem:[#allocation47_spill] sm:$0xff] }
 0x621   : > { %v7218_v46 = vpop.xlane.xlu0 %2123  ;;  %v9663_v36 = vld [vmem:[#allocation123_spill] sm:$0xff] }
 0x622   : > { %9640 = vst [vmem:[#allocation24_spill] sm:$0xff] %v7218_v46  ;;  %2632 = vrot.lane.b32.xlu0 %v2593_v63, %s4697_s30  ;;  %v2150_v58 = vsub.f32 %v7216_v19, %v7218_v46  ;;  %v9647_v63 = vld [vmem:[#allocation120_spill] sm:$0xff]  ;;  %v7250_v46 = vsel %vm9654_vm15, %v9651_v6, %v7015_v24  ;;  %v9661_v24 = vld [vmem:[#allocation51_spill] sm:$0xff] }
 0x623   : > { %v7230_v53 = vpop.xlane.xlu1 %2133  ;;  %vm9649_vm13 = vcmp.lt.f32.partialorder %v9647_v63, %v9648_v54  ;;  %v9658_v63 = vld [vmem:[#allocation127_spill] sm:$0xff]  ;;  %v9662_v6 = vld [vmem:[#allocation124_spill] sm:$0xff] }
 0x624   : > { %9645 = vst [vmem:[#allocation69_spill] sm:$0xff] %v7230_v53  ;;  %2187 = vrot.lane.b32.xlu1 %v2150_v58, %s4697_s30  ;;  %v7240_v16 = vsel %vm9649_vm13, %v9646_v28, %v7035_v5  ;;  %v2155_v5 = vsub.f32 %v7250_v46, %v7230_v53  ;;  %v9656_v28 = vld [vmem:[#allocation53_spill] sm:$0xff]  ;;  %vm9664_vm10 = vcmp.lt.f32.partialorder %v9662_v6, %v9663_v36  ;;  %v9673_v36 = vld [vmem:[#allocation122_spill] sm:$0xff] }
 0x625   : > { %v7242_v50 = vpop.xlane.xlu0 %2574 }
 0x626   : > { %9650 = vst [vmem:[#allocation30_spill] sm:$0xff] %v7242_v50  ;;  %2628 = vrot.lane.b32.xlu0 %v2591_v2, %s4697_s30  ;;  %v2596_v58 = vsub.f32 %v7240_v16, %v7242_v50  ;;  %v9657_v2 = vld [vmem:[#allocation128_spill] sm:$0xff]  ;;  %v7274_v50 = vsel %vm9664_vm10, %v9661_v24, %v7009_v11  ;;  %v9671_v11 = vld [vmem:[#allocation50_spill] sm:$0xff]  ;;  %v9672_v24 = vld [vmem:[#allocation125_spill] sm:$0xff] }
 0x627   : > { %v7254_v61 = vpop.xlane.xlu1 %2129  ;;  %vm9659_vm14 = vcmp.lt.f32.partialorder %v9657_v2, %v9658_v63  ;;  %v9668_v2 = vld [vmem:[#allocation84_spill] sm:$0xff]  ;;  %vm9674_vm0 = vcmp.lt.f32.partialorder %v9672_v24, %v9673_v36  ;;  %v9683_v36 = vld [vmem:[#allocation130_spill] sm:$0xff] }
 0x628   : > { %9655 = vst [vmem:[#allocation12_spill] sm:$0xff] %v7254_v61  ;;  %2638 = vrot.lane.b32.xlu1 %v2596_v58, %s4697_s30  ;;  %v7264_v54 = vsel %vm9659_vm14, %v9656_v28, %v7031_v62  ;;  %v2153_v62 = vsub.f32 %v7274_v50, %v7254_v61  ;;  %v9666_v28 = vld [vmem:[#allocation16_spill] sm:$0xff] }
 0x629   : > { %v7266_v30 = vpop.xlane.xlu0 %2570 }
 0x62a   : > { %9660 = vst [vmem:[#allocation68_spill] sm:$0xff] %v7266_v30  ;;  %2197 = vrot.lane.b32.xlu0 %v2155_v5, %s4697_s30  ;;  %v2594_v58 = vsub.f32 %v7264_v54, %v7266_v30  ;;  %v9667_v5 = vld [vmem:[#allocation121_spill] sm:$0xff]  ;;  %v7298_v30 = vsel %vm9674_vm0, %v9671_v11, %v7041_v32  ;;  %v9681_v32 = vld [vmem:[#allocation55_spill] sm:$0xff] }
 0x62b   : > { %v7278_v53 = vpop.xlane.xlu1 %2576  ;;  %vm9669_vm5 = vcmp.lt.f32.partialorder %v9667_v5, %v9668_v2  ;;  %v9678_v5 = vld [vmem:[#allocation126_spill] sm:$0xff]  ;;  %v9682_v11 = vld [vmem:[#allocation133_spill] sm:$0xff] }
 0x62c   : > { %9665 = vst [vmem:[#allocation66_spill] sm:$0xff] %v7278_v53  ;;  %2634 = vrot.lane.b32.xlu1 %v2594_v58, %s4697_s30  ;;  %v7288_v63 = vsel %vm9669_vm5, %v9666_v28, %v7021_v47  ;;  %v2597_v47 = vsub.f32 %v7298_v30, %v7278_v53  ;;  %v9676_v28 = vld [vmem:[#allocation28_spill] sm:$0xff]  ;;  %vm9684_vm3 = vcmp.lt.f32.partialorder %v9682_v11, %v9683_v36 }
 0x62d   : > { %v7290_v6 = vpop.xlane.xlu0 %2135 }
 0x62e   : > { %9670 = vst [vmem:[#allocation41_spill] sm:$0xff] %v7290_v6  ;;  %2193 = vrot.lane.b32.xlu0 %v2153_v62, %s4697_s30  ;;  %v2156_v58 = vsub.f32 %v7288_v63, %v7290_v6  ;;  %v9677_v62 = vld [vmem:[#allocation129_spill] sm:$0xff]  ;;  %v7322_v6 = vsel %vm9684_vm3, %v9681_v32, %v7037_v12  ;;  %v9689_v12 = vld [vmem:[#allocation54_spill] sm:$0xff]  ;;  %v9691_v32 = vld [vmem:[#allocation131_spill] sm:$0xff] }
 0x62f   : > { %v7302_v61 = vpop.xlane.xlu1 %2572  ;;  %vm9679_vm1 = vcmp.lt.f32.partialorder %v9677_v62, %v9678_v5  ;;  %v9690_v5 = vld [vmem:[#allocation132_spill] sm:$0xff] }
 0x630   : > { %9675 = vst [vmem:[#allocation72_spill] sm:$0xff] %v7302_v61  ;;  %2199 = vrot.lane.b32.xlu1 %v2156_v58, %s4697_s30  ;;  %v7312_v2 = vsel %vm9679_vm1, %v9676_v28, %v7017_v49  ;;  %v2595_v49 = vsub.f32 %v7322_v6, %v7302_v61  ;;  %v9686_v28 = vld [vmem:[#allocation56_spill] sm:$0xff]  ;;  %vm9692_vm2 = vcmp.lt.f32.partialorder %v9690_v5, %v9691_v32  ;;  %v7506_v61 = vld [vmem:[%s5168_s27 + $0x8] sm:$0xff] }
 0x631   : > { %v7314_v24 = vpop.xlane.xlu0 %2131  ;;  %v7346_v11 = vsel %vm9692_vm2, %v9689_v12, %v7023_v18  ;;  %v9697_v18 = vld [vmem:[#allocation57_spill] sm:$0xff]  ;;  %9726 = vst [vmem:[#allocation75_spill] sm:$0xff] %v7506_v61 }
 0x632   : > { %9680 = vst [vmem:[#allocation70_spill] sm:$0xff] %v7314_v24  ;;  %2640 = vrot.lane.b32.xlu0 %v2597_v47, %s4697_s30  ;;  %v2154_v58 = vsub.f32 %v7312_v2, %v7314_v24  ;;  %v7336_v47 = vsel %vm9687_vm4, %v9686_v28, %v7043_v8  ;;  %v7360_v8 = vsel %vm9695_vm6, %v9694_v1, %v7039_v29  ;;  %v9698_v28 = vld [vmem:[#allocation136_spill] sm:$0xff]  ;;  %v9702_v29 = vld [vmem:[#allocation29_spill] sm:$0xff] }
 0x633   : > { %v7326_v53 = vpop.xlane.xlu1 %2141  ;;  %vm9699_vm7 = vcmp.lt.f32.partialorder %v6545_v21, %v9698_v28  ;;  %v9704_v21 = vld [vmem:[#allocation134_spill] sm:$0xff] }
 0x634   : > { %9685 = vst [vmem:[#allocation42_spill] sm:$0xff] %v7326_v53  ;;  %2195 = vrot.lane.b32.xlu1 %v2154_v58, %s4697_s30  ;;  %v2159_v20 = vsub.f32 %v7346_v11, %v7326_v53  ;;  %v7370_v12 = vsel %vm9699_vm7, %v9697_v18, %v7019_v39  ;;  %v9707_v18 = vld [vmem:[#allocation26_spill] sm:$0xff] }
 0x635   : > { %v7338_v62 = vpop.xlane.xlu0 %2582  ;;  %v9708_v28 = vld [vmem:[#allocation138_spill] sm:$0xff] }
 0x636   : > { %9688 = vst [vmem:[#allocation73_spill] sm:$0xff] %v7338_v62  ;;  %2636 = vrot.lane.b32.xlu0 %v2595_v49, %s4697_s30  ;;  %v2600_v36 = vsub.f32 %v7336_v47, %v7338_v62  ;;  %v7499_v53 = vld [vmem:[%s5168_s27 + $0xb0] sm:$0xff] }
 0x637   : > { %v7350_v58 = vpop.xlane.xlu1 %2137  ;;  %9724 = vst [vmem:[#allocation52_spill] sm:$0xff] %v7499_v53 }
 0x638   : > { %9693 = vst [vmem:[#allocation36_spill] sm:$0xff] %v7350_v58  ;;  %2646 = vrot.lane.b32.xlu1 %v2600_v36, %s4697_s30  ;;  %v2157_v37 = vsub.f32 %v7370_v12, %v7350_v58  ;;  %v9703_v36 = vld [vmem:[#allocation135_spill] sm:$0xff] }
 0x639   : > { %v7362_v49 = vpop.xlane.xlu0 %2578  ;;  %vm9705_vm9 = vcmp.lt.f32.partialorder %v9703_v36, %v9704_v21 }
 0x63a   : > { %9696 = vst [vmem:[#allocation43_spill] sm:$0xff] %v7362_v49  ;;  %2205 = vrot.lane.b32.xlu0 %v2159_v20, %s4697_s30  ;;  %v2598_v5 = vsub.f32 %v7360_v8, %v7362_v49  ;;  %v7387_v39 = vsel %vm9705_vm9, %v9702_v29, %v7027_v3  ;;  %v9712_v3 = vld [vmem:[#allocation61_spill] sm:$0xff]  ;;  %v9713_v29 = vld [vmem:[#allocation139_spill] sm:$0xff] }
 0x63b   : > { %v7374_v32 = vpop.xlane.xlu1 %2584  ;;  %vm9714_vm8 = vcmp.lt.f32.partialorder %v6587_v13, %v9713_v29  ;;  %v7451_v29 = vld [vmem:[%s5168_s27] sm:$0xff] }
 0x63c   : > { %9700 = vst [vmem:[#allocation31_spill] sm:$0xff] %v7374_v32  ;;  %2642 = vrot.lane.b32.xlu1 %v2598_v5, %s4697_s30  ;;  %v9709_v5 = vld [vmem:[#allocation137_spill] sm:$0xff]  ;;  %v7408_v36 = vsel %vm9714_vm8, %v9712_v3, %v7051_v45 }
 0x63d   : > { %v7379_v17 = vpop.xlane.xlu0 %2143  ;;  %vm9710_vm11 = vcmp.lt.f32.partialorder %v9708_v28, %v9709_v5 }
 0x63e   : > { %9701 = vst [vmem:[#allocation79_spill] sm:$0xff] %v7379_v17  ;;  %2201 = vrot.lane.b32.xlu0 %v2157_v37, %s4697_s30  ;;  %v2160_v20 = vsub.f32 %v7387_v39, %v7379_v17  ;;  %v7398_v58 = vsel %vm9710_vm11, %v9707_v18, %v7025_v43  ;;  %v9715_v43 = vld [vmem:[#allocation58_spill] sm:$0xff]  ;;  %v7488_v17 = vld [vmem:[%s5168_s27 + $0x98] sm:$0xff] }
 0x63f   : > { %v7391_v1 = vpop.xlane.xlu1 %2580  ;;  %v7429_v18 = vld [vmem:[%s5168_s27 + $0x10] sm:$0xff]  ;;  %9722 = vst [vmem:[#allocation37_spill] sm:$0xff] %v7488_v17 }
 0x640   : > { %9706 = vst [vmem:[#allocation49_spill] sm:$0xff] %v7391_v1  ;;  %v2599_v28 = vsub.f32 %v7408_v36, %v7391_v1 }
 0x641   : > { %v7400_v37 = vpop.xlane.xlu0 %2139 }
 0x642   : > { %9711 = vst [vmem:[#allocation85_spill] sm:$0xff] %v7400_v37  ;;  %2207 = vrot.lane.b32.xlu0 %v2160_v20, %s4697_s30  ;;  %v2158_v21 = vsub.f32 %v7398_v58, %v7400_v37  ;;  %v7421_v20 = vsel %vm9716_vm12, %v9715_v43, %v7058_v14  ;;  %v7440_v14 = vld [vmem:[%s5168_s27 + $0x90] sm:$0xff] }
 0x643   : > { %v2601_v13 = vsub.f32 %v7421_v20, %v7374_v32 }
 0x644   : > { %2203 = vrot.lane.b32.xlu1 %v2158_v21, %s4697_s30 }
 0x646   : > { %2644 = vrot.lane.b32.xlu0 %v2599_v28, %s4697_s30 }
 0x64a   : > { %2648 = vrot.lane.b32.xlu0 %v2601_v13, %s4697_s30  ;;  %v7464_v13 = vld [vmem:[%s5168_s27 + $0x80] sm:$0xff] }
 0x64b   : > { %9719 = vst [vmem:[#allocation34_spill] sm:$0xff] %v7464_v13 }
 0x672   : > { %v7426_v45 = vpop.permute.xlu1 %2181 }
 0x673   : > { %vm2227_vm13 = vcmp.lt.f32.partialorder %v7429_v18, %v7426_v45 }
 0x674   : > { %v2243_v40 = vsel %vm2227_vm13, 1, %v9421_v41 }
 0x675   : > { %2264 = vperm.xlu0 %4185, %v2243_v40  }
 0x67a   : > { %v7437_v44 = vpop.permute.xlu1 %2622 }
 0x67b   : > { %vm2668_vm15 = vcmp.lt.f32.partialorder %v7440_v14, %v7437_v44 }
 0x67c   : > { %v2684_v5 = vsel %vm2668_vm15, 1, %v9421_v41 }
 0x67d   : > { %2705 = vperm.xlu0 %4185, %v2684_v5  }
 0x67e   : > { %v7448_v3 = vpop.permute.xlu1 %2177 }
 0x67f   : > { %vm2225_vm14 = vcmp.lt.f32.partialorder %v7451_v29, %v7448_v3 }
 0x680   : > { %v2241_v21 = vsel %vm2225_vm14, 1, %v9421_v41  ;;  %v7459_v28 = vpop.permute.xlu0 %2624 }
 0x681   : > { %9717 = vst [vmem:[#allocation82_spill] sm:$0xff] %v7459_v28  ;;  %2258 = vperm.xlu1 %4186, %v2241_v21   ;;  %v7477_v21 = vld [vmem:[%s5168_s27 + $0x18] sm:$0xff]  ;;  %vm2669_vm0 = vcmp.lt.f32.partialorder %v7488_v17, %v7459_v28  ;;  %v7521_v28 = vld [vmem:[%s5168_s27 + $0xa0] sm:$0xff] }
 0x682   : > { %v7461_v43 = vpop.permute.xlu1 %2618  ;;  %v2685_v49 = vsel %vm2669_vm0, 1, %v9421_v41  ;;  %9728 = vst [vmem:[#allocation35_spill] sm:$0xff] %v7521_v28 }
 0x683   : > { %9718 = vst [vmem:[#allocation15_spill] sm:$0xff] %v7461_v43  ;;  %vm2666_vm10 = vcmp.lt.f32.partialorder %v7464_v13, %v7461_v43  ;;  %v7651_v13 = vld [vmem:[%s5168_s27 + $0xd0] sm:$0xff] }
 0x684   : > { %v2682_v40 = vsel %vm2666_vm10, 1, %v9421_v41  ;;  %v7472_v5 = vpop.permute.xlu0 %2179 }
 0x685   : > { %9720 = vst [vmem:[#allocation76_spill] sm:$0xff] %v7472_v5  ;;  %2699 = vperm.xlu0 %4185, %v2682_v40   ;;  %vm2226_vm3 = vcmp.lt.f32.partialorder %v7506_v61, %v7472_v5  ;;  %v7543_v5 = vld [vmem:[%s5168_s27 + $0x38] sm:$0xff] }
 0x686   : > { %v7474_v1 = vpop.permute.xlu1 %2183  ;;  %v2242_v23 = vsel %vm2226_vm3, 1, %v9421_v41  ;;  %9732 = vst [vmem:[#allocation81_spill] sm:$0xff] %v7543_v5 }
 0x687   : > { %vm2228_vm5 = vcmp.lt.f32.partialorder %v7477_v21, %v7474_v1  ;;  %v9890_v21 = vld [vmem:[#allocation64_spill] sm:$0xff] }
 0x688   : > { %v2244_v37 = vsel %vm2228_vm5, 1, %v9421_v41  ;;  %v7485_v32 = vpop.permute.xlu0 %2620 }
 0x689   : > { %9721 = vst [vmem:[#allocation23_spill] sm:$0xff] %v7485_v32  ;;  %2267 = vperm.xlu1 %4186, %v2244_v37  }
 0x68a   : > { %v7492_v40 = vpop.permute.xlu1 %2630 }
 0x68b   : > { %9723 = vst [vmem:[#allocation74_spill] sm:$0xff] %v7492_v40  ;;  %vm2672_vm1 = vcmp.lt.f32.partialorder %v7499_v53, %v7492_v40  ;;  %v7528_v40 = vld [vmem:[%s5168_s27 + $0x88] sm:$0xff] }
 0x68c   : > { %v7503_v62 = vpop.permute.xlu0 %2189  ;;  %v2688_v37 = vsel %vm2672_vm1, 1, %v9421_v41  ;;  %9730 = vst [vmem:[#allocation25_spill] sm:$0xff] %v7528_v40  ;;  %vm2667_vm2 = vcmp.lt.f32.partialorder %v7528_v40, %v7485_v32  ;;  %v7565_v32 = vld [vmem:[%s5168_s27 + $0x28] sm:$0xff] }
 0x68d   : > { %9725 = vst [vmem:[#allocation78_spill] sm:$0xff] %v7503_v62  ;;  %2708 = vperm.xlu1 %4186, %v2685_v49   ;;  %2717 = vperm.xlu0 %4185, %v2688_v37   ;;  %v2683_v53 = vsel %vm2667_vm2, 1, %v9421_v41  ;;  %9736 = vst [vmem:[#allocation44_spill] sm:$0xff] %v7565_v32 }
 0x68e   : > { %v7514_v24 = vpop.permute.xlu1 %2626 }
 0x68f   : > { %9727 = vst [vmem:[#allocation48_spill] sm:$0xff] %v7514_v24  ;;  %vm9033_vm4 = vcmp.lt.f32.partialorder %v7521_v28, %v7514_v24  ;;  %v7550_v24 = vld [vmem:[%s5168_s27 + $0x30] sm:$0xff] }
 0x690   : > { %v7525_v17 = vpop.permute.xlu0 %2185  ;;  %v2686_v49 = vsel %vm9033_vm4, 1, %v9421_v41  ;;  %9734 = vst [vmem:[#allocation120_spill] sm:$0xff] %v7550_v24  ;;  %vm2231_vm7 = vcmp.lt.f32.partialorder %v7550_v24, %v7503_v62  ;;  %v7589_v24 = vld [vmem:[%s5168_s27 + $0xb8] sm:$0xff] }
 0x691   : > { %9729 = vst [vmem:[#allocation80_spill] sm:$0xff] %v7525_v17  ;;  %2261 = vperm.xlu1 %4186, %v2242_v23   ;;  %2711 = vperm.xlu0 %4185, %v2686_v49   ;;  %v2247_v28 = vsel %vm2231_vm7, 1, %v9421_v41  ;;  %9741 = vst [vmem:[#allocation127_spill] sm:$0xff] %v7589_v24 }
 0x692   : > { %v7536_v37 = vpop.permute.xlu1 %2191 }
 0x693   : > { %9731 = vst [vmem:[#allocation77_spill] sm:$0xff] %v7536_v37  ;;  %vm8998_vm6 = vcmp.lt.f32.partialorder %v7543_v5, %v7536_v37  ;;  %v7572_v37 = vld [vmem:[%s5168_s27 + $0x20] sm:$0xff] }
 0x694   : > { %v7547_v61 = vpop.permute.xlu0 %2632  ;;  %v2248_v23 = vsel %vm8998_vm6, 1, %v9421_v41  ;;  %9738 = vst [vmem:[#allocation83_spill] sm:$0xff] %v7572_v37  ;;  %vm9032_vm11 = vcmp.lt.f32.partialorder %v7572_v37, %v7525_v17  ;;  %v7607_v17 = vld [vmem:[%s5168_s27 + $0xa8] sm:$0xff]  ;;  %v7622_v37 = vld [vmem:[%s5168_s27 + $0x58] sm:$0xff] }
 0x695   : > { %9733 = vst [vmem:[#allocation47_spill] sm:$0xff] %v7547_v61  ;;  %2702 = vperm.xlu1 %4186, %v2683_v53   ;;  %2279 = vperm.xlu0 %4185, %v2248_v23   ;;  %v2245_v5 = vsel %vm9032_vm11, 1, %v9421_v41  ;;  %vm8988_vm8 = vcmp.lt.f32.partialorder %v7589_v24, %v7547_v61  ;;  %9745 = vst [vmem:[#allocation16_spill] sm:$0xff] %v7607_v17 }
 0x696   : > { %v7558_v49 = vpop.permute.xlu1 %2187  ;;  %9747 = vst [vmem:[#allocation84_spill] sm:$0xff] %v7622_v37 }
 0x697   : > { %9735 = vst [vmem:[#allocation119_spill] sm:$0xff] %v7558_v49  ;;  %vm8984_vm9 = vcmp.lt.f32.partialorder %v7565_v32, %v7558_v49 }
 0x698   : > { %v7569_v40 = vpop.permute.xlu0 %2628  ;;  %v2246_v53 = vsel %vm8984_vm9, 1, %v9421_v41 }
 0x699   : > { %9737 = vst [vmem:[#allocation38_spill] sm:$0xff] %v7569_v40  ;;  %2276 = vperm.xlu1 %4186, %v2247_v28   ;;  %2273 = vperm.xlu0 %4185, %v2246_v53   ;;  %v2689_v28 = vsel %vm8988_vm8, 1, %v9421_v41  ;;  %v7600_v53 = vld [vmem:[%s5168_s27 + $0xc0] sm:$0xff]  ;;  %vm8992_vm9 = vcmp.lt.f32.partialorder %v7607_v17, %v7569_v40 }
 0x69a   : > { %v7580_v23 = vpop.permute.xlu1 %2638  ;;  %9743 = vst [vmem:[#allocation124_spill] sm:$0xff] %v7600_v53  ;;  %v2687_v24 = vsel %vm8992_vm9, 1, %v9421_v41 }
 0x69b   : > { %9739 = vst [vmem:[#allocation53_spill] sm:$0xff] %v7580_v23 }
 0x69c   : > { %v7586_v62 = vpop.permute.xlu0 %2197 }
 0x69d   : > { %9740 = vst [vmem:[#allocation128_spill] sm:$0xff] %v7586_v62  ;;  %2270 = vperm.xlu1 %4186, %v2245_v5  }
 0x69e   : > { %v7593_v49 = vpop.permute.xlu1 %2634 }
 0x69f   : > { %9742 = vst [vmem:[#allocation51_spill] sm:$0xff] %v7593_v49  ;;  %vm8991_vm12 = vcmp.lt.f32.partialorder %v7600_v53, %v7593_v49  ;;  %v7629_v49 = vld [vmem:[%s5168_s27 + $0x50] sm:$0xff] }
 0x6a0   : > { %v7604_v32 = vpop.permute.xlu0 %2193  ;;  %v2690_v5 = vsel %vm8991_vm12, 1, %v9421_v41  ;;  %9749 = vst [vmem:[#allocation125_spill] sm:$0xff] %v7629_v49  ;;  %vm9006_vm12 = vcmp.lt.f32.partialorder %v7629_v49, %v7586_v62  ;;  %v7671_v62 = vld [vmem:[%s5168_s27 + $0x40] sm:$0xff]  ;;  %v7688_v49 = vld [vmem:[%s5168_s27 + $0xc8] sm:$0xff] }
 0x6a1   : > { %9744 = vst [vmem:[#allocation123_spill] sm:$0xff] %v7604_v32  ;;  %2720 = vperm.xlu1 %4186, %v2689_v28   ;;  %2723 = vperm.xlu0 %4185, %v2690_v5   ;;  %v7638_v5 = vld [vmem:[%s5168_s27 + $0xd8] sm:$0xff]  ;;  %v2251_v40 = vsel %vm9006_vm12, 1, %v9421_v41  ;;  %9755 = vst [vmem:[#allocation133_spill] sm:$0xff] %v7671_v62 }
 0x6a2   : > { %v7615_v61 = vpop.permute.xlu1 %2199  ;;  %9750 = vst [vmem:[#allocation122_spill] sm:$0xff] %v7638_v5  ;;  %9756 = vst [vmem:[#allocation130_spill] sm:$0xff] %v7688_v49 }
 0x6a3   : > { %9746 = vst [vmem:[#allocation121_spill] sm:$0xff] %v7615_v61  ;;  %vm8997_vm8 = vcmp.lt.f32.partialorder %v7622_v37, %v7615_v61 }
 0x6a4   : > { %v7626_v43 = vpop.permute.xlu0 %2640  ;;  %v2252_v28 = vsel %vm8997_vm8, 1, %v9421_v41  ;;  %vm9023_vm8 = vcmp.lt.f32.partialorder %v7651_v13, %v7580_v23  ;;  %v7728_v23 = vld [vmem:[%s5168_s27 + $0x60] sm:$0xff] }
 0x6a5   : > { %9748 = vst [vmem:[#allocation50_spill] sm:$0xff] %v7626_v43  ;;  %2714 = vperm.xlu1 %4186, %v2687_v24   ;;  %vm9002_vm9 = vcmp.lt.f32.partialorder %v7638_v5, %v7626_v43  ;;  %2291 = vperm.xlu0 %4185, %v2252_v28   ;;  %v7660_v28 = vld [vmem:[%s5168_s27 + $0x48] sm:$0xff]  ;;  %v2692_v61 = vsel %vm9023_vm8, 1, %v9421_v41 }
 0x6a6   : > { %v7642_v53 = vpop.permute.xlu1 %2195  ;;  %v2693_v24 = vsel %vm9002_vm9, 1, %v9421_v41  ;;  %9753 = vst [vmem:[#allocation126_spill] sm:$0xff] %v7660_v28  ;;  %vm9011_vm9 = vcmp.lt.f32.partialorder %v7671_v62, %v7604_v32  ;;  %v7706_v32 = vld [vmem:[%s5168_s27 + $0x78] sm:$0xff]  ;;  %v7721_v62 = vld [vmem:[%s5168_s27 + $0x68] sm:$0xff] }
 0x6a7   : > { %9751 = vst [vmem:[#allocation28_spill] sm:$0xff] %v7642_v53  ;;  %vm9009_vm6 = vcmp.lt.f32.partialorder %v7660_v28, %v7642_v53  ;;  %v2249_v43 = vsel %vm9011_vm9, 1, %v9421_v41  ;;  %v7701_v28 = vld [vmem:[%s5168_s27 + $0x70] sm:$0xff]  ;;  %9759 = vst [vmem:[#allocation132_spill] sm:$0xff] %v7706_v32 }
 0x6a8   : > { %v7648_v17 = vpop.permute.xlu0 %2636  ;;  %9758 = vst [vmem:[#allocation54_spill] sm:$0xff] %v7701_v28  ;;  %9761 = vst [vmem:[#allocation59_spill] sm:$0xff] %v7721_v62 }
 0x6a9   : > { %9752 = vst [vmem:[#allocation129_spill] sm:$0xff] %v7648_v17  ;;  %2288 = vperm.xlu1 %4186, %v2251_v40   ;;  %2732 = vperm.xlu0 %4185, %v2693_v24   ;;  %v2250_v40 = vsel %vm9009_vm6, 1, %v9421_v41  ;;  %vm9015_vm12 = vcmp.lt.f32.partialorder %v7688_v49, %v7648_v17 }
 0x6aa   : > { %v7679_v24 = vpop.permute.xlu1 %2646 }
 0x6ac   : > { %v7668_v37 = vpop.permute.xlu0 %2205 }
 0x6ad   : > { %9754 = vst [vmem:[#allocation55_spill] sm:$0xff] %v7668_v37  ;;  %2729 = vperm.xlu1 %4186, %v2692_v61   ;;  %2285 = vperm.xlu0 %4185, %v2250_v40   ;;  %v2691_v61 = vsel %vm9015_vm12, 1, %v9421_v41  ;;  %vm9019_vm6 = vcmp.lt.f32.partialorder %v7701_v28, %v7668_v37  ;;  %v7748_v28 = vld [vmem:[%s5168_s27 + $0xe0] sm:$0xff] }
 0x6ae   : > { %v7692_v53 = vpop.permute.xlu1 %2642  ;;  %v2255_v49 = vsel %vm9019_vm6, 1, %v9421_v41 }
 0x6af   : > { %vm9030_vm8 = vcmp.lt.f32.partialorder %v7748_v28, %v7692_v53 }
 0x6b0   : > { %v7685_v5 = vpop.permute.xlu0 %2201 }
 0x6b1   : > { %2282 = vperm.xlu1 %4186, %v2249_v43  }
 0x6b4   : > { %v7698_v40 = vpop.permute.xlu0 %2207 }
 0x6b5   : > { %9757 = vst [vmem:[#allocation56_spill] sm:$0xff] %v7698_v40  ;;  %vm9017_vm9 = vcmp.lt.f32.partialorder %v7706_v32, %v7698_v40  ;;  %2726 = vperm.xlu1 %4186, %v2691_v61   ;;  %v7737_v40 = vld [vmem:[%s5168_s27 + $0xe8] sm:$0xff] }
 0x6b6   : > { %v2256_v43 = vsel %vm9017_vm9, 1, %v9421_v41  ;;  %v7714_v17 = vpop.permute.xlu1 %2203  ;;  %vm9027_vm9 = vcmp.lt.f32.partialorder %v7728_v23, %v7685_v5 }
 0x6b7   : > { %9760 = vst [vmem:[#allocation131_spill] sm:$0xff] %v7714_v17  ;;  %2303 = vperm.xlu0 %4185, %v2256_v43   ;;  %vm9025_vm12 = vcmp.lt.f32.partialorder %v7721_v62, %v7714_v17  ;;  %v2253_v32 = vsel %vm9027_vm9, 1, %v9421_v41  ;;  %v7757_v17 = vld [vmem:[%s5168_s27 + $0xf8] sm:$0xff]  ;;  %v7766_v62 = vld [vmem:[%s5168_s27 + $0xf0] sm:$0xff] }
 0x6b8   : > { %v7725_v61 = vpop.permute.xlu0 %2644  ;;  %v2254_v43 = vsel %vm9025_vm12, 1, %v9421_v41  ;;  %vm9031_vm9 = vcmp.lt.f32.partialorder %v7766_v62, %v7679_v24 }
 0x6b9   : > { %2300 = vperm.xlu1 %4186, %v2255_v49   ;;  %vm9028_vm6 = vcmp.lt.f32.partialorder %v7737_v40, %v7725_v61 }
 0x6ba   : > { %v2695_v49 = vsel %vm9028_vm6, 1, %v9421_v41 }
 0x6bb   : > { %2297 = vperm.xlu0 %4185, %v2254_v43   ;;  %v2694_v43 = vsel %vm9030_vm8, 1, %v9421_v41 }
 0x6bc   : > { %v7745_v37 = vpop.permute.xlu0 %2648 }
 0x6bd   : > { %2294 = vperm.xlu1 %4186, %v2253_v32   ;;  %vm9029_vm12 = vcmp.lt.f32.partialorder %v7757_v17, %v7745_v37 }
 0x6be   : > { %v2697_v32 = vsel %vm9029_vm12, 1, %v9421_v41 }
 0x6bf   : > { %2738 = vperm.xlu0 %4185, %v2695_v49   ;;  %v2696_v49 = vsel %vm9031_vm9, 1, %v9421_v41 }
 0x6c1   : > { %2735 = vperm.xlu1 %4186, %v2694_v43  }
 0x6c3   : > { %2744 = vperm.xlu0 %4185, %v2697_v32   ;;  %v9785_v32 = vld [vmem:[#allocation140_spill] sm:$0xff] }
 0x6c5   : > { %2741 = vperm.xlu1 %4186, %v2696_v49   ;;  %v9786_v49 = vld [vmem:[#allocation111_spill] sm:$0xff] }
 0x6c7   : > { %2355 = vrot.lane.b32.xlu0 %v7111_v34, %s4697_s30 }
 0x6c9   : > { %2353 = vrot.lane.b32.xlu1 %v7078_v4, %s4697_s30 }
 0x6cb   : > { %2359 = vrot.lane.b32.xlu0 %v7123_v60, %s4697_s30 }
 0x6cd   : > { %2357 = vrot.lane.b32.xlu1 %v7049_v27, %s4697_s30 }
 0x6cf   : > { %2363 = vrot.lane.b32.xlu0 %v7216_v19, %s4697_s30  ;;  %v9771_v19 = vld [vmem:[#allocation112_spill] sm:$0xff] }
 0x6d1   : > { %2361 = vrot.lane.b32.xlu1 %v7178_v10, %s4697_s30 }
 0x6d3   : > { %2367 = vrot.lane.b32.xlu0 %v7192_v9, %s4697_s30 }
 0x6d5   : > { %2365 = vrot.lane.b32.xlu1 %v7155_v15, %s4697_s30 }
 0x6d7   : > { %2371 = vrot.lane.b32.xlu0 %v7312_v2, %s4697_s30 }
 0x6d9   : > { %2369 = vrot.lane.b32.xlu1 %v7274_v50, %s4697_s30  ;;  %v9774_v50 = vld [vmem:[#allocation99_spill] sm:$0xff] }
 0x6db   : > { %2375 = vrot.lane.b32.xlu0 %v7288_v63, %s4697_s30 }
 0x6dd   : > { %2373 = vrot.lane.b32.xlu1 %v7250_v46, %s4697_s30 }
 0x6df   : > { %2379 = vrot.lane.b32.xlu0 %v7398_v58, %s4697_s30 }
 0x6e1   : > { %2377 = vrot.lane.b32.xlu1 %v7370_v12, %s4697_s30  ;;  %v9780_v12 = vld [vmem:[#allocation117_spill] sm:$0xff] }
 0x6e3   : > { %2383 = vrot.lane.b32.xlu0 %v7387_v39, %s4697_s30 }
 0x6e5   : > { %2381 = vrot.lane.b32.xlu1 %v7346_v11, %s4697_s30  ;;  %v9777_v11 = vld [vmem:[#allocation17_spill] sm:$0xff] }
 0x6e7   : > { %2796 = vrot.lane.b32.xlu0 %v7134_v48, %s4697_s30 }
 0x6e9   : > { %2794 = vrot.lane.b32.xlu1 %v7099_v52, %s4697_s30 }
 0x6eb   : > { %2800 = vrot.lane.b32.xlu0 %v7088_v25, %s4697_s30 }
 0x6ed   : > { %2798 = vrot.lane.b32.xlu1 %v7064_v56, %s4697_s30 }
 0x6ef   : > { %2804 = vrot.lane.b32.xlu0 %v7226_v33, %s4697_s30  ;;  %v9768_v33 = vld [vmem:[#allocation106_spill] sm:$0xff] }
 0x6f0   : > { %v2265_v34 = vpop.permute.xlu0 %2264 }
 0x6f1   : > { %2802 = vrot.lane.b32.xlu1 %v7168_v35, %s4697_s30  ;;  %vm2307_vm8 = vcmp.eq.s32.totalorder %v2265_v34, 1 }
 0x6f2   : > { %v7856_v10 = vsel %vm2307_vm8, %v6846_v22, %v6676_v57  ;;  %v9770_v22 = vld [vmem:[#allocation87_spill] sm:$0xff] }
 0x6f3   : > { %2808 = vrot.lane.b32.xlu0 %v7202_v31, %s4697_s30 }
 0x6f5   : > { %2806 = vrot.lane.b32.xlu1 %v7145_v51, %s4697_s30 }
 0x6f7   : > { %2812 = vrot.lane.b32.xlu0 %v7322_v6, %s4697_s30 }
 0x6f8   : > { %v2706_v27 = vpop.permute.xlu0 %2705 }
 0x6f9   : > { %2810 = vrot.lane.b32.xlu1 %v7264_v54, %s4697_s30 }
 0x6fb   : > { %2816 = vrot.lane.b32.xlu0 %v7298_v30, %s4697_s30 }
 0x6fc   : > { %v2259_v4 = vpop.permute.xlu1 %2258 }
 0x6fd   : > { %2814 = vrot.lane.b32.xlu1 %v7240_v16, %s4697_s30  ;;  %vm2305_vm12 = vcmp.eq.s32.totalorder %v2259_v4, 1  ;;  %v9773_v16 = vld [vmem:[#allocation88_spill] sm:$0xff] }
 0x6fe   : > { %v7848_v15 = vsel %vm2305_vm12, %v6855_v55, %v6680_v26  ;;  %v9765_v26 = vld [vmem:[#allocation14_spill] sm:$0xff] }
 0x6ff   : > { %2820 = vrot.lane.b32.xlu0 %v7408_v36, %s4697_s30  ;;  %9763 = vst [vmem:[#allocation136_spill] sm:$0xff] %v7848_v15  ;;  %v9782_v36 = vld [vmem:[#allocation91_spill] sm:$0xff] }
 0x700   : > { %v2700_v31 = vpop.permute.xlu0 %2699 }
 0x701   : > { %2818 = vrot.lane.b32.xlu1 %v7360_v8, %s4697_s30  ;;  %vm2746_vm4 = vcmp.eq.s32.totalorder %v2700_v31, 1  ;;  %v9779_v8 = vld [vmem:[#allocation90_spill] sm:$0xff] }
 0x703   : > { %2824 = vrot.lane.b32.xlu0 %v7421_v20, %s4697_s30  ;;  %v9783_v20 = vld [vmem:[#allocation114_spill] sm:$0xff] }
 0x704   : > { %v2268_v51 = vpop.permute.xlu1 %2267 }
 0x705   : > { %2822 = vrot.lane.b32.xlu1 %v7336_v47, %s4697_s30  ;;  %vm2308_vm6 = vcmp.eq.s32.totalorder %v2268_v51, 1  ;;  %v9776_v47 = vld [vmem:[#allocation89_spill] sm:$0xff] }
 0x706   : > { %v7844_v48 = vsel %vm2308_vm6, %v6870_v7, %v6684_v59  ;;  %vm2748_vm6 = vcmp.eq.s32.totalorder %v2706_v27, 1 }
 0x707   : > { %9762 = vst [vmem:[#allocation57_spill] sm:$0xff] %v7844_v48  ;;  %v2859_v7 = vpack.c.bf16 %v7844_v48, %v7856_v10  ;;  %v7876_v54 = vsel %vm2748_vm6, %v9774_v50, %v9773_v16  ;;  %v9797_v16 = vld [vmem:[#allocation93_spill] sm:$0xff]  ;;  %v9798_v50 = vld [vmem:[#allocation20_spill] sm:$0xff] }
 0x708   : > { %v2709_v56 = vpop.permute.xlu1 %2708  ;;  %v2718_v25 = vpop.permute.xlu0 %2717  ;;  %9775 = vst [vmem:[#allocation138_spill] sm:$0xff] %v7876_v54  ;;  %v9881_v48 = vld [vmem:[#allocation40_spill] sm:$0xff] }
 0x709   : > { %vm2749_vm11 = vcmp.eq.s32.totalorder %v2709_v56, 1 }
 0x70a   : > { %v7864_v55 = vsel %vm2749_vm11, %v9765_v26, %v6696_v38  ;;  %v9791_v26 = vld [vmem:[#allocation94_spill] sm:$0xff] }
 0x70b   : > { %9766 = vst [vmem:[#allocation135_spill] sm:$0xff] %v7864_v55  ;;  %v3220_v30 = vpack.c.bf16 %v7864_v55, %v7876_v54  ;;  %v9880_v55 = vld [vmem:[#allocation21_spill] sm:$0xff] }
 0x70c   : > { %v2262_v52 = vpop.permute.xlu1 %2261  ;;  %v2712_v60 = vpop.permute.xlu0 %2711 }
 0x70d   : > { %vm2306_vm9 = vcmp.eq.s32.totalorder %v2262_v52, 1  ;;  %v9788_v52 = vld [vmem:[#allocation101_spill] sm:$0xff] }
 0x70e   : > { %v7852_v35 = vsel %vm2306_vm9, %v6876_v0, %v6688_v42  ;;  %v9767_v0 = vld [vmem:[#allocation86_spill] sm:$0xff] }
 0x70f   : > { %9764 = vst [vmem:[#allocation29_spill] sm:$0xff] %v7852_v35  ;;  %v2858_v59 = vpack.c.bf16 %v7852_v35, %v7848_v15  ;;  %v7868_v57 = vsel %vm2746_vm4, %v9768_v33, %v9767_v0  ;;  %v9794_v33 = vld [vmem:[#allocation102_spill] sm:$0xff] }
 0x710   : > { %v2703_v9 = vpop.permute.xlu1 %2702  ;;  %v2280_v42 = vpop.permute.xlu0 %2279  ;;  %9769 = vst [vmem:[#allocation134_spill] sm:$0xff] %v7868_v57 }
 0x711   : > { %vm2747_vm12 = vcmp.eq.s32.totalorder %v2703_v9, 1  ;;  %4074 = vmatprep.mubr.bf16.mxu0 %v2858_v59  ;;  %vm2312_vm11 = vcmp.eq.s32.totalorder %v2280_v42, 1  ;;  %v9789_v59 = vld [vmem:[#allocation11_spill] sm:$0xff]  ;;  %v9792_v42 = vld [vmem:[#allocation116_spill] sm:$0xff] }
 0x712   : > { %v7872_v46 = vsel %vm2747_vm12, %v9771_v19, %v9770_v22  ;;  %4075 = vmatmul.mubr.bf16.vlgmr.msra.gmra.mxu0 %v2859_v7  ;;  %v7896_v34 = vsel %vm2312_vm11, %v9786_v49, %v9785_v32  ;;  %vm2750_vm12 = vcmp.eq.s32.totalorder %v2712_v60, 1  ;;  %v9795_v22 = vld [vmem:[#allocation19_spill] sm:$0xff]  ;;  %v9806_v49 = vld [vmem:[#allocation92_spill] sm:$0xff] }
 0x713   : > { %9772 = vst [vmem:[#allocation26_spill] sm:$0xff] %v7872_v46  ;;  %v3219_v38 = vpack.c.bf16 %v7872_v46, %v7868_v57  ;;  %9787 = vst [vmem:[#allocation58_spill] sm:$0xff] %v7896_v34  ;;  %v7908_v0 = vsel %vm2750_vm12, %v9792_v42, %v9791_v26  ;;  %v9812_v42 = vld [vmem:[#allocation108_spill] sm:$0xff] }
 0x714   : > { %v2277_v63 = vpop.permute.xlu1 %2276  ;;  %v2274_v6 = vpop.permute.xlu0 %2273  ;;  %9793 = vst [vmem:[#allocation86_spill] sm:$0xff] %v7908_v0 }
 0x715   : > { %4106 = vmatprep.mubr.bf16.mxu1 %v3219_v38  ;;  %vm2311_vm4 = vcmp.eq.s32.totalorder %v2277_v63, 1  ;;  %vm2310_vm9 = vcmp.eq.s32.totalorder %v2274_v6, 1 }
 0x716   : > { %4107 = vmatmul.mubr.bf16.vlgmr.msra.gmra.mxu1 %v3220_v30  ;;  %v7884_v58 = vsel %vm2311_vm4, %v9777_v11, %v9776_v47  ;;  %v7888_v39 = vsel %vm2310_vm9, %v9780_v12, %v9779_v8  ;;  %vm2752_vm4 = vcmp.eq.s32.totalorder %v2718_v25, 1  ;;  %v9800_v11 = vld [vmem:[#allocation98_spill] sm:$0xff] }
 0x717   : > { %9778 = vst [vmem:[#allocation137_spill] sm:$0xff] %v7884_v58  ;;  %9781 = vst [vmem:[#allocation61_spill] sm:$0xff] %v7888_v39  ;;  %v2861_v51 = vpack.c.bf16 %v7896_v34, %v7884_v58  ;;  %v7916_v38 = vsel %vm2752_vm4, %v9798_v50, %v9797_v16  ;;  %v9801_v8 = vld [vmem:[#allocation22_spill] sm:$0xff]  ;;  %v9815_v16 = vld [vmem:[#allocation97_spill] sm:$0xff] }
 0x718   : > { %v2271_v2 = vpop.permute.xlu1 %2270  ;;  %9799 = vst [vmem:[#allocation87_spill] sm:$0xff] %v7916_v38 }
 0x719   : > { %vm2309_vm8 = vcmp.eq.s32.totalorder %v2271_v2, 1 }
 0x71a   : > { %v7892_v43 = vsel %vm2309_vm8, %v9783_v20, %v9782_v36  ;;  %v9803_v36 = vld [vmem:[#allocation100_spill] sm:$0xff]  ;;  %v9804_v20 = vld [vmem:[#allocation142_spill] sm:$0xff] }
 0x71b   : > { %9784 = vst [vmem:[#allocation139_spill] sm:$0xff] %v7892_v43  ;;  %v2860_v4 = vpack.c.bf16 %v7888_v39, %v7892_v43 }
 0x71c   : > { %v2721_v27 = vpop.permute.xlu1 %2720  ;;  %v2724_v31 = vpop.permute.xlu0 %2723 }
 0x71d   : > { %4078 = vmatprep.mubr.bf16.mxu0 %v2860_v4  ;;  %vm2753_vm6 = vcmp.eq.s32.totalorder %v2721_v27, 1  ;;  %v9807_v4 = vld [vmem:[#allocation118_spill] sm:$0xff] }
 0x71e   : > { %4079 = vmatmul.mubr.bf16.gmra.mxu0 %v2861_v51  ;;  %v7904_v7 = vsel %vm2753_vm6, %v9789_v59, %v9788_v52  ;;  %v9809_v51 = vld [vmem:[#allocation103_spill] sm:$0xff] }
 0x71f   : > { %9790 = vst [vmem:[#allocation14_spill] sm:$0xff] %v7904_v7  ;;  %v3222_v30 = vpack.c.bf16 %v7904_v7, %v7916_v38 }
 0x720   : > { %v2715_v56 = vpop.permute.xlu1 %2714  ;;  %v2292_v9 = vpop.permute.xlu0 %2291 }
 0x721   : > { %vm2751_vm9 = vcmp.eq.s32.totalorder %v2715_v56, 1  ;;  %vm2316_vm6 = vcmp.eq.s32.totalorder %v2292_v9, 1  ;;  %v9810_v56 = vld [vmem:[#allocation115_spill] sm:$0xff] }
 0x722   : > { %v7912_v19 = vsel %vm2751_vm9, %v9795_v22, %v9794_v33  ;;  %vm2754_vm9 = vcmp.eq.s32.totalorder %v2724_v31, 1  ;;  %v7936_v52 = vsel %vm2316_vm6, %v9810_v56, %v9809_v51  ;;  %v9813_v33 = vld [vmem:[#allocation13_spill] sm:$0xff]  ;;  %v9825_v51 = vld [vmem:[#allocation143_spill] sm:$0xff] }
 0x723   : > { %9796 = vst [vmem:[#allocation106_spill] sm:$0xff] %v7912_v19  ;;  %v3221_v25 = vpack.c.bf16 %v7912_v19, %v7908_v0  ;;  %9811 = vst [vmem:[#allocation89_spill] sm:$0xff] %v7936_v52  ;;  %v9816_v31 = vld [vmem:[#allocation113_spill] sm:$0xff] }
 0x724   : > { %v2289_v60 = vpop.permute.xlu1 %2288  ;;  %v2733_v63 = vpop.permute.xlu0 %2732  ;;  %v7948_v50 = vsel %vm2754_vm9, %v9816_v31, %v9815_v16 }
 0x725   : > { %4110 = vmatprep.mubr.bf16.mxu1 %v3221_v25  ;;  %vm2315_vm11 = vcmp.eq.s32.totalorder %v2289_v60, 1  ;;  %9817 = vst [vmem:[#allocation90_spill] sm:$0xff] %v7948_v50  ;;  %v9818_v25 = vld [vmem:[#allocation96_spill] sm:$0xff]  ;;  %v9819_v60 = vld [vmem:[#allocation141_spill] sm:$0xff] }
 0x726   : > { %4111 = vmatmul.mubr.bf16.gmra.mxu1 %v3222_v30  ;;  %v7924_v12 = vsel %vm2315_vm11, %v9801_v8, %v9800_v11  ;;  %vm2757_vm11 = vcmp.eq.s32.totalorder %v2733_v63, 1 }
 0x727   : > { %9802 = vst [vmem:[#allocation112_spill] sm:$0xff] %v7924_v12  ;;  %v2863_v26 = vpack.c.bf16 %v7936_v52, %v7924_v12 }
 0x728   : > { %v2730_v6 = vpop.permute.xlu1 %2729  ;;  %v2286_v2 = vpop.permute.xlu0 %2285 }
 0x729   : > { %vm2314_vm8 = vcmp.eq.s32.totalorder %v2286_v2, 1  ;;  %vm2756_vm4 = vcmp.eq.s32.totalorder %v2730_v6, 1  ;;  %v9821_v6 = vld [vmem:[#allocation105_spill] sm:$0xff]  ;;  %v9822_v2 = vld [vmem:[#allocation18_spill] sm:$0xff] }
 0x72a   : > { %v7928_v32 = vsel %vm2314_vm8, %v9804_v20, %v9803_v36  ;;  %v7944_v22 = vsel %vm2756_vm4, %v9813_v33, %v9812_v42  ;;  %v9830_v42 = vld [vmem:[#allocation104_spill] sm:$0xff]  ;;  %v9831_v33 = vld [vmem:[#allocation145_spill] sm:$0xff] }
 0x72b   : > { %9805 = vst [vmem:[#allocation88_spill] sm:$0xff] %v7928_v32  ;;  %9814 = vst [vmem:[#allocation17_spill] sm:$0xff] %v7944_v22 }
 0x72c   : > { %v2283_v47 = vpop.permute.xlu1 %2282 }
 0x72d   : > { %vm2313_vm12 = vcmp.eq.s32.totalorder %v2283_v47, 1  ;;  %v7956_v47 = vsel %vm2757_vm11, %v9822_v2, %v9821_v6 }
 0x72e   : > { %v7932_v27 = vsel %vm2313_vm12, %v9807_v4, %v9806_v49  ;;  %9823 = vst [vmem:[#allocation91_spill] sm:$0xff] %v7956_v47  ;;  %v3224_v36 = vpack.c.bf16 %v7956_v47, %v7944_v22  ;;  %v9824_v4 = vld [vmem:[#allocation107_spill] sm:$0xff] }
 0x72f   : > { %9808 = vst [vmem:[#allocation99_spill] sm:$0xff] %v7932_v27  ;;  %v2862_v59 = vpack.c.bf16 %v7928_v32, %v7932_v27 }
 0x730   : > { %v2727_v9 = vpop.permute.xlu1 %2726 }
 0x731   : > { %vm2755_vm8 = vcmp.eq.s32.totalorder %v2727_v9, 1  ;;  %4082 = vmatprep.mubr.bf16.mxu0 %v2862_v59  ;;  %v9827_v59 = vld [vmem:[#allocation8_spill] sm:$0xff]  ;;  %v9828_v9 = vld [vmem:[#allocation150_spill] sm:$0xff] }
 0x732   : > { %v7952_v30 = vsel %vm2755_vm8, %v9819_v60, %v9818_v25  ;;  %4083 = vmatmul.mubr.bf16.gmra.mxu0 %v2863_v26  ;;  %v2304_v63 = vpop.permute.xlu0 %2303  ;;  %v9833_v25 = vld [vmem:[#allocation95_spill] sm:$0xff]  ;;  %v9834_v60 = vld [vmem:[#allocation148_spill] sm:$0xff] }
 0x733   : > { %9820 = vst [vmem:[#allocation117_spill] sm:$0xff] %v7952_v30  ;;  %v3223_v11 = vpack.c.bf16 %v7952_v30, %v7948_v50  ;;  %vm2320_vm4 = vcmp.eq.s32.totalorder %v2304_v63, 1 }
 0x734   : > { %v2301_v8 = vpop.permute.xlu1 %2300  ;;  %v7976_v6 = vsel %vm2320_vm4, %v9834_v60, %v9833_v25  ;;  %v9845_v60 = vld [vmem:[#allocation10_spill] sm:$0xff] }
 0x735   : > { %4114 = vmatprep.mubr.bf16.mxu1 %v3223_v11  ;;  %vm2319_vm6 = vcmp.eq.s32.totalorder %v2301_v8, 1  ;;  %9835 = vst [vmem:[#allocation101_spill] sm:$0xff] %v7976_v6  ;;  %v9836_v8 = vld [vmem:[#allocation109_spill] sm:$0xff] }
 0x736   : > { %4115 = vmatmul.mubr.bf16.gmra.mxu1 %v3224_v36  ;;  %v2298_v20 = vpop.permute.xlu0 %2297  ;;  %v7964_v56 = vsel %vm2319_vm6, %v9825_v51, %v9824_v4  ;;  %v9837_v36 = vld [vmem:[#allocation149_spill] sm:$0xff]  ;;  %v9840_v4 = vld [vmem:[#allocation146_spill] sm:$0xff] }
 0x737   : > { %vm2318_vm12 = vcmp.eq.s32.totalorder %v2298_v20, 1  ;;  %9826 = vst [vmem:[#allocation114_spill] sm:$0xff] %v7964_v56  ;;  %v2865_v11 = vpack.c.bf16 %v7976_v6, %v7964_v56 }
 0x738   : > { %v2295_v49 = vpop.permute.xlu1 %2294  ;;  %v7968_v26 = vsel %vm2318_vm12, %v9828_v9, %v9827_v59 }
 0x739   : > { %vm2317_vm9 = vcmp.eq.s32.totalorder %v2295_v49, 1  ;;  %9829 = vst [vmem:[#allocation140_spill] sm:$0xff] %v7968_v26  ;;  %v9839_v49 = vld [vmem:[#allocation9_spill] sm:$0xff] }
 0x73a   : > { %v7972_v16 = vsel %vm2317_vm9, %v9831_v33, %v9830_v42  ;;  %v2739_v31 = vpop.permute.xlu0 %2738  ;;  %v9842_v33 = vld [vmem:[#allocation110_spill] sm:$0xff] }
 0x73b   : > { %9832 = vst [vmem:[#allocation111_spill] sm:$0xff] %v7972_v16  ;;  %vm2759_vm11 = vcmp.eq.s32.totalorder %v2739_v31, 1  ;;  %v2864_v63 = vpack.c.bf16 %v7968_v26, %v7972_v16  ;;  %v9843_v31 = vld [vmem:[#allocation147_spill] sm:$0xff] }
 0x73c   : > { %v2736_v2 = vpop.permute.xlu1 %2735  ;;  %v7984_v20 = vsel %vm2759_vm11, %v9837_v36, %v9836_v8  ;;  %v8005_v36 = vld [vmem:[%s8620_s2] ss:$0 sm:$0xff] }
 0x73d   : > { %vm2758_vm8 = vcmp.eq.s32.totalorder %v2736_v2, 1  ;;  %4086 = vmatprep.mubr.bf16.mxu0 %v2864_v63  ;;  %9838 = vst [vmem:[#allocation11_spill] sm:$0xff] %v7984_v20  ;;  %v9846_v63 = vld [vmem:[#allocation144_spill] sm:$0xff] }
 0x73e   : > { %v7988_v51 = vsel %vm2758_vm8, %v9840_v4, %v9839_v49  ;;  %4087 = vmatmul.mubr.bf16.gmra.mxu0 %v2865_v11  ;;  %v2745_v59 = vpop.permute.xlu0 %2744 }
 0x73f   : > { %9841 = vst [vmem:[#allocation94_spill] sm:$0xff] %v7988_v51  ;;  %vm2761_vm6 = vcmp.eq.s32.totalorder %v2745_v59, 1  ;;  %v3225_v9 = vpack.c.bf16 %v7984_v20, %v7988_v51 }
 0x740   : > { %v2742_v42 = vpop.permute.xlu1 %2741  ;;  %v7994_v25 = vsel %vm2761_vm6, %v9843_v31, %v9842_v33  ;;  %vm9958_vm6 = vcmp.lt.f32.partialorder %v7766_v62, %v7679_v24 }
 0x741   : > { %vm2760_vm12 = vcmp.eq.s32.totalorder %v2742_v42, 1  ;;  %4118 = vmatprep.mubr.bf16.mxu1 %v3225_v9  ;;  %9844 = vst [vmem:[#allocation116_spill] sm:$0xff] %v7994_v25 }
 0x742   : > { %v7998_v2 = vsel %vm2760_vm12, %v9846_v63, %v9845_v60 }
 0x743   : > { %9847 = vst [vmem:[#allocation102_spill] sm:$0xff] %v7998_v2  ;;  %v3226_v8 = vpack.c.bf16 %v7994_v25, %v7998_v2 }
 0x745   : > { %4119 = vmatmul.mubr.bf16.gmra.mxu1 %v3226_v8 }
 0x7d2   : > { %v4076_v11 = vpop.f32.mrf.mxu0 }
 0x7d3   : > { %v2909_v49 = vadd.f32 %v8005_v36, %v4076_v11 }
 0x7d4   : > { %v2900_v4 = vpop.f32.mrf.mxu0 }
 0x7d5   : > { %4389 = vtanh.f32 %v2909_v49  ;;  %v2901_v59 = vadd.f32 %v8005_v36, %v2900_v4 }
 0x7d6   : > { %v4077_v9 = vpop.f32.mrf.mxu0  ;;  %v4108_v42 = vpop.f32.mrf.mxu1 }
 0x7d7   : > { %4391 = vtanh.f32 %v2901_v59  ;;  %v2912_v33 = vadd.f32 %v8005_v36, %v4077_v9  ;;  %v3270_v31 = vadd.f32 %v8005_v36, %v4108_v42 }
 0x7d8   : > { %v3261_v60 = vpop.f32.mrf.mxu1  ;;  %v2903_v49 = vpop.f32.mrf.mxu0 }
 0x7d9   : > { %4393 = vtanh.f32 %v2912_v33  ;;  %v3262_v63 = vadd.f32 %v8005_v36, %v3261_v60  ;;  %v2904_v59 = vadd.f32 %v8005_v36, %v2903_v49 }
 0x7da   : > { %4395 = vtanh.f32 %v3270_v31  ;;  %v4109_v8 = vpop.f32.mrf.mxu1 }
 0x7db   : > { %4397 = vtanh.f32 %v3262_v63  ;;  %v3273_v11 = vadd.f32 %v8005_v36, %v4109_v8 }
 0x7dc   : > { %v3264_v25 = vpop.f32.mrf.mxu1 }
 0x7dd   : > { %v3265_v4 = vadd.f32 %v8005_v36, %v3264_v25 }
 0x7de   : > { %v4080_v9 = vpop.f32.mrf.mxu0 }
 0x7df   : > { %4399 = vtanh.f32 %v3265_v4  ;;  %v2925_v31 = vadd.f32 %v8005_v36, %v4080_v9 }
 0x7e0   : > { %4401 = vtanh.f32 %v3273_v11  ;;  %v2916_v60 = vpop.f32.mrf.mxu0 }
 0x7e1   : > { %4403 = vtanh.f32 %v2904_v59  ;;  %v2917_v4 = vadd.f32 %v8005_v36, %v2916_v60 }
 0x7e2   : > { %v8015_v20 = vpop.eup %4389  ;;  %4405 = vtanh.f32 %v2925_v31  ;;  %v4081_v2 = vpop.f32.mrf.mxu0 }
 0x7e3   : > { %9848 = vst [vmem:[#allocation19_spill] sm:$0xff] %v8015_v20  ;;  %v2981_v42 = vmul.f32 %v8015_v20, %v8015_v20 }
 0x7e4   : > { %v8019_v33 = vpop.eup %4391  ;;  %v2919_v60 = vpop.f32.mrf.mxu0 }
 0x7e5   : > { %9849 = vst [vmem:[#allocation93_spill] sm:$0xff] %v8019_v33  ;;  %2999 = vadd.xlane.f32.xlu0 %v2981_v42  ;;  %v2979_v25 = vmul.f32 %v8019_v33, %v8019_v33 }
 0x7e6   : > { %v8024_v63 = vpop.eup %4393  ;;  %v4112_v8 = vpop.f32.mrf.mxu1 }
 0x7e7   : > { %9850 = vst [vmem:[#allocation20_spill] sm:$0xff] %v8024_v63  ;;  %v8026_v11 = vpop.eup %4395  ;;  %v3286_v49 = vadd.f32 %v8005_v36, %v4112_v8  ;;  %2995 = vadd.xlane.f32.xlu1 %v2979_v25  ;;  %v2982_v51 = vmul.f32 %v8024_v63, %v8024_v63  ;;  %v2928_v25 = vadd.f32 %v8005_v36, %v4081_v2 }
 0x7e8   : > { %9851 = vst [vmem:[#allocation98_spill] sm:$0xff] %v8026_v11  ;;  %v3277_v59 = vpop.f32.mrf.mxu1  ;;  %v3342_v9 = vmul.f32 %v8026_v11, %v8026_v11  ;;  %v8032_v42 = vpop.eup %4397 }
 0x7e9   : > { %9852 = vst [vmem:[#allocation22_spill] sm:$0xff] %v8032_v42  ;;  %4407 = vtanh.f32 %v3286_v49  ;;  %v3278_v26 = vadd.f32 %v8005_v36, %v3277_v59  ;;  %v3340_v49 = vmul.f32 %v8032_v42, %v8032_v42 }
 0x7ea   : > { %3360 = vadd.xlane.f32.xlu0 %v3342_v9  ;;  %v4113_v6 = vpop.f32.mrf.mxu1 }
 0x7eb   : > { %4409 = vtanh.f32 %v3278_v26  ;;  %3001 = vadd.xlane.f32.xlu1 %v2982_v51  ;;  %v3289_v8 = vadd.f32 %v8005_v36, %v4113_v6  ;;  %v2920_v26 = vadd.f32 %v8005_v36, %v2919_v60 }
 0x7ec   : > { %v8038_v31 = vpop.eup %4399  ;;  %4411 = vtanh.f32 %v2917_v4  ;;  %v3280_v59 = vpop.f32.mrf.mxu1 }
 0x7ed   : > { %9853 = vst [vmem:[#allocation100_spill] sm:$0xff] %v8038_v31  ;;  %v8043_v16 = vpop.eup %4401  ;;  %v3341_v9 = vmul.f32 %v8038_v31, %v8038_v31  ;;  %4413 = vtanh.f32 %v2928_v25  ;;  %v3281_v51 = vadd.f32 %v8005_v36, %v3280_v59  ;;  %v4699_v31 = vmov 3  }
 0x7ee   : > { %9854 = vst [vmem:[#allocation142_spill] sm:$0xff] %v8043_v16  ;;  %3356 = vadd.xlane.f32.xlu0 %v3340_v49  ;;  %4415 = vtanh.f32 %v3289_v8  ;;  %v3343_v6 = vmul.f32 %v8043_v16, %v8043_v16  ;;  %v8051_v2 = vpop.eup %4403  ;;  %4187 = vset.pattern.permute.xlu1 %v4699_v31 }
 0x7ef   : > { %3358 = vadd.xlane.f32.xlu1 %v3341_v9  ;;  %9855 = vst [vmem:[#allocation92_spill] sm:$0xff] %v8051_v2  ;;  %4417 = vtanh.f32 %v2920_v26  ;;  %v2980_v25 = vmul.f32 %v8051_v2, %v8051_v2  ;;  %v8056_v60 = vpop.eup %4405  ;;  %4188 = vset.pattern.permute.xlu0 %v4699_v31  ;;  %v9882_v31 = vld [vmem:[#allocation27_spill] sm:$0xff] }
 0x7f0   : > { %4419 = vtanh.f32 %v3281_v51  ;;  %9856 = vst [vmem:[#allocation118_spill] sm:$0xff] %v8056_v60  ;;  %v2985_v32 = vmul.f32 %v8056_v60, %v8056_v60 }
 0x7f2   : > { %3362 = vadd.xlane.f32.xlu0 %v3343_v6  ;;  %v4084_v4 = vpop.f32.mrf.mxu0 }
 0x7f3   : > { %v2941_v30 = vadd.f32 %v8005_v36, %v4084_v4 }
 0x7f4   : > { %v2932_v56 = vpop.f32.mrf.mxu0 }
 0x7f5   : > { %v2933_v59 = vadd.f32 %v8005_v36, %v2932_v56  ;;  %4421 = vtanh.f32 %v2941_v30 }
 0x7f6   : > { %v8058_v8 = vpop.eup %4407  ;;  %2997 = vadd.xlane.f32.xlu0 %v2980_v25  ;;  %v4116_v49 = vpop.f32.mrf.mxu1 }
 0x7f7   : > { %9857 = vst [vmem:[#allocation103_spill] sm:$0xff] %v8058_v8  ;;  %v3302_v9 = vadd.f32 %v8005_v36, %v4116_v49  ;;  %v3346_v26 = vmul.f32 %v8058_v8, %v8058_v8  ;;  %v4085_v6 = vpop.f32.mrf.mxu0 }
 0x7f8   : > { %v8064_v51 = vpop.eup %4409  ;;  %v3293_v4 = vpop.f32.mrf.mxu1  ;;  %v2944_v49 = vadd.f32 %v8005_v36, %v4085_v6 }
 0x7f9   : > { %9858 = vst [vmem:[#allocation115_spill] sm:$0xff] %v8064_v51  ;;  %v8068_v50 = vpop.eup %4411  ;;  %v3294_v25 = vadd.f32 %v8005_v36, %v3293_v4  ;;  %3368 = vadd.xlane.f32.xlu1 %v3346_v26  ;;  %4423 = vtanh.f32 %v3302_v9  ;;  %v3344_v47 = vmul.f32 %v8064_v51, %v8064_v51  ;;  %v2935_v27 = vpop.f32.mrf.mxu0 }
 0x7fa   : > { %9859 = vst [vmem:[#allocation108_spill] sm:$0xff] %v8068_v50  ;;  %3007 = vadd.xlane.f32.xlu0 %v2985_v32  ;;  %v4117_v56 = vpop.f32.mrf.mxu1  ;;  %4425 = vtanh.f32 %v2933_v59  ;;  %v8074_v30 = vpop.eup %4413  ;;  %v2983_v22 = vmul.f32 %v8068_v50, %v8068_v50  ;;  %v2936_v32 = vadd.f32 %v8005_v36, %v2935_v27 }
 0x7fb   : > { %9860 = vst [vmem:[#allocation13_spill] sm:$0xff] %v8074_v30  ;;  %4427 = vtanh.f32 %v3294_v25  ;;  %v3305_v52 = vadd.f32 %v8005_v36, %v4117_v56  ;;  %v8079_v4 = vpop.eup %4415  ;;  %v2986_v59 = vmul.f32 %v8074_v30, %v8074_v30 }
 0x7fc   : > { %9861 = vst [vmem:[#allocation97_spill] sm:$0xff] %v8079_v4  ;;  %v3296_v9 = vpop.f32.mrf.mxu1  ;;  %4429 = vtanh.f32 %v2944_v49  ;;  %v8084_v26 = vpop.eup %4417  ;;  %v3347_v56 = vmul.f32 %v8079_v4, %v8079_v4 }
 0x7fd   : > { %3364 = vadd.xlane.f32.xlu1 %v3344_v47  ;;  %9862 = vst [vmem:[#allocation113_spill] sm:$0xff] %v8084_v26  ;;  %4431 = vtanh.f32 %v3305_v52  ;;  %v3297_v6 = vadd.f32 %v8005_v36, %v3296_v9  ;;  %v8089_v19 = vpop.eup %4419  ;;  %v2984_v27 = vmul.f32 %v8084_v26, %v8084_v26 }
 0x7fe   : > { %3003 = vadd.xlane.f32.xlu0 %v2983_v22  ;;  %v4088_v25 = vpop.f32.mrf.mxu0  ;;  %9863 = vst [vmem:[#allocation96_spill] sm:$0xff] %v8089_v19  ;;  %4433 = vtanh.f32 %v2936_v32  ;;  %v3345_v52 = vmul.f32 %v8089_v19, %v8089_v19 }
 0x7ff   : > { %v2957_v22 = vadd.f32 %v8005_v36, %v4088_v25  ;;  %4435 = vtanh.f32 %v3297_v6 }
 0x800   : > { %v2948_v47 = vpop.f32.mrf.mxu0 }
 0x801   : > { %3009 = vadd.xlane.f32.xlu1 %v2986_v59  ;;  %4437 = vtanh.f32 %v2957_v22  ;;  %v2949_v32 = vadd.f32 %v8005_v36, %v2948_v47 }
 0x802   : > { %3370 = vadd.xlane.f32.xlu0 %v3347_v56  ;;  %v8096_v49 = vpop.eup %4421  ;;  %v4089_v6 = vpop.f32.mrf.mxu0 }
 0x803   : > { %9864 = vst [vmem:[#allocation141_spill] sm:$0xff] %v8096_v49  ;;  %v2960_v22 = vadd.f32 %v8005_v36, %v4089_v6  ;;  %v8124_v6 = vpop.permute.xlu0 %2355 }
 0x804   : > { %v2951_v39 = vpop.f32.mrf.mxu0 }
 0x805   : > { %3005 = vadd.xlane.f32.xlu1 %v2984_v27  ;;  %v4120_v9 = vpop.f32.mrf.mxu1  ;;  %v2989_v27 = vmul.f32 %v8096_v49, %v8096_v49 }
 0x806   : > { %3366 = vadd.xlane.f32.xlu0 %v3345_v52  ;;  %v3318_v12 = vadd.f32 %v8005_v36, %v4120_v9  ;;  %v8099_v59 = vpop.eup %4423 }
 0x807   : > { %9865 = vst [vmem:[#allocation105_spill] sm:$0xff] %v8099_v59  ;;  %v3309_v25 = vpop.f32.mrf.mxu1  ;;  %v8102_v56 = vpop.eup %4425  ;;  %v3350_v19 = vmul.f32 %v8099_v59, %v8099_v59 }
 0x808   : > { %9866 = vst [vmem:[#allocation18_spill] sm:$0xff] %v8102_v56  ;;  %4439 = vtanh.f32 %v3318_v12  ;;  %v3310_v26 = vadd.f32 %v8005_v36, %v3309_v25  ;;  %v8109_v52 = vpop.eup %4427  ;;  %v2987_v59 = vmul.f32 %v8102_v56, %v8102_v56 }
 0x809   : > { %9867 = vst [vmem:[#allocation107_spill] sm:$0xff] %v8109_v52  ;;  %v4121_v9 = vpop.f32.mrf.mxu1  ;;  %3376 = vadd.xlane.f32.xlu1 %v3350_v19  ;;  %4441 = vtanh.f32 %v2949_v32  ;;  %v8112_v47 = vpop.eup %4429  ;;  %v3348_v25 = vmul.f32 %v8109_v52, %v8109_v52  ;;  %v2952_v19 = vadd.f32 %v8005_v36, %v2951_v39 }
 0x80a   : > { %3015 = vadd.xlane.f32.xlu0 %v2989_v27  ;;  %9868 = vst [vmem:[#allocation143_spill] sm:$0xff] %v8112_v47  ;;  %4443 = vtanh.f32 %v3310_v26  ;;  %v3321_v12 = vadd.f32 %v8005_v36, %v4121_v9  ;;  %v8119_v49 = vpop.eup %4431  ;;  %v2990_v27 = vmul.f32 %v8112_v47, %v8112_v47 }
 0x80b   : > { %9869 = vst [vmem:[#allocation8_spill] sm:$0xff] %v8119_v49  ;;  %v3312_v51 = vpop.f32.mrf.mxu1  ;;  %4445 = vtanh.f32 %v2960_v22  ;;  %v8122_v32 = vpop.eup %4433  ;;  %v3351_v9 = vmul.f32 %v8119_v49, %v8119_v49 }
 0x80c   : > { %9870 = vst [vmem:[#allocation150_spill] sm:$0xff] %v8122_v32  ;;  %4447 = vtanh.f32 %v3321_v12  ;;  %v3313_v26 = vadd.f32 %v8005_v36, %v3312_v51  ;;  %v8131_v52 = vpop.eup %4435  ;;  %v8143_v22 = vpop.permute.xlu0 %2359 }
 0x80d   : > { %3372 = vadd.xlane.f32.xlu1 %v3348_v25  ;;  %9871 = vst [vmem:[#allocation104_spill] sm:$0xff] %v8131_v52  ;;  %v8133_v25 = vpop.permute.xlu1 %2353  ;;  %4449 = vtanh.f32 %v2952_v19  ;;  %v3349_v36 = vmul.f32 %v8131_v52, %v8131_v52 }
 0x80e   : > { %3011 = vadd.xlane.f32.xlu0 %v2987_v59  ;;  %v8135_v39 = vpop.eup %4437  ;;  %4451 = vtanh.f32 %v3313_v26  ;;  %v2988_v59 = vmul.f32 %v8122_v32, %v8122_v32  ;;  %v2401_v11 = vsel %vm2225_vm14, %v9881_v48, %v8133_v25  ;;  %v9884_v48 = vld [vmem:[#allocation60_spill] sm:$0xff] }
 0x80f   : > { %9872 = vst [vmem:[#allocation145_spill] sm:$0xff] %v8135_v39  ;;  %v2993_v26 = vmul.f32 %v8135_v39, %v8135_v39 }
 0x810   : > { %v8155_v32 = vpop.permute.xlu0 %2363 }
 0x811   : > { %3017 = vadd.xlane.f32.xlu1 %v2990_v27  ;;  %v2358_v19 = vpop.permute.xlu1 %2357 }
 0x812   : > { %3378 = vadd.xlane.f32.xlu0 %v3351_v9  ;;  %v2403_v42 = vsel %vm2227_vm13, %v9880_v55, %v2358_v19  ;;  %v9883_v55 = vld [vmem:[#allocation32_spill] sm:$0xff] }
 0x813   : > { %v2404_v3 = vsel %vm2228_vm5, %v9883_v55, %v8143_v22  ;;  %v9906_v22 = vld [vmem:[#allocation71_spill] sm:$0xff] }
 0x815   : > { %v8141_v51 = vpop.eup %4439  ;;  %3013 = vadd.xlane.f32.xlu1 %v2988_v59  ;;  %v8163_v49 = vpop.permute.xlu1 %2361 }
 0x816   : > { %9873 = vst [vmem:[#allocation95_spill] sm:$0xff] %v8141_v51  ;;  %3374 = vadd.xlane.f32.xlu0 %v3349_v36  ;;  %v3354_v12 = vmul.f32 %v8141_v51, %v8141_v51  ;;  %v8147_v27 = vpop.eup %4441 }
 0x817   : > { %9874 = vst [vmem:[#allocation148_spill] sm:$0xff] %v8147_v27  ;;  %v8151_v9 = vpop.eup %4443  ;;  %v2991_v59 = vmul.f32 %v8147_v27, %v8147_v27  ;;  %v8173_v27 = vpop.permute.xlu0 %2367 }
 0x818   : > { %9875 = vst [vmem:[#allocation109_spill] sm:$0xff] %v8151_v9  ;;  %v8153_v52 = vpop.eup %4445  ;;  %v3352_v36 = vmul.f32 %v8151_v9, %v8151_v9 }
 0x819   : > { %3384 = vadd.xlane.f32.xlu1 %v3354_v12  ;;  %9876 = vst [vmem:[#allocation149_spill] sm:$0xff] %v8153_v52  ;;  %v8161_v51 = vpop.eup %4447  ;;  %v8175_v9 = vpop.permute.xlu1 %2365 }
 0x81a   : > { %3023 = vadd.xlane.f32.xlu0 %v2993_v26  ;;  %9877 = vst [vmem:[#allocation9_spill] sm:$0xff] %v8161_v51  ;;  %v8165_v39 = vpop.eup %4449  ;;  %v3355_v12 = vmul.f32 %v8161_v51, %v8161_v51  ;;  %v2994_v26 = vmul.f32 %v8153_v52, %v8153_v52 }
 0x81b   : > { %9878 = vst [vmem:[#allocation146_spill] sm:$0xff] %v8165_v39  ;;  %v8171_v56 = vpop.eup %4451  ;;  %v8181_v51 = vpop.permute.xlu0 %2371 }
 0x81c   : > { %9879 = vst [vmem:[#allocation110_spill] sm:$0xff] %v8171_v56 }
 0x81d   : > { %3380 = vadd.xlane.f32.xlu1 %v3352_v36  ;;  %v2992_v36 = vmul.f32 %v8165_v39, %v8165_v39  ;;  %v8183_v47 = vpop.permute.xlu1 %2369 }
 0x81e   : > { %3019 = vadd.xlane.f32.xlu0 %v2991_v59  ;;  %v3353_v59 = vmul.f32 %v8171_v56, %v8171_v56 }
 0x81f   : > { %v8185_v52 = vpop.permute.xlu0 %2375 }
 0x821   : > { %3025 = vadd.xlane.f32.xlu1 %v2994_v26  ;;  %v8187_v0 = vpop.permute.xlu1 %2373 }
 0x822   : > { %3386 = vadd.xlane.f32.xlu0 %v3355_v12 }
 0x823   : > { %v8189_v12 = vpop.permute.xlu0 %2379 }
 0x825   : > { %3021 = vadd.xlane.f32.xlu1 %v2992_v36  ;;  %v8191_v26 = vpop.permute.xlu1 %2377 }
 0x826   : > { %3382 = vadd.xlane.f32.xlu0 %v3353_v59 }
 0x827   : > { %v8193_v4 = vpop.permute.xlu0 %2383 }
 0x829   : > { %v8195_v56 = vpop.permute.xlu1 %2381 }
 0x82b   : > { %v2797_v7 = vpop.permute.xlu0 %2796 }
 0x82d   : > { %v2795_v39 = vpop.permute.xlu1 %2794 }
 0x82e   : > { %v2842_v44 = vsel %vm2666_vm10, %v9884_v48, %v2795_v39  ;;  %v9915_v48 = vld [vmem:[#allocation127_spill] sm:$0xff] }
 0x82f   : > { %v2801_v59 = vpop.permute.xlu0 %2800 }
 0x830   : > { %v2845_v19 = vsel %vm2669_vm0, %v9890_v21, %v2801_v59 }
 0x831   : > { %v2799_v36 = vpop.permute.xlu1 %2798 }
 0x832   : > { %v2844_v15 = vsel %vm2668_vm15, %v9882_v31, %v2799_v36  ;;  %v9893_v31 = vld [vmem:[#allocation39_spill] sm:$0xff] }
 0x833   : > { %v8197_v50 = vpop.permute.xlu0 %2804 }
 0x835   : > { %v2803_v43 = vpop.permute.xlu1 %2802 }
 0x837   : > { %v8199_v30 = vpop.permute.xlu0 %2808 }
 0x839   : > { %v2807_v34 = vpop.permute.xlu1 %2806 }
 0x83b   : > { %v8201_v8 = vpop.permute.xlu0 %2812 }
 0x83d   : > { %v8203_v38 = vpop.permute.xlu1 %2810 }
 0x83f   : > { %v8205_v60 = vpop.permute.xlu0 %2816 }
 0x841   : > { %v8207_v58 = vpop.permute.xlu1 %2814 }
 0x843   : > { %v8209_v2 = vpop.permute.xlu0 %2820 }
 0x845   : > { %v8211_v35 = vpop.permute.xlu1 %2818 }
 0x847   : > { %v8213_v46 = vpop.permute.xlu0 %2824 }
 0x849   : > { %v8215_v16 = vpop.permute.xlu1 %2822 }
 0x86e   : > { %v3000_v57 = vpop.xlane.xlu0 %2999 }
 0x86f   : > { %v3029_v63 = vsub.f32 %v2403_v42, %v3000_v57  ;;  %v9916_v57 = vld [vmem:[#allocation47_spill] sm:$0xff] }
 0x870   : > { %v2996_v54 = vpop.xlane.xlu1 %2995  ;;  %vm9917_vm10 = vcmp.lt.f32.partialorder %v9915_v48, %v9916_v57 }
 0x871   : > { %v3027_v33 = vsub.f32 %v2401_v11, %v2996_v54  ;;  %3063 = vrot.lane.b32.xlu1 %v3029_v63, %s4697_s30 }
 0x873   : > { %v3361_v20 = vpop.xlane.xlu0 %3360  ;;  %3059 = vrot.lane.b32.xlu0 %v3027_v33, %s4697_s30 }
 0x874   : > { %v3390_v45 = vsub.f32 %v2844_v15, %v3361_v20  ;;  %v3002_v18 = vpop.xlane.xlu1 %3001  ;;  %v9887_v20 = vld [vmem:[#allocation63_spill] sm:$0xff] }
 0x875   : > { %v3030_v29 = vsub.f32 %v2404_v3, %v3002_v18  ;;  %v2843_v42 = vsel %vm2667_vm2, %v9887_v20, %v2797_v7  ;;  %v2402_v7 = vsel %vm2226_vm3, %v9893_v31, %v8124_v6  ;;  %v9902_v6 = vld [vmem:[#allocation67_spill] sm:$0xff]  ;;  %v9910_v18 = vld [vmem:[#allocation33_spill] sm:$0xff] }
 0x876   : > { %3424 = vrot.lane.b32.xlu1 %v3390_v45, %s4697_s30 }
 0x877   : > { %v3357_v14 = vpop.xlane.xlu0 %3356  ;;  %3065 = vrot.lane.b32.xlu0 %v3030_v29, %s4697_s30  ;;  %v9896_v29 = vld [vmem:[#allocation46_spill] sm:$0xff] }
 0x878   : > { %v3388_v33 = vsub.f32 %v2842_v44, %v3357_v14  ;;  %v3359_v15 = vpop.xlane.xlu1 %3358  ;;  %v2848_v59 = vsel %vm2672_vm1, %v9896_v29, %v2807_v34  ;;  %v9899_v14 = vld [vmem:[#allocation62_spill] sm:$0xff]  ;;  %v9914_v29 = vld [vmem:[#allocation45_spill] sm:$0xff] }
 0x879   : > { %v3389_v1 = vsub.f32 %v2843_v42, %v3359_v15  ;;  %v2407_v20 = vsel %vm2231_vm7, %v9899_v14, %v8175_v9  ;;  %v9903_v42 = vld [vmem:[#allocation35_spill] sm:$0xff]  ;;  %v9918_v14 = vld [vmem:[#allocation24_spill] sm:$0xff] }
 0x87a   : > { %3420 = vrot.lane.b32.xlu1 %v3388_v33, %s4697_s30  ;;  %v9919_v33 = vld [vmem:[#allocation44_spill] sm:$0xff]  ;;  %v9920_v15 = vld [vmem:[#allocation119_spill] sm:$0xff] }
 0x87b   : > { %v3363_v36 = vpop.xlane.xlu0 %3362  ;;  %3422 = vrot.lane.b32.xlu0 %v3389_v1, %s4697_s30  ;;  %v9904_v1 = vld [vmem:[#allocation48_spill] sm:$0xff]  ;;  %vm9921_vm5 = vcmp.lt.f32.partialorder %v9919_v33, %v9920_v15  ;;  %v9946_v33 = vld [vmem:[#allocation122_spill] sm:$0xff] }
 0x87c   : > { %v3391_v39 = vsub.f32 %v2845_v19, %v3363_v36  ;;  %vm9905_vm13 = vcmp.lt.f32.partialorder %v9903_v42, %v9904_v1  ;;  %v9907_v19 = vld [vmem:[#allocation83_spill] sm:$0xff]  ;;  %v9908_v36 = vld [vmem:[#allocation80_spill] sm:$0xff]  ;;  %v9947_v15 = vld [vmem:[#allocation50_spill] sm:$0xff] }
 0x87d   : > { %v2846_v21 = vsel %vm9905_vm13, %v9902_v6, %v2803_v43  ;;  %vm9909_vm15 = vcmp.lt.f32.partialorder %v9907_v19, %v9908_v36  ;;  %v9924_v6 = vld [vmem:[#allocation38_spill] sm:$0xff]  ;;  %v9930_v19 = vld [vmem:[#allocation125_spill] sm:$0xff]  ;;  %v9931_v36 = vld [vmem:[#allocation128_spill] sm:$0xff]  ;;  %vm9948_vm9 = vcmp.lt.f32.partialorder %v9946_v33, %v9947_v15  ;;  %vm9964_vm13 = vcmp.lt.f32.partialorder %v7748_v28, %v7692_v53 }
 0x87e   : > { %3426 = vrot.lane.b32.xlu1 %v3391_v39, %s4697_s30  ;;  %v2405_v39 = vsel %vm9909_vm15, %v9906_v22, %v8163_v49  ;;  %v2849_v49 = vsel %vm9917_vm10, %v9914_v29, %v8199_v30  ;;  %v9929_v22 = vld [vmem:[#allocation69_spill] sm:$0xff]  ;;  %vm9932_vm3 = vcmp.lt.f32.partialorder %v9930_v19, %v9931_v36  ;;  %vm9966_vm15 = vcmp.lt.f32.partialorder %v7728_v23, %v7685_v5  ;;  %v9969_v53 = vld [vmem:[#allocation56_spill] sm:$0xff] }
 0x87f   : > { %v2998_v55 = vpop.xlane.xlu0 %2997  ;;  %v9957_v19 = vld [vmem:[#allocation73_spill] sm:$0xff]  ;;  %vm9972_vm10 = vcmp.lt.f32.partialorder %v7757_v17, %v7745_v37  ;;  %v4569_v15 = vld [vmem:[%s5168_s27] sm:$0xff] }
 0x880   : > { %v3028_v3 = vsub.f32 %v2402_v7, %v2998_v55  ;;  %v9911_v7 = vld [vmem:[#allocation81_spill] sm:$0xff]  ;;  %v2856_v36 = vsel %vm9958_vm6, %v9957_v19, %v8215_v16  ;;  %v9965_v16 = vld [vmem:[#allocation36_spill] sm:$0xff] }
 0x881   : > { %v9912_v55 = vld [vmem:[#allocation77_spill] sm:$0xff] }
 0x882   : > { %3061 = vrot.lane.b32.xlu1 %v3028_v3, %s4697_s30  ;;  %v3369_v54 = vpop.xlane.xlu1 %3368  ;;  %vm9913_vm14 = vcmp.lt.f32.partialorder %v9911_v7, %v9912_v55  ;;  %v9935_v7 = vld [vmem:[#allocation51_spill] sm:$0xff]  ;;  %v9937_v55 = vld [vmem:[#allocation12_spill] sm:$0xff] }
 0x883   : > { %v3394_v44 = vsub.f32 %v2848_v59, %v3369_v54  ;;  %v3008_v63 = vpop.xlane.xlu0 %3007  ;;  %v2408_v43 = vsel %vm9913_vm14, %v9910_v18, %v8173_v27  ;;  %v2406_v27 = vsel %vm9921_vm5, %v9918_v14, %v8155_v32  ;;  %v9934_v18 = vld [vmem:[#allocation124_spill] sm:$0xff]  ;;  %v9945_v14 = vld [vmem:[#allocation66_spill] sm:$0xff] }
 0x884   : > { %v3033_v11 = vsub.f32 %v2407_v20, %v3008_v63  ;;  %v9922_v63 = vld [vmem:[#allocation65_spill] sm:$0xff]  ;;  %vm9936_vm2 = vcmp.lt.f32.partialorder %v9934_v18, %v9935_v7  ;;  %v9963_v7 = vld [vmem:[#allocation43_spill] sm:$0xff] }
 0x885   : > { %3432 = vrot.lane.b32.xlu0 %v3394_v44, %s4697_s30  ;;  %v2854_v62 = vsel %vm9964_vm13, %v9963_v7, %v8211_v35  ;;  %v9971_v35 = vld [vmem:[#allocation31_spill] sm:$0xff] }
 0x886   : > { %3071 = vrot.lane.b32.xlu1 %v3033_v11, %s4697_s30  ;;  %v3365_v34 = vpop.xlane.xlu1 %3364  ;;  %v9923_v11 = vld [vmem:[#allocation16_spill] sm:$0xff]  ;;  %v2857_v23 = vsel %vm9972_vm10, %v9971_v35, %v8213_v46 }
 0x887   : > { %v3392_v25 = vsub.f32 %v2846_v21, %v3365_v34  ;;  %v3004_v9 = vpop.xlane.xlu0 %3003  ;;  %vm9925_vm0 = vcmp.lt.f32.partialorder %v9923_v11, %v9924_v6  ;;  %v9926_v21 = vld [vmem:[#allocation30_spill] sm:$0xff]  ;;  %v9927_v34 = vld [vmem:[#allocation53_spill] sm:$0xff] }
 0x888   : > { %v3031_v31 = vsub.f32 %v2405_v39, %v3004_v9  ;;  %v2847_v30 = vsel %vm9925_vm0, %v9922_v63, %v8197_v50  ;;  %vm9928_vm1 = vcmp.lt.f32.partialorder %v7651_v13, %v9927_v34  ;;  %v2411_v39 = vsel %vm9932_vm3, %v9929_v22, %v8187_v0  ;;  %v9949_v6 = vld [vmem:[#allocation70_spill] sm:$0xff]  ;;  %v9955_v34 = vld [vmem:[#allocation129_spill] sm:$0xff] }
 0x889   : > { %3428 = vrot.lane.b32.xlu0 %v3392_v25, %s4697_s30  ;;  %v2852_v25 = vsel %vm9928_vm1, %v9926_v21, %v8207_v58  ;;  %v9954_v21 = vld [vmem:[#allocation130_spill] sm:$0xff]  ;;  %vm9978_vm0 = vcmp.lt.f32.partialorder %v7737_v40, %v7725_v61 }
 0x88a   : > { %3067 = vrot.lane.b32.xlu1 %v3031_v31, %s4697_s30  ;;  %v3010_v45 = vpop.xlane.xlu1 %3009  ;;  %vm9956_vm8 = vcmp.lt.f32.partialorder %v9954_v21, %v9955_v34  ;;  %v4574_v34 = vld [vmem:[%s5168_s27 + $0x88] sm:$0xff] }
 0x88b   : > { %v3034_v3 = vsub.f32 %v2408_v43, %v3010_v45  ;;  %v3371_v59 = vpop.xlane.xlu0 %3370  ;;  %v9933_v45 = vld [vmem:[#allocation68_spill] sm:$0xff]  ;;  %v9938_v43 = vld [vmem:[#allocation133_spill] sm:$0xff] }
 0x88c   : > { %v3395_v54 = vsub.f32 %v2849_v49, %v3371_v59  ;;  %v2850_v13 = vsel %vm9936_vm2, %v9933_v45, %v8203_v38  ;;  %v9941_v59 = vld [vmem:[#allocation41_spill] sm:$0xff] }
 0x88d   : > { %3073 = vrot.lane.b32.xlu0 %v3034_v3, %s4697_s30  ;;  %v9939_v3 = vld [vmem:[#allocation123_spill] sm:$0xff] }
 0x88e   : > { %3434 = vrot.lane.b32.xlu1 %v3395_v54, %s4697_s30  ;;  %v3006_v44 = vpop.xlane.xlu1 %3005  ;;  %vm9940_vm7 = vcmp.lt.f32.partialorder %v9938_v43, %v9939_v3  ;;  %v9942_v54 = vld [vmem:[#allocation84_spill] sm:$0xff]  ;;  %v9967_v3 = vld [vmem:[#allocation79_spill] sm:$0xff] }
 0x88f   : > { %v3032_v20 = vsub.f32 %v2406_v27, %v3006_v44  ;;  %v3367_v42 = vpop.xlane.xlu0 %3366  ;;  %v2409_v0 = vsel %vm9940_vm7, %v9937_v55, %v8183_v47  ;;  %v9943_v44 = vld [vmem:[#allocation121_spill] sm:$0xff]  ;;  %v2853_v47 = vsel %vm9948_vm9, %v9945_v14, %v8205_v60  ;;  %v4568_v14 = vld [vmem:[%s5168_s27 + $0x10] sm:$0xff] }
 0x890   : > { %v3393_v1 = vsub.f32 %v2847_v30, %v3367_v42  ;;  %vm9944_vm4 = vcmp.lt.f32.partialorder %v9942_v54, %v9943_v44  ;;  %v9950_v30 = vld [vmem:[#allocation126_spill] sm:$0xff]  ;;  %v9951_v42 = vld [vmem:[#allocation28_spill] sm:$0xff]  ;;  %v9977_v54 = vld [vmem:[#allocation49_spill] sm:$0xff] }
 0x891   : > { %3069 = vrot.lane.b32.xlu0 %v3032_v20, %s4697_s30  ;;  %v2412_v38 = vsel %vm9944_vm4, %v9941_v59, %v8185_v52  ;;  %vm9952_vm11 = vcmp.lt.f32.partialorder %v9950_v30, %v9951_v42  ;;  %v2855_v17 = vsel %vm9978_vm0, %v9977_v54, %v8209_v2  ;;  %v4570_v2 = vld [vmem:[%s5168_s27 + $0x90] sm:$0xff] }
 0x892   : > { %3430 = vrot.lane.b32.xlu1 %v3393_v1, %s4697_s30  ;;  %v3377_v32 = vpop.xlane.xlu1 %3376  ;;  %v2410_v52 = vsel %vm9952_vm11, %v9949_v6, %v8181_v51  ;;  %v9953_v1 = vld [vmem:[#allocation72_spill] sm:$0xff] }
 0x893   : > { %v3016_v50 = vpop.xlane.xlu0 %3015  ;;  %v3398_v9 = vsub.f32 %v2852_v25, %v3377_v32  ;;  %v2851_v60 = vsel %vm9956_vm8, %v9953_v1, %v8201_v8  ;;  %v4572_v6 = vld [vmem:[%s5168_s27 + $0x80] sm:$0xff]  ;;  %v4573_v1 = vld [vmem:[%s5168_s27 + $0x98] sm:$0xff] }
 0x894   : > { %v3037_v31 = vsub.f32 %v2411_v39, %v3016_v50  ;;  %v9959_v39 = vld [vmem:[#allocation42_spill] sm:$0xff] }
 0x895   : > { %3440 = vrot.lane.b32.xlu0 %v3398_v9, %s4697_s30  ;;  %v9960_v50 = vld [vmem:[#allocation54_spill] sm:$0xff]  ;;  %v9961_v9 = vld [vmem:[#allocation55_spill] sm:$0xff] }
 0x896   : > { %3079 = vrot.lane.b32.xlu1 %v3037_v31, %s4697_s30  ;;  %v3373_v58 = vpop.xlane.xlu1 %3372  ;;  %vm9962_vm12 = vcmp.lt.f32.partialorder %v9960_v50, %v9961_v9  ;;  %v4577_v50 = vld [vmem:[%s5168_s27 + $0xb0] sm:$0xff] }
 0x897   : > { %v3012_v29 = vpop.xlane.xlu0 %3011  ;;  %v3396_v48 = vsub.f32 %v2850_v13, %v3373_v58  ;;  %v2415_v8 = vsel %vm9962_vm12, %v9959_v39, %v8195_v56  ;;  %v2413_v56 = vsel %vm9966_vm15, %v9965_v16, %v8191_v26 }
 0x898   : > { %v3035_v57 = vsub.f32 %v2409_v0, %v3012_v29  ;;  %v9968_v0 = vld [vmem:[#allocation132_spill] sm:$0xff] }
 0x899   : > { %3436 = vrot.lane.b32.xlu0 %v3396_v48, %s4697_s30  ;;  %vm9970_vm14 = vcmp.lt.f32.partialorder %v9968_v0, %v9969_v53  ;;  %v4582_v0 = vld [vmem:[%s5168_s27 + $0x28] sm:$0xff] }
 0x89a   : > { %3075 = vrot.lane.b32.xlu1 %v3035_v57, %s4697_s30  ;;  %v3018_v49 = vpop.xlane.xlu1 %3017  ;;  %v2416_v28 = vsel %vm9970_vm14, %v9967_v3, %v8193_v4  ;;  %v9973_v57 = vld [vmem:[#allocation85_spill] sm:$0xff]  ;;  %v9975_v4 = vld [vmem:[#allocation131_spill] sm:$0xff] }
 0x89b   : > { %v3379_v27 = vpop.xlane.xlu0 %3378  ;;  %v3038_v20 = vsub.f32 %v2412_v38, %v3018_v49  ;;  %v9974_v49 = vld [vmem:[#allocation59_spill] sm:$0xff] }
 0x89c   : > { %v3399_v63 = vsub.f32 %v2853_v47, %v3379_v27  ;;  %vm9976_vm5 = vcmp.lt.f32.partialorder %v9974_v49, %v9975_v4 }
 0x89d   : > { %3081 = vrot.lane.b32.xlu0 %v3038_v20, %s4697_s30  ;;  %v2414_v59 = vsel %vm9976_vm5, %v9973_v57, %v8189_v12  ;;  %v4571_v20 = vld [vmem:[%s5168_s27 + $0x18] sm:$0xff] }
 0x89e   : > { %3442 = vrot.lane.b32.xlu1 %v3399_v63, %s4697_s30  ;;  %v3014_v11 = vpop.xlane.xlu1 %3013 }
 0x89f   : > { %v3375_v25 = vpop.xlane.xlu0 %3374  ;;  %v3036_v32 = vsub.f32 %v2410_v52, %v3014_v11 }
 0x8a0   : > { %v3397_v22 = vsub.f32 %v2851_v60, %v3375_v25  ;;  %v4575_v25 = vld [vmem:[%s5168_s27 + $0x8] sm:$0xff] }
 0x8a1   : > { %3077 = vrot.lane.b32.xlu0 %v3036_v32, %s4697_s30 }
 0x8a2   : > { %3438 = vrot.lane.b32.xlu1 %v3397_v22, %s4697_s30  ;;  %v3385_v51 = vpop.xlane.xlu1 %3384 }
 0x8a3   : > { %v3024_v31 = vpop.xlane.xlu0 %3023  ;;  %v3402_v45 = vsub.f32 %v2856_v36, %v3385_v51  ;;  %v4576_v51 = vld [vmem:[%s5168_s27 + $0x30] sm:$0xff] }
 0x8a4   : > { %v3041_v18 = vsub.f32 %v2415_v8, %v3024_v31 }
 0x8a5   : > { %3448 = vrot.lane.b32.xlu0 %v3402_v45, %s4697_s30  ;;  %v4578_v45 = vld [vmem:[%s5168_s27 + $0x20] sm:$0xff] }
 0x8a6   : > { %3087 = vrot.lane.b32.xlu1 %v3041_v18, %s4697_s30  ;;  %v3381_v24 = vpop.xlane.xlu1 %3380 }
 0x8a7   : > { %v3020_v13 = vpop.xlane.xlu0 %3019  ;;  %v3400_v58 = vsub.f32 %v2854_v62, %v3381_v24  ;;  %v4579_v62 = vld [vmem:[%s5168_s27 + $0x38] sm:$0xff] }
 0x8a8   : > { %v3039_v55 = vsub.f32 %v2413_v56, %v3020_v13  ;;  %v4580_v56 = vld [vmem:[%s5168_s27 + $0xb8] sm:$0xff]  ;;  %v4581_v13 = vld [vmem:[%s5168_s27 + $0xa0] sm:$0xff] }
 0x8a9   : > { %3444 = vrot.lane.b32.xlu0 %v3400_v58, %s4697_s30 }
 0x8aa   : > { %3083 = vrot.lane.b32.xlu1 %v3039_v55, %s4697_s30  ;;  %v3026_v43 = vpop.xlane.xlu1 %3025 }
 0x8ab   : > { %v3387_v5 = vpop.xlane.xlu0 %3386  ;;  %v3042_v26 = vsub.f32 %v2416_v28, %v3026_v43 }
 0x8ac   : > { %v3403_v29 = vsub.f32 %v2857_v23, %v3387_v5  ;;  %v4583_v23 = vld [vmem:[%s5168_s27 + $0x50] sm:$0xff]  ;;  %v4584_v5 = vld [vmem:[%s5168_s27 + $0xa8] sm:$0xff] }
 0x8ad   : > { %3089 = vrot.lane.b32.xlu0 %v3042_v26, %s4697_s30 }
 0x8ae   : > { %3450 = vrot.lane.b32.xlu1 %v3403_v29, %s4697_s30  ;;  %v3022_v48 = vpop.xlane.xlu1 %3021  ;;  %v4585_v29 = vld [vmem:[%s5168_s27 + $0xd0] sm:$0xff] }
 0x8af   : > { %v3383_v37 = vpop.xlane.xlu0 %3382  ;;  %v3040_v46 = vsub.f32 %v2414_v59, %v3022_v48  ;;  %v4586_v59 = vld [vmem:[%s5168_s27 + $0x40] sm:$0xff] }
 0x8b0   : > { %v3401_v44 = vsub.f32 %v2855_v17, %v3383_v37  ;;  %v4587_v37 = vld [vmem:[%s5168_s27 + $0x58] sm:$0xff] }
 0x8b1   : > { %3085 = vrot.lane.b32.xlu0 %v3040_v46, %s4697_s30 }
 0x8b2   : > { %3446 = vrot.lane.b32.xlu1 %v3401_v44, %s4697_s30 }
 0x8e3   : > { %v3064_v38 = vpop.permute.xlu1 %3063 }
 0x8e4   : > { %vm3109_vm1 = vcmp.lt.f32.partialorder %v4568_v14, %v3064_v38  ;;  %v4588_v38 = vld [vmem:[%s5168_s27 + $0xc0] sm:$0xff]  ;;  %v4589_v14 = vld [vmem:[%s5168_s27 + $0xd8] sm:$0xff] }
 0x8e5   : > { %v3125_v12 = vsel %vm3109_vm1, 1, %v9421_v41  ;;  %v3060_v33 = vpop.permute.xlu0 %3059 }
 0x8e6   : > { %vm3107_vm3 = vcmp.lt.f32.partialorder %v4569_v15, %v3060_v33  ;;  %3146 = vperm.xlu1 %4187, %v3125_v12  }
 0x8e7   : > { %v3123_v61 = vsel %vm3107_vm3, 1, %v9421_v41 }
 0x8e8   : > { %v3425_v40 = vpop.permute.xlu1 %3424 }
 0x8e9   : > { %vm3470_vm2 = vcmp.lt.f32.partialorder %v4570_v2, %v3425_v40  ;;  %v3066_v47 = vpop.permute.xlu0 %3065 }
 0x8ea   : > { %v3486_v27 = vsel %vm3470_vm2, 1, %v9421_v41  ;;  %vm3110_vm7 = vcmp.lt.f32.partialorder %v4571_v20, %v3066_v47  ;;  %3140 = vperm.xlu1 %4187, %v3123_v61   ;;  %v4590_v61 = vld [vmem:[%s5168_s27 + $0x48] sm:$0xff] }
 0x8eb   : > { %3507 = vperm.xlu0 %4188, %v3486_v27   ;;  %v3126_v11 = vsel %vm3110_vm7, 1, %v9421_v41  ;;  %v4591_v27 = vld [vmem:[%s5168_s27 + $0x70] sm:$0xff] }
 0x8ec   : > { %v3421_v63 = vpop.permute.xlu1 %3420 }
 0x8ed   : > { %vm3468_vm4 = vcmp.lt.f32.partialorder %v4572_v6, %v3421_v63  ;;  %v3423_v42 = vpop.permute.xlu0 %3422 }
 0x8ee   : > { %v3484_v30 = vsel %vm3468_vm4, 1, %v9421_v41  ;;  %3149 = vperm.xlu1 %4187, %v3126_v11   ;;  %vm3469_vm11 = vcmp.lt.f32.partialorder %v4574_v34, %v3423_v42  ;;  %v4592_v11 = vld [vmem:[%s5168_s27 + $0xc8] sm:$0xff]  ;;  %v4593_v42 = vld [vmem:[%s5168_s27 + $0x60] sm:$0xff] }
 0x8ef   : > { %3501 = vperm.xlu0 %4188, %v3484_v30   ;;  %v3485_v32 = vsel %vm3469_vm11, 1, %v9421_v41 }
 0x8f0   : > { %v3427_v52 = vpop.permute.xlu1 %3426 }
 0x8f1   : > { %vm3471_vm9 = vcmp.lt.f32.partialorder %v4573_v1, %v3427_v52 }
 0x8f2   : > { %v3487_v21 = vsel %vm3471_vm9, 1, %v9421_v41 }
 0x8f3   : > { %3510 = vperm.xlu1 %4187, %v3487_v21   ;;  %v4594_v21 = vld [vmem:[%s5168_s27 + $0xe0] sm:$0xff] }
 0x8f4   : > { %v3062_v60 = vpop.permute.xlu1 %3061 }
 0x8f5   : > { %vm3108_vm8 = vcmp.lt.f32.partialorder %v4575_v25, %v3062_v60  ;;  %v4595_v25 = vld [vmem:[%s5168_s27 + $0x78] sm:$0xff] }
 0x8f6   : > { %v3124_v22 = vsel %vm3108_vm8, 1, %v9421_v41 }
 0x8f7   : > { %3143 = vperm.xlu0 %4188, %v3124_v22   ;;  %3504 = vperm.xlu1 %4187, %v3485_v32   ;;  %v3433_v19 = vpop.permute.xlu0 %3432 }
 0x8f8   : > { %v3072_v36 = vpop.permute.xlu1 %3071  ;;  %vm3474_vm12 = vcmp.lt.f32.partialorder %v4577_v50, %v3433_v19  ;;  %v4596_v19 = vld [vmem:[%s5168_s27 + $0xf0] sm:$0xff] }
 0x8f9   : > { %vm3113_vm6 = vcmp.lt.f32.partialorder %v4576_v51, %v3072_v36  ;;  %v3490_v31 = vsel %vm3474_vm12, 1, %v9421_v41 }
 0x8fa   : > { %v3129_v39 = vsel %vm3113_vm6, 1, %v9421_v41 }
 0x8fb   : > { %3158 = vperm.xlu0 %4188, %v3129_v39   ;;  %v3429_v9 = vpop.permute.xlu0 %3428  ;;  %v4597_v39 = vld [vmem:[%s5168_s27 + $0x68] sm:$0xff] }
 0x8fc   : > { %v3068_v8 = vpop.permute.xlu1 %3067  ;;  %vm3472_vm10 = vcmp.lt.f32.partialorder %v4581_v13, %v3429_v9  ;;  %v9981_v13 = vld [vmem:[#allocation93_spill] sm:$0xff] }
 0x8fd   : > { %vm3111_vm13 = vcmp.lt.f32.partialorder %v4578_v45, %v3068_v8  ;;  %v3488_v3 = vsel %vm3472_vm10, 1, %v9421_v41  ;;  %v4598_v8 = vld [vmem:[%s5168_s27 + $0xe8] sm:$0xff]  ;;  %v4599_v45 = vld [vmem:[%s5168_s27 + $0xf8] sm:$0xff]  ;;  %s4700_s27 = smov [#allocation5]  }
 0x8fe   : > { %v3127_v16 = vsel %vm3111_vm13, 1, %v9421_v41  ;;  %s4630_s28 = sshll.u32 %s4700_s27, 4  ;;  %s4631_s28 = int_to_ptr.vmem [resolvable:$false] %s4630_s28 }
 0x8ff   : > { %3519 = vperm.xlu0 %4188, %v3490_v31   ;;  %v3074_v18 = vpop.permute.xlu0 %3073  ;;  %s4632_s29 = scalar_lea.vmem %s4631_s28, 8192  ;;  %p4633_p11 = scmp.lt.s32.totalorder %s8571_s13, %s4631_s28 }
 0x900   : > { %v3435_v7 = vpop.permute.xlu1 %3434  ;;  %vm3114_vm15 = vcmp.lt.f32.partialorder %v4579_v62, %v3074_v18  ;;  %v9979_v62 = vld [vmem:[#allocation19_spill] sm:$0xff]  ;;  %p4634_p12 = scmp.lt.s32.totalorder %s4632_s29, %s4626_s23 }
 0x901   : > { %v3130_v24 = vsel %vm3114_vm15, 1, %v9421_v41  ;;  %vm3475_vm14 = vcmp.lt.f32.partialorder %v4580_v56, %v3435_v7  ;;  %v9980_v56 = vld [vmem:[#allocation136_spill] sm:$0xff] }
 0x902   : > { %3161 = vperm.xlu1 %4187, %v3130_v24   ;;  %v3491_v43 = vsel %vm3475_vm14, 1, %v9421_v41  ;;  %p4635_p13 = por %p4634_p12, %p4633_p11 }
 0x903   : > { %3152 = vperm.xlu0 %4188, %v3127_v16   ;;  %v3070_v58 = vpop.permute.xlu0 %3069 }
 0x904   : > { %v3431_v55 = vpop.permute.xlu1 %3430  ;;  %vm3112_vm5 = vcmp.lt.f32.partialorder %v4582_v0, %v3070_v58  ;;  %p4636_p0 = pnand %p4635_p13, %p4629_p10 }
 0x905   : > { %v3128_v35 = vsel %vm3112_vm5, 1, %v9421_v41  ;;  %vm3473_vm1 = vcmp.lt.f32.partialorder %v4584_v5, %v3431_v55  ;;  %v9982_v55 = vld [vmem:[#allocation138_spill] sm:$0xff] }
 0x906   : > { %3522 = vperm.xlu1 %4187, %v3491_v43   ;;  %v3489_v49 = vsel %vm3473_vm1, 1, %v9421_v41  ;;  %v9983_v43 = vld [vmem:[#allocation98_spill] sm:$0xff] }
 0x907   : > { %3513 = vperm.xlu0 %4188, %v3488_v3   ;;  %v3441_v28 = vpop.permute.xlu0 %3440  ;;  %v9987_v5 = vld [vmem:[#allocation22_spill] sm:$0xff] }
 0x908   : > { %v3080_v53 = vpop.permute.xlu1 %3079  ;;  %vm3478_vm3 = vcmp.lt.f32.partialorder %v4585_v29, %v3441_v28  ;;  %v9985_v28 = vld [vmem:[#allocation20_spill] sm:$0xff] }
 0x909   : > { %vm3117_vm0 = vcmp.lt.f32.partialorder %v4583_v23, %v3080_v53  ;;  %v3494_v4 = vsel %vm3478_vm3, 1, %v9421_v41  ;;  %v9984_v53 = vld [vmem:[#allocation57_spill] sm:$0xff]  ;;  %v9986_v23 = vld [vmem:[#allocation134_spill] sm:$0xff] }
 0x90a   : > { %v3133_v26 = vsel %vm3117_vm0, 1, %v9421_v41  ;;  %3155 = vperm.xlu1 %4187, %v3128_v35  }
 0x90b   : > { %3170 = vperm.xlu0 %4188, %v3133_v26   ;;  %v3437_v57 = vpop.permute.xlu0 %3436 }
 0x90c   : > { %v3076_v48 = vpop.permute.xlu1 %3075  ;;  %vm3476_vm4 = vcmp.lt.f32.partialorder %v4588_v38, %v3437_v57  ;;  %v9989_v57 = vld [vmem:[#allocation142_spill] sm:$0xff] }
 0x90d   : > { %vm3115_vm2 = vcmp.lt.f32.partialorder %v4586_v59, %v3076_v48  ;;  %v3492_v15 = vsel %vm3476_vm4, 1, %v9421_v41  ;;  %v9988_v48 = vld [vmem:[#allocation135_spill] sm:$0xff] }
 0x90e   : > { %3516 = vperm.xlu1 %4187, %v3489_v49   ;;  %v3131_v46 = vsel %vm3115_vm2, 1, %v9421_v41 }
 0x90f   : > { %3531 = vperm.xlu0 %4188, %v3494_v4   ;;  %v3082_v17 = vpop.permute.xlu0 %3081 }
 0x910   : > { %v3443_v54 = vpop.permute.xlu1 %3442  ;;  %vm3118_vm7 = vcmp.lt.f32.partialorder %v4587_v37, %v3082_v17  ;;  %v9991_v17 = vld [vmem:[#allocation100_spill] sm:$0xff] }
 0x911   : > { %v3134_v44 = vsel %vm3118_vm7, 1, %v9421_v41  ;;  %vm3479_vm9 = vcmp.lt.f32.partialorder %v4589_v14, %v3443_v54  ;;  %v9990_v54 = vld [vmem:[#allocation26_spill] sm:$0xff] }
 0x912   : > { %3173 = vperm.xlu1 %4187, %v3134_v44   ;;  %v3495_v40 = vsel %vm3479_vm9, 1, %v9421_v41  ;;  %v9993_v44 = vld [vmem:[#allocation92_spill] sm:$0xff] }
 0x913   : > { %3164 = vperm.xlu0 %4188, %v3131_v46   ;;  %v3078_v33 = vpop.permute.xlu0 %3077  ;;  %v9992_v46 = vld [vmem:[#allocation29_spill] sm:$0xff] }
 0x914   : > { %v3439_v12 = vpop.permute.xlu1 %3438  ;;  %vm3116_vm11 = vcmp.lt.f32.partialorder %v4590_v61, %v3078_v33  ;;  %v9995_v33 = vld [vmem:[#allocation118_spill] sm:$0xff]  ;;  %v9996_v61 = vld [vmem:[#allocation87_spill] sm:$0xff] }
 0x915   : > { %v3132_v20 = vsel %vm3116_vm11, 1, %v9421_v41  ;;  %vm3477_vm6 = vcmp.lt.f32.partialorder %v4592_v11, %v3439_v12  ;;  %v9994_v12 = vld [vmem:[#allocation137_spill] sm:$0xff] }
 0x916   : > { %3534 = vperm.xlu1 %4187, %v3495_v40   ;;  %v3493_v52 = vsel %vm3477_vm6, 1, %v9421_v41  ;;  %v9999_v11 = vld [vmem:[#allocation13_spill] sm:$0xff] }
 0x917   : > { %3525 = vperm.xlu0 %4188, %v3492_v15   ;;  %v3449_v47 = vpop.permute.xlu0 %3448 }
 0x918   : > { %v3088_v2 = vpop.permute.xlu1 %3087  ;;  %vm3482_vm14 = vcmp.lt.f32.partialorder %v4596_v19, %v3449_v47 }
 0x919   : > { %vm3121_vm8 = vcmp.lt.f32.partialorder %v4591_v27, %v3088_v2  ;;  %v3498_v50 = vsel %vm3482_vm14, 1, %v9421_v41  ;;  %v9997_v2 = vld [vmem:[#allocation103_spill] sm:$0xff] }
 0x91a   : > { %v3137_v63 = vsel %vm3121_vm8, 1, %v9421_v41  ;;  %3167 = vperm.xlu1 %4187, %v3132_v20  }
 0x91b   : > { %3182 = vperm.xlu0 %4188, %v3137_v63   ;;  %v3445_v30 = vpop.permute.xlu0 %3444  ;;  %v9998_v63 = vld [vmem:[#allocation58_spill] sm:$0xff] }
 0x91c   : > { %v3084_v6 = vpop.permute.xlu1 %3083  ;;  %vm3480_vm13 = vcmp.lt.f32.partialorder %v4594_v21, %v3445_v30  ;;  %v10000_v30 = vld [vmem:[#allocation139_spill] sm:$0xff] }
 0x91d   : > { %vm3119_vm12 = vcmp.lt.f32.partialorder %v4593_v42, %v3084_v6  ;;  %v3496_v32 = vsel %vm3480_vm13, 1, %v9421_v41  ;;  %v10001_v42 = vld [vmem:[#allocation108_spill] sm:$0xff] }
 0x91e   : > { %v3135_v1 = vsel %vm3119_vm12, 1, %v9421_v41  ;;  %3528 = vperm.xlu1 %4187, %v3493_v52  }
 0x91f   : > { %3176 = vperm.xlu0 %4188, %v3135_v1   ;;  %v3090_v60 = vpop.permute.xlu0 %3089 }
 0x920   : > { %v3451_v34 = vpop.permute.xlu1 %3450  ;;  %vm3122_vm15 = vcmp.lt.f32.partialorder %v4595_v25, %v3090_v60  ;;  %v10003_v60 = vld [vmem:[#allocation97_spill] sm:$0xff] }
 0x921   : > { %v3138_v22 = vsel %vm3122_vm15, 1, %v9421_v41  ;;  %vm3483_vm0 = vcmp.lt.f32.partialorder %v4599_v45, %v3451_v34  ;;  %v10002_v34 = vld [vmem:[#allocation14_spill] sm:$0xff] }
 0x922   : > { %3185 = vperm.xlu1 %4187, %v3138_v22   ;;  %v3499_v18 = vsel %vm3483_vm0, 1, %v9421_v41  ;;  %v10005_v22 = vld [vmem:[#allocation115_spill] sm:$0xff] }
 0x923   : > { %3537 = vperm.xlu0 %4188, %v3496_v32   ;;  %v3086_v51 = vpop.permute.xlu0 %3085  ;;  %v10004_v32 = vld [vmem:[#allocation86_spill] sm:$0xff] }
 0x924   : > { %v3447_v36 = vpop.permute.xlu1 %3446  ;;  %vm3120_vm10 = vcmp.lt.f32.partialorder %v4597_v39, %v3086_v51  ;;  %v10006_v39 = vld [vmem:[#allocation61_spill] sm:$0xff] }
 0x925   : > { %v3136_v9 = vsel %vm3120_vm10, 1, %v9421_v41  ;;  %vm3481_vm5 = vcmp.lt.f32.partialorder %v4598_v8, %v3447_v36  ;;  %v10008_v8 = vld [vmem:[#allocation112_spill] sm:$0xff] }
 0x926   : > { %3179 = vperm.xlu1 %4187, %v3136_v9   ;;  %v3497_v31 = vsel %vm3481_vm5, 1, %v9421_v41 }
 0x927   : > { %3543 = vperm.xlu0 %4188, %v3498_v50   ;;  %v10007_v50 = vld [vmem:[#allocation113_spill] sm:$0xff] }
 0x92a   : > { %3540 = vperm.xlu1 %4187, %v3497_v31   ;;  %v10009_v31 = vld [vmem:[#allocation141_spill] sm:$0xff] }
 0x92e   : > { %3546 = vperm.xlu1 %4187, %v3499_v18  }
 0x961   : > { %v3147_v7 = vpop.permute.xlu1 %3146 }
 0x962   : > { %vm3189_vm1 = vcmp.eq.s32.totalorder %v3147_v7, 1 }
 0x963   : > { %v3205_v24 = vsel %vm3189_vm1, %v9979_v62, %v7856_v10  ;;  %v10010_v62 = vld [vmem:[#allocation106_spill] sm:$0xff] }
 0x964   : > { %3582 = vst [vmem:[%s8471_s11 + $0x10] sm:$0xff] %v3205_v24  ;;  %v10011_v24 = vld [vmem:[#allocation96_spill] sm:$0xff] }
 0x965   : > { %v3141_v16 = vpop.permute.xlu1 %3140 }
 0x966   : > { %vm3187_vm3 = vcmp.eq.s32.totalorder %v3141_v16, 1  ;;  %v3508_v41 = vpop.permute.xlu0 %3507 }
 0x967   : > { %v3203_v58 = vsel %vm3187_vm3, %v9981_v13, %v9980_v56  ;;  %vm3550_vm2 = vcmp.eq.s32.totalorder %v3508_v41, 1  ;;  %v10012_v41 = vld [vmem:[#allocation17_spill] sm:$0xff] }
 0x968   : > { %3580 = vst [vmem:[%s8471_s11] sm:$0xff] %v3203_v58  ;;  %v3566_v10 = vsel %vm3550_vm2, %v9983_v43, %v9982_v55  ;;  %v10013_v56 = vld [vmem:[#allocation105_spill] sm:$0xff] }
 0x969   : > { %3598 = vst [vmem:[%s8471_s11 + $0x90] sm:$0xff] %v3566_v10  ;;  %v3150_v3 = vpop.permute.xlu1 %3149  ;;  %v10014_v43 = vld [vmem:[#allocation89_spill] sm:$0xff]  ;;  %v10015_v10 = vld [vmem:[#allocation143_spill] sm:$0xff] }
 0x96a   : > { %vm3190_vm7 = vcmp.eq.s32.totalorder %v3150_v3, 1  ;;  %v3502_v0 = vpop.permute.xlu0 %3501 }
 0x96b   : > { %v3206_v35 = vsel %vm3190_vm7, %v9985_v28, %v9984_v53  ;;  %vm3548_vm4 = vcmp.eq.s32.totalorder %v3502_v0, 1  ;;  %v10016_v0 = vld [vmem:[#allocation99_spill] sm:$0xff]  ;;  %v10017_v53 = vld [vmem:[#allocation18_spill] sm:$0xff] }
 0x96c   : > { %3583 = vst [vmem:[%s8471_s11 + $0x18] sm:$0xff] %v3206_v35  ;;  %v3564_v26 = vsel %vm3548_vm4, %v9987_v5, %v9986_v23  ;;  %v10018_v5 = vld [vmem:[#allocation91_spill] sm:$0xff] }
 0x96d   : > { %3596 = vst [vmem:[%s8471_s11 + $0x80] sm:$0xff] %v3564_v26  ;;  %v10019_v26 = vld [vmem:[#allocation8_spill] sm:$0xff] }
 0x96e   : > { %v3511_v29 = vpop.permute.xlu1 %3510 }
 0x96f   : > { %vm3551_vm9 = vcmp.eq.s32.totalorder %v3511_v29, 1 }
 0x970   : > { %v3567_v49 = vsel %vm3551_vm9, %v9989_v57, %v9988_v48  ;;  %v10020_v48 = vld [vmem:[#allocation90_spill] sm:$0xff]  ;;  %v10021_v57 = vld [vmem:[#allocation107_spill] sm:$0xff] }
 0x971   : > { %3599 = vst [vmem:[%s8471_s11 + $0x98] sm:$0xff] %v3567_v49 }
 0x972   : > { %v3505_v4 = vpop.permute.xlu1 %3504  ;;  %v3144_v59 = vpop.permute.xlu0 %3143 }
 0x973   : > { %vm3549_vm11 = vcmp.eq.s32.totalorder %v3505_v4, 1  ;;  %vm3188_vm8 = vcmp.eq.s32.totalorder %v3144_v59, 1 }
 0x974   : > { %v3565_v37 = vsel %vm3549_vm11, %v9991_v17, %v9990_v54  ;;  %v3204_v38 = vsel %vm3188_vm8, %v9993_v44, %v9992_v46  ;;  %v10022_v54 = vld [vmem:[#allocation88_spill] sm:$0xff]  ;;  %v10023_v17 = vld [vmem:[#allocation150_spill] sm:$0xff]  ;;  %v10025_v44 = vld [vmem:[#allocation145_spill] sm:$0xff] }
 0x975   : > { %3597 = vst [vmem:[%s8471_s11 + $0x88] sm:$0xff] %v3565_v37  ;;  %3581 = vst [vmem:[%s8471_s11 + $0x8] sm:$0xff] %v3204_v38  ;;  %v10024_v46 = vld [vmem:[#allocation114_spill] sm:$0xff] }
 0x976   : > { %v3159_v14 = vpop.permute.xlu0 %3158 }
 0x977   : > { %vm3193_vm6 = vcmp.eq.s32.totalorder %v3159_v14, 1 }
 0x978   : > { %v3209_v15 = vsel %vm3193_vm6, %v9995_v33, %v9994_v12  ;;  %v10026_v33 = vld [vmem:[#allocation117_spill] sm:$0xff] }
 0x979   : > { %3586 = vst [vmem:[%s8471_s11 + $0x30] sm:$0xff] %v3209_v15  ;;  %v10027_v15 = vld [vmem:[#allocation104_spill] sm:$0xff] }
 0x97a   : > { %v3520_v40 = vpop.permute.xlu0 %3519 }
 0x97b   : > { %vm3554_vm12 = vcmp.eq.s32.totalorder %v3520_v40, 1 }
 0x97c   : > { %v3570_v47 = vsel %vm3554_vm12, %v9997_v2, %v9996_v61  ;;  %v10028_v61 = vld [vmem:[#allocation111_spill] sm:$0xff]  ;;  %v10029_v2 = vld [vmem:[#allocation148_spill] sm:$0xff] }
 0x97d   : > { %3602 = vst [vmem:[%s8471_s11 + $0xb0] sm:$0xff] %v3570_v47  ;;  %v3162_v27 = vpop.permute.xlu1 %3161 }
 0x97e   : > { %vm3194_vm13 = vcmp.eq.s32.totalorder %v3162_v27, 1  ;;  %v3153_v20 = vpop.permute.xlu0 %3152 }
 0x97f   : > { %v3210_v6 = vsel %vm3194_vm13, %v9999_v11, %v9998_v63  ;;  %vm3191_vm15 = vcmp.eq.s32.totalorder %v3153_v20, 1  ;;  %v10030_v63 = vld [vmem:[#allocation101_spill] sm:$0xff] }
 0x980   : > { %3587 = vst [vmem:[%s8471_s11 + $0x38] sm:$0xff] %v3210_v6  ;;  %v3207_v52 = vsel %vm3191_vm15, %v10001_v42, %v10000_v30  ;;  %v10031_v11 = vld [vmem:[#allocation149_spill] sm:$0xff]  ;;  %v10032_v30 = vld [vmem:[#allocation94_spill] sm:$0xff] }
 0x981   : > { %3584 = vst [vmem:[%s8471_s11 + $0x20] sm:$0xff] %v3207_v52  ;;  %v3523_v1 = vpop.permute.xlu1 %3522  ;;  %v10033_v42 = vld [vmem:[#allocation109_spill] sm:$0xff] }
 0x982   : > { %vm3555_vm14 = vcmp.eq.s32.totalorder %v3523_v1, 1  ;;  %v3514_v21 = vpop.permute.xlu0 %3513 }
 0x983   : > { %v3571_v25 = vsel %vm3555_vm14, %v10003_v60, %v10002_v34  ;;  %vm3552_vm10 = vcmp.eq.s32.totalorder %v3514_v21, 1  ;;  %v10034_v34 = vld [vmem:[#allocation140_spill] sm:$0xff]  ;;  %v10035_v60 = vld [vmem:[#allocation146_spill] sm:$0xff] }
 0x984   : > { %3603 = vst [vmem:[%s8471_s11 + $0xb8] sm:$0xff] %v3571_v25  ;;  %v3568_v19 = vsel %vm3552_vm10, %v10005_v22, %v10004_v32  ;;  %v10036_v32 = vld [vmem:[#allocation102_spill] sm:$0xff]  ;;  %v10037_v22 = vld [vmem:[#allocation95_spill] sm:$0xff] }
 0x985   : > { %3600 = vst [vmem:[%s8471_s11 + $0xa0] sm:$0xff] %v3568_v19  ;;  %v3156_v36 = vpop.permute.xlu1 %3155 }
 0x986   : > { %vm3192_vm5 = vcmp.eq.s32.totalorder %v3156_v36, 1  ;;  %v3171_v51 = vpop.permute.xlu0 %3170 }
 0x987   : > { %v3208_v9 = vsel %vm3192_vm5, %v10007_v50, %v10006_v39  ;;  %vm3197_vm0 = vcmp.eq.s32.totalorder %v3171_v51, 1  ;;  %v10038_v51 = vld [vmem:[#allocation11_spill] sm:$0xff]  ;;  %v10039_v39 = vld [vmem:[#allocation110_spill] sm:$0xff] }
 0x988   : > { %3585 = vst [vmem:[%s8471_s11 + $0x28] sm:$0xff] %v3208_v9  ;;  %v3213_v45 = vsel %vm3197_vm0, %v10009_v31, %v10008_v8  ;;  %v10040_v8 = vld [vmem:[#allocation116_spill] sm:$0xff]  ;;  %v10041_v31 = vld [vmem:[#allocation9_spill] sm:$0xff] }
 0x989   : > { %3590 = vst [vmem:[%s8471_s11 + $0x50] sm:$0xff] %v3213_v45  ;;  %v3517_v18 = vpop.permute.xlu1 %3516 }
 0x98a   : > { %vm3553_vm1 = vcmp.eq.s32.totalorder %v3517_v18, 1  ;;  %v3532_v7 = vpop.permute.xlu0 %3531 }
 0x98b   : > { %v3569_v16 = vsel %vm3553_vm1, %v10011_v24, %v10010_v62  ;;  %vm3558_vm3 = vcmp.eq.s32.totalorder %v3532_v7, 1 }
 0x98c   : > { %3601 = vst [vmem:[%s8471_s11 + $0xa8] sm:$0xff] %v3569_v16  ;;  %v3574_v13 = vsel %vm3558_vm3, %v10013_v56, %v10012_v41 }
 0x98d   : > { %3606 = vst [vmem:[%s8471_s11 + $0xd0] sm:$0xff] %v3574_v13  ;;  %v3174_v58 = vpop.permute.xlu1 %3173 }
 0x98e   : > { %v3165_v55 = vpop.permute.xlu0 %3164  ;;  %vm3198_vm2 = vcmp.eq.s32.totalorder %v3174_v58, 1 }
 0x98f   : > { %vm3195_vm7 = vcmp.eq.s32.totalorder %v3165_v55, 1  ;;  %v3214_v3 = vsel %vm3198_vm2, %v10015_v10, %v10014_v43 }
 0x990   : > { %v3211_v28 = vsel %vm3195_vm7, %v10017_v53, %v10016_v0  ;;  %3591 = vst [vmem:[%s8471_s11 + $0x58] sm:$0xff] %v3214_v3 }
 0x991   : > { %3588 = vst [vmem:[%s8471_s11 + $0x40] sm:$0xff] %v3211_v28  ;;  %v3535_v35 = vpop.permute.xlu1 %3534 }
 0x992   : > { %v3526_v23 = vpop.permute.xlu0 %3525  ;;  %vm3559_vm4 = vcmp.eq.s32.totalorder %v3535_v35, 1 }
 0x993   : > { %vm3556_vm9 = vcmp.eq.s32.totalorder %v3526_v23, 1  ;;  %v3575_v29 = vsel %vm3559_vm4, %v10019_v26, %v10018_v5 }
 0x994   : > { %v3572_v49 = vsel %vm3556_vm9, %v10021_v57, %v10020_v48  ;;  %3607 = vst [vmem:[%s8471_s11 + $0xd8] sm:$0xff] %v3575_v29 }
 0x995   : > { %3604 = vst [vmem:[%s8471_s11 + $0xc0] sm:$0xff] %v3572_v49  ;;  %v3168_v4 = vpop.permute.xlu1 %3167 }
 0x996   : > { %v3183_v59 = vpop.permute.xlu0 %3182  ;;  %vm3196_vm11 = vcmp.eq.s32.totalorder %v3168_v4, 1 }
 0x997   : > { %vm3201_vm8 = vcmp.eq.s32.totalorder %v3183_v59, 1  ;;  %v3212_v37 = vsel %vm3196_vm11, %v10023_v17, %v10022_v54 }
 0x998   : > { %v3217_v38 = vsel %vm3201_vm8, %v10025_v44, %v10024_v46  ;;  %3589 = vst [vmem:[%s8471_s11 + $0x48] sm:$0xff] %v3212_v37 }
 0x999   : > { %3594 = vst [vmem:[%s8471_s11 + $0x70] sm:$0xff] %v3217_v38  ;;  %v3529_v14 = vpop.permute.xlu1 %3528 }
 0x99a   : > { %v3177_v12 = vpop.permute.xlu0 %3176  ;;  %vm3557_vm6 = vcmp.eq.s32.totalorder %v3529_v14, 1 }
 0x99b   : > { %vm3199_vm12 = vcmp.eq.s32.totalorder %v3177_v12, 1  ;;  %v3573_v40 = vsel %vm3557_vm6, %v10027_v15, %v10026_v33 }
 0x99c   : > { %v3215_v47 = vsel %vm3199_vm12, %v10029_v2, %v10028_v61  ;;  %3605 = vst [vmem:[%s8471_s11 + $0xc8] sm:$0xff] %v3573_v40 }
 0x99d   : > { %3592 = vst [vmem:[%s8471_s11 + $0x60] sm:$0xff] %v3215_v47  ;;  %v3186_v27 = vpop.permute.xlu1 %3185 }
 0x99e   : > { %v3538_v20 = vpop.permute.xlu0 %3537  ;;  %vm3202_vm13 = vcmp.eq.s32.totalorder %v3186_v27, 1 }
 0x99f   : > { %vm3560_vm15 = vcmp.eq.s32.totalorder %v3538_v20, 1  ;;  %v3218_v6 = vsel %vm3202_vm13, %v10031_v11, %v10030_v63 }
 0x9a0   : > { %v3576_v52 = vsel %vm3560_vm15, %v10033_v42, %v10032_v30  ;;  %3595 = vst [vmem:[%s8471_s11 + $0x78] sm:$0xff] %v3218_v6 }
 0x9a1   : > { %3608 = vst [vmem:[%s8471_s11 + $0xe0] sm:$0xff] %v3576_v52  ;;  %v3180_v1 = vpop.permute.xlu1 %3179 }
 0x9a2   : > { %v3544_v21 = vpop.permute.xlu0 %3543  ;;  %vm3200_vm14 = vcmp.eq.s32.totalorder %v3180_v1, 1 }
 0x9a3   : > { %vm3562_vm10 = vcmp.eq.s32.totalorder %v3544_v21, 1  ;;  %v3216_v25 = vsel %vm3200_vm14, %v10035_v60, %v10034_v34 }
 0x9a4   : > { %v3578_v19 = vsel %vm3562_vm10, %v10037_v22, %v10036_v32  ;;  %3593 = vst [vmem:[%s8471_s11 + $0x68] sm:$0xff] %v3216_v25 }
 0x9a5   : > { %3610 = vst [vmem:[%s8471_s11 + $0xf0] sm:$0xff] %v3578_v19  ;;  %v3541_v36 = vpop.permute.xlu1 %3540 }
 0x9a6   : > { %vm3561_vm5 = vcmp.eq.s32.totalorder %v3541_v36, 1 }
 0x9a7   : > { %v3577_v50 = vsel %vm3561_vm5, %v10039_v39, %v10038_v51 }
 0x9a8   : > { %3609 = vst [vmem:[%s8471_s11 + $0xe8] sm:$0xff] %v3577_v50 }
 0x9a9   : > { %v3547_v9 = vpop.permute.xlu1 %3546 }
 0x9aa   : > { %vm3563_vm0 = vcmp.eq.s32.totalorder %v3547_v9, 1 }
 0x9ab   : > { %v3579_v45 = vsel %vm3563_vm0, %v10041_v31, %v10040_v8 }
 0x9ac   : > { %3611 = vst [vmem:[%s8471_s11 + $0xf8] sm:$0xff] %v3579_v45 }
 0x9ad   : > { %4639 = shalt.err (!%p4636_p0)
}
 0x9ae   : > { %s4640_s30 = scalar_lea.hbm %s8569_s22, 4096  ;;  %s4644_s7 = scalar_lea.hbm %s8622_s4, 8192 }
 0x9af   : > { %p4641_p1 = scmp.ne.s32.totalorder %s8569_s22, %s4640_s30  ;;  %p4645_p4 = scmp.lt.s32.totalorder %s8569_s22, %s8622_s4 }
 0x9b0   : > { %p4646_p7 = scmp.lt.s32.totalorder %s4644_s7, %s4640_s30 }
 0x9b1   : > { %p4642_p2 = pnand %p4641_p1, %p4766_p5 }
 0x9b2   : > { %p4647_p8 = por %p4646_p7, %p4645_p4 }
 0x9b3   : > { %p4643_p3 = pneg %p4642_p2 }
 0x9b5   : > { %p4648_p6 = pnand %p4647_p8, %p4643_p3 }
 0x9b7   : > { %4651 = shalt.err (!%p4648_p6)
}
 0x9b8   : > { %s4701_s10 = smov 128   ;;  %s4702_s11 = smov 8  }
 0x9b9   : > { %4126 = dma.vmem_to_hbm [thread:$0]  (%p4766_p5), %s8571_s13, 4096, %s8569_s22, %s8578_s19, %s4701_s10, %s4701_s10, %s4702_s11  }
 0x9ba PF: > { %p4138_p9 = scmp.ge.s32.totalorder %s4690_s18, 2  ;;  %s3641_s12 = sand.u32 1, %s4678_s15  }
 0x9bb   : > { %p10042_p10 = scmp.ne.s32.totalorder %s9098_s26, 0  ;;  %s3642_s14 = scalar_lea.sflag [#allocation4], %s3641_s12 }
 0x9bd   : > { %p4133_p11 = pnand %p4138_p9, %p10042_p10 }
 0x9bf   : > { %p4134_p12 = pneg %p4133_p11 }
 0x9c1   : > { %4673 = dma.done.wait (%p4134_p12), %s3642_s14, 4096  }
 0x9c2   : > { %4675 = vsyncadd (%p4134_p12), %s3642_s14, 4294963200  ;;  %p15_p13 = scmp.ge.s32.totalorder %s4753_s21, 4   ;;  %s10043_s15 = smov %s4682_s16 }
 0x9c3   : > { %s10044_s16 = smov %s4686_s17  ;;  %s10045_s17 = smov %s4764_s24 }
 0x9c4   : > { %s10046_s18 = smov %s4753_s21  ;;  %17 = sbr.rel (!%p15_p13) target bundleno = 4 (0x4), region = 79 }
 0x9c9   :  { %3647 = vsyncpa [#allocation3], 1 }
 0x9ca   :  { %3649 = vsyncpa [#allocation3 + $0x1], 1 }
 0x9cb   :  { %3650 = vsyncpa [#allocation4], 1 }
 0x9cc   :  { %3652 = vsyncpa [#allocation4 + $0x1], 1 }

</bundles_post_ra>
